<compile_context>
chip_gen: v6e
topology: v6e:2x2x1
jax: 0.10.0
libtpu: 0.0.40
codegen_flags: <defaults>
</compile_context>

<pallas_src>
import functools

import jax
import jax.numpy as jnp
from jax import lax
from jax.experimental import pallas as pl
from jax.experimental.pallas import tpu as pltpu


NUM_RES_BLOCKS = 2          # ResidualMLP(n_layers=2) in the spec
LANE = 128                  # pad feature / theta widths to multiples of this

# Feed the MXU bf16 operands (f32 accumulation): ~2x matmul throughput and
# half the weight DMA on v5e/v6e/v7x.  Numerics differ slightly from the fp32
# PyTorch reference; set False for bit-closer comparisons.
MATMUL_IN_BF16 = True


# ----------------------------- hardware knobs ---------------------------------


def _round_up(x, m):
    return ((x + m - 1) // m) * m


@functools.lru_cache(maxsize=None)
def _device_kind():
    try:
        return jax.devices()[0].device_kind.lower()
    except Exception:
        return ""


@functools.lru_cache(maxsize=None)
def _msg_dtype():
    # bf16 message math on v6e/v7x (bf16 VPU + EUP); keep f32 on older parts.
    kind = _device_kind()
    if any(v in kind for v in ("v2", "v3", "v4", "v5")):
        return jnp.float32
    return jnp.bfloat16


@functools.lru_cache(maxsize=None)
def _hw_budgets():
    """(vmem_limit_bytes, message-working-set budget bytes) per generation."""
    cap = None
    try:
        cap = getattr(pltpu.get_tpu_info(), "vmem_capacity_bytes", None)
    except Exception:
        cap = None
    if cap is None:
        cap = 64 * 2**20 if "7" in _device_kind() else 128 * 2**20
    if cap >= 100 * 2**20:              # v5e / v6e: 128 MiB physical VMEM
        return 96 * 2**20, 14 * 2**20
    return 44 * 2**20, 6 * 2**20        # v7x: 64 MiB physical VMEM


# ----------------------------- in-kernel math ---------------------------------


def _silu(x):
    return x * jax.nn.sigmoid(x)


def _mm(a, w):
    """MXU matmul; bf16 operands when the weight is stored bf16, f32 accumulate."""
    if w.dtype == jnp.bfloat16:
        a = a.astype(jnp.bfloat16)
    return jnp.dot(a, w, preferred_element_type=jnp.float32)


def _res_block(x, w1ws, b1bs, w2, b2):
    """Residual block: Linear -> SiLU -> Linear, plus parametrized Linear skip.

    w1ws is the lane-fused [w1 | w_skip] (F, 2F) weight so the main and skip
    input projections are a single lane-dense MXU push (F % 128 == 0 so the
    split below is lane-aligned).
    """
    F = w2.shape[0]
    h12 = _mm(x, w1ws) + b1bs                       # (rows, 2F)
    h = _mm(_silu(h12[:, :F]), w2) + b2             # main path
    return h + h12[:, F:]                           # + parametrized skip


# ------------------------------- kernels --------------------------------------


def _mlp_film_proj_kernel(x_ref,
                          w1a_ref, b1a_ref, w2a_ref, b2a_ref,
                          w1b_ref, b1b_ref, w2b_ref, b2b_ref,
                          wr_ref, br_ref, wf_ref, bf_ref,
                          hsrc_ref, tproj_ref):
    """ResidualMLP + fused 6-way FiLM projection for a tile of B*N node rows."""
    F = hsrc_ref.shape[1]
    x = x_ref[...].astype(jnp.float32)
    h = _res_block(x, w1a_ref[...], b1a_ref[...], w2a_ref[...], b2a_ref[...])
    h = _res_block(h, w1b_ref[...], b1b_ref[...], w2b_ref[...], b2b_ref[...])
    h = _mm(h, wr_ref[...]) + br_ref[...]           # ResidualMLP readout Linear
    # One lane-fused MXU push for all six FiLM projections:
    # [lin(src) | gamma | beta | skip | gamma_s | beta_s], each F lanes wide.
    proj = _mm(h, wf_ref[...]) + bf_ref[...]        # (rows, 6F)
    hsrc_ref[...] = proj[:, :F].astype(hsrc_ref.dtype)
    tproj_ref[...] = proj[:, F:].astype(tproj_ref.dtype)


def _film_kernel(adjn_ref, hsrc_ref, tproj_ref, *rest,
                 n_src_chunks, src_chunk, msg_dtype, adj_resident, apply_basis):
    """DenseFiLMConv aggregation for one (batch, target-tile) grid step.

    Source-chunked: the (TI, SC, F) modulated-message slab is the only large
    temporary; it is accumulated into an f32 (TI, F) accumulator so the VMEM
    working set is bounded regardless of N.  Optionally fuses the N-BEATS
    basis Linear into the output write (last layer).
    """
    if apply_basis:
        bw_ref, bb_ref, o_ref = rest
    else:
        (o_ref,) = rest

    TI = tproj_ref.shape[1]
    F = hsrc_ref.shape[2]
    i = pl.program_id(1)

    pt = tproj_ref[0]                         # (TI, 5F); F % 128 == 0 -> aligned slices
    gamma = pt[:, 0 * F:1 * F]
    beta = pt[:, 1 * F:2 * F]
    h_skip = pt[:, 2 * F:3 * F]
    gamma_s = pt[:, 3 * F:4 * F]
    beta_s = pt[:, 4 * F:5 * F]

    # Row offset into the adjacency: 0 if the block is already the target tile.
    row0 = i * TI if adj_resident else 0
    if adj_resident and TI % 8 == 0:
        row0 = pl.multiple_of(row0, 8)

    # Loop-invariant target-side broadcasts (hoisted out of the source loop).
    g = gamma.astype(msg_dtype)[:, None, :]   # (TI, 1, F)
    b = beta.astype(msg_dtype)[:, None, :]
    hsrc_view = hsrc_ref.at[0]                # (N, F) ref view, zero-cost

    def src_chunk_body(c, acc):
        s0 = c * src_chunk
        if src_chunk % 8 == 0 and not isinstance(s0, int):
            s0 = pl.multiple_of(s0, 8)
        hs = hsrc_view[pl.ds(s0, src_chunk), :].astype(msg_dtype)            # (SC, F)
        a = adjn_ref[pl.ds(row0, TI), pl.ds(s0, src_chunk)].astype(msg_dtype)  # (TI, SC)
        # FiLM-modulated messages (target gamma/beta, PyG FiLMConv semantics).
        msg = _silu(g * hs[None, :, :] + b)                                  # (TI, SC, F)
        return acc + jnp.sum(a[:, :, None] * msg, axis=1, dtype=jnp.float32)

    acc0 = jnp.zeros((TI, F), jnp.float32)
    if n_src_chunks == 1:
        agg = src_chunk_body(0, acc0)
    else:
        agg = lax.fori_loop(0, n_src_chunks, src_chunk_body, acc0,
                            unroll=n_src_chunks <= 4)

    skip = _silu(gamma_s * h_skip + beta_s)   # FiLM root/skip path (f32, small)
    out = agg + skip
    if apply_basis:
        out = _mm(out, bw_ref[...]) + bb_ref[...]   # fused basis_params Linear
    o_ref[0] = out.astype(o_ref.dtype)


# ------------------------------ tile selection ---------------------------------


def _divisor_tile(n, cap):
    """Largest multiple-of-8 divisor of n that is <= cap, else n itself."""
    cap = min(cap, n)
    for d in range(cap - cap % 8, 0, -8):
        if n % d == 0:
            return d
    return n


def _pick_row_tile(m, cap=512):
    if m <= cap:
        return m
    return _divisor_tile(m, cap)


def _film_tiles(n, f, msg_budget_bytes):
    """Pick (target tile TI, source chunk SC), both dividing n.

    The live message working set per step is ~3 (TI, SC, F) f32-equivalent
    temporaries; bound it by msg_budget_bytes.  TI is maximized first (fewer
    ~0.35us grid steps), SC takes the remaining budget (the in-kernel source
    loop is much cheaper than extra grid steps).
    """
    unit = 3 * f * 4
    ti_cap = max(8, msg_budget_bytes // (8 * unit))        # assume SC >= 8
    ti = _divisor_tile(n, min(ti_cap, 1024))
    sc_cap = max(8, msg_budget_bytes // (ti * unit))
    sc = _divisor_tile(n, sc_cap)
    return ti, sc


# ----------------------------- pallas wrappers ---------------------------------


def pallas_mlp_film_proj(h, lp, vmem_limit):
    """ResidualMLP + 6-way FiLM projection over all B*N rows.

    h: (B, N, F) -> (h_src (B, N, F), tproj (B, N, 5F)); F is lane-padded.
    """
    B, N, F = h.shape
    M = B * N
    x2d = h.reshape(M, F)
    tm = _pick_row_tile(M)

    weights = (lp["blk0_w1ws"], lp["blk0_b1bs"], lp["blk0_w2"], lp["blk0_b2"],
               lp["blk1_w1ws"], lp["blk1_b1bs"], lp["blk1_w2"], lp["blk1_b2"],
               lp["readout_w"], lp["readout_b"], lp["film_w"], lp["film_b"])

    in_specs = ([pl.BlockSpec((tm, F), lambda i: (i, 0))]
                # grid-invariant weight blocks (same index every step -> no re-DMA)
                + [pl.BlockSpec(w.shape, lambda i, nd=w.ndim: (0,) * nd)
                   for w in weights])

    hsrc2d, tproj2d = pl.pallas_call(
        _mlp_film_proj_kernel,
        out_shape=(jax.ShapeDtypeStruct((M, F), jnp.float32),
                   jax.ShapeDtypeStruct((M, 5 * F), jnp.float32)),
        grid=(M // tm,),
        in_specs=in_specs,
        out_specs=(pl.BlockSpec((tm, F), lambda i: (i, 0)),
                   pl.BlockSpec((tm, 5 * F), lambda i: (i, 0))),
        compiler_params=pltpu.CompilerParams(
            dimension_semantics=("parallel",),
            vmem_limit_bytes=vmem_limit),
    )(x2d, *weights)
    return hsrc2d.reshape(B, N, F), tproj2d.reshape(B, N, 5 * F)


def pallas_film_aggregate(adjn, hsrc, tproj, *, basis_w, basis_b,
                          vmem_limit, msg_budget):
    """Dense FiLM aggregation (+ optional fused basis Linear on the last layer)."""
    B, N, F = hsrc.shape
    TI, SC = _film_tiles(N, F, msg_budget)
    apply_basis = basis_w is not None
    Fout = basis_w.shape[1] if apply_basis else F

    # Keep the normalized adjacency resident in VMEM (DMA'd once for the whole
    # grid) whenever it fits; otherwise stream per-target-tile rows.
    adj_resident = 2 * N * N * 4 <= msg_budget
    if adj_resident:
        adj_spec = pl.BlockSpec((N, N), lambda bidx, i: (0, 0))
    else:
        adj_spec = pl.BlockSpec((TI, N), lambda bidx, i: (i, 0))

    kernel = functools.partial(
        _film_kernel,
        n_src_chunks=N // SC, src_chunk=SC, msg_dtype=_msg_dtype(),
        adj_resident=adj_resident, apply_basis=apply_basis)

    in_specs = [adj_spec,
                pl.BlockSpec((1, N, F), lambda bidx, i: (bidx, 0, 0)),        # sources
                pl.BlockSpec((1, TI, 5 * F), lambda bidx, i: (bidx, i, 0))]   # targets
    inputs = [adjn, hsrc, tproj]
    if apply_basis:
        in_specs += [pl.BlockSpec(basis_w.shape, lambda bidx, i: (0, 0)),
                     pl.BlockSpec(basis_b.shape, lambda bidx, i: (0, 0))]
        inputs += [basis_w, basis_b]

    return pl.pallas_call(
        kernel,
        out_shape=jax.ShapeDtypeStruct((B, N, Fout), jnp.float32),
        grid=(B, N // TI),
        in_specs=in_specs,
        out_specs=pl.BlockSpec((1, TI, Fout), lambda bidx, i: (bidx, i, 0)),
        compiler_params=pltpu.CompilerParams(
            # No cross-step scratch carry -> both axes can be core-split
            # (keeps the 2nd v7x TensorCore busy even at B == 1).
            dimension_semantics=("parallel", "parallel"),
            vmem_limit_bytes=vmem_limit),
    )(*inputs)


# ------------------------------- model glue ------------------------------------


def graph_nbeats_block(x, adj, params):
    vmem_limit, msg_budget = _hw_budgets()
    Hp = params["Hp"]
    B, N, H = x.shape

    # Zero-pad features to the lane-aligned width Hp.  Padded weight columns /
    # bias lanes are zero, so the padded activation lanes stay exactly zero
    # through every layer -> forward semantics unchanged, stores lane-dense.
    if Hp > H:
        x = jnp.pad(x, ((0, 0), (0, 0), (0, Hp - H)))
    h = x.astype(jnp.float32)

    # Mean-aggregation normalization hoisted out of the kernels (grid-invariant).
    deg = jnp.sum(adj, axis=1, keepdims=True)
    adjn = (adj / jnp.maximum(deg, 1.0)).astype(jnp.float32)

    n_layers = len(params["layers"])
    for li, lp in enumerate(params["layers"]):
        hsrc, tproj = pallas_mlp_film_proj(h, lp, vmem_limit)   # time_mlp + FiLM proj
        last = li == n_layers - 1
        h = pallas_film_aggregate(
            adjn, hsrc, tproj,
            basis_w=params["basis_w"] if last else None,        # basis fused on last layer
            basis_b=params["basis_b"] if last else None,
            vmem_limit=vmem_limit, msg_budget=msg_budget)

    # Drop the lane padding before the GenericBasis split.
    theta = h[..., :params["theta_size"]]
    bs, fs = params["backcast_size"], params["forecast_size"]
    return theta[..., :bs], theta[..., -fs:]


# ----------------------------- parameter setup ----------------------------------


def _init_linear(key, fan_in, fan_out, pad_in, pad_out):
    """PyTorch nn.Linear-style init at the true fan-in, zero-padded to
    (pad_in, pad_out) so padded lanes contribute / receive exactly zero."""
    kw, kb = jax.random.split(key)
    scale = 1.0 / jnp.sqrt(jnp.float32(fan_in))
    w = jax.random.uniform(kw, (fan_in, fan_out), jnp.float32, -scale, scale)
    b = jax.random.uniform(kb, (1, fan_out), jnp.float32, -scale, scale)
    w = jnp.pad(w, ((0, pad_in - fan_in), (0, pad_out - fan_out)))
    b = jnp.pad(b, ((0, 0), (0, pad_out - fan_out)))
    return w, b


def _wdt(w):
    return w.astype(jnp.bfloat16) if MATMUL_IN_BF16 else w


def init_params(key, layer_size, theta_size, n_graph_blocks, backcast_size,
                forecast_size):
    assert backcast_size + forecast_size == theta_size, (
        "GenericBasis requires backcast_size + forecast_size == theta_size")
    H = layer_size
    Hp = _round_up(H, LANE)
    Tp = _round_up(theta_size, LANE)

    layers = []
    for _ in range(n_graph_blocks):
        key, k_layer = jax.random.split(key)
        ks = jax.random.split(k_layer, 3 * NUM_RES_BLOCKS + 2)
        lp = {}
        for bi in range(NUM_RES_BLOCKS):
            w1, b1 = _init_linear(ks[3 * bi + 0], H, H, Hp, Hp)
            wsk, bsk = _init_linear(ks[3 * bi + 1], H, H, Hp, Hp)
            w2, b2 = _init_linear(ks[3 * bi + 2], H, H, Hp, Hp)
            # Lane-fuse the main and skip input projections -> one MXU push.
            lp[f"blk{bi}_w1ws"] = _wdt(jnp.concatenate([w1, wsk], axis=1))   # (Hp, 2Hp)
            lp[f"blk{bi}_b1bs"] = jnp.concatenate([b1, bsk], axis=1)         # (1, 2Hp)
            lp[f"blk{bi}_w2"] = _wdt(w2)
            lp[f"blk{bi}_b2"] = b2
        wr, br = _init_linear(ks[3 * NUM_RES_BLOCKS], H, H, Hp, Hp)
        lp["readout_w"], lp["readout_b"] = _wdt(wr), br
        # DenseFiLMConv: fuse [lin | gamma | beta | skip | gamma_s | beta_s].
        fws, fbs = [], []
        for kk in jax.random.split(ks[3 * NUM_RES_BLOCKS + 1], 6):
            w, b = _init_linear(kk, H, H, Hp, Hp)
            fws.append(w)
            fbs.append(b)
        lp["film_w"] = _wdt(jnp.concatenate(fws, axis=1))    # (Hp, 6Hp)
        lp["film_b"] = jnp.concatenate(fbs, axis=1)          # (1, 6Hp)
        layers.append(lp)

    key, kb = jax.random.split(key)
    bw, bb = _init_linear(kb, H, theta_size, Hp, Tp)
    return {"layers": layers, "basis_w": _wdt(bw), "basis_b": bb,
            "Hp": Hp, "theta_size": theta_size,
            "backcast_size": backcast_size, "forecast_size": forecast_size}


# ---------------------------------- main ----------------------------------------


if __name__ == "__main__":
    key = jax.random.PRNGKey(0)
    B, N, layer_size = 2, 8, 32          # batch, graph nodes, feature width
    theta_size, backcast_size, forecast_size = 24, 16, 8
    n_graph_blocks = 2                   # GraphNBeatsBlock(layers=2) small demo

    k_x, k_adj, k_p = jax.random.split(key, 3)
    x = jax.random.normal(k_x, (B, N, layer_size), jnp.float32)
    # Dense adjacency used as-given: the self contribution flows through the
    # FiLM skip path (PyG FiLMConv semantics), so no self-loops are forced.
    adj = (jax.random.uniform(k_adj, (N, N)) > 0.5).astype(jnp.float32)

    params = init_params(k_p, layer_size, theta_size, n_graph_blocks,
                         backcast_size, forecast_size)

    fwd = jax.jit(functools.partial(graph_nbeats_block, params=params))
    backcast, forecast = fwd(x, adj)
    jax.block_until_ready((backcast, forecast))

    assert backcast.shape == (B, N, backcast_size)
    assert forecast.shape == (B, N, forecast_size)
    print("KERNEL_OK")
</pallas_src>

<mosaic_0001>
module attributes {stable_mosaic.version = 11 : i64} {
  func.func @_film_kernel(%arg0: i32, %arg1: i32, %arg2: memref<8x8xf32, #tpu.memory_space<vmem>>, %arg3: memref<1x8x128xf32, #tpu.memory_space<vmem>>, %arg4: memref<1x8x640xf32, #tpu.memory_space<vmem>>, %arg5: memref<1x8x128xf32, #tpu.memory_space<vmem>>) attributes {dimension_semantics = [#tpu.dimension_semantics<parallel>, #tpu.dimension_semantics<parallel>], iteration_bounds = array<i64: 2, 1>, scalar_prefetch = 0 : i64, scratch_operands = 0 : i64, tpu.core_type = #tpu.core_type<tc>, window_params = [{pipeline_mode = #tpu.pipeline_mode<synchronous>, transform_indices = @transform_0, window_bounds = array<i64: 8, 8>}, {transform_indices = @transform_1, window_bounds = array<i64: 1, 8, 128>}, {transform_indices = @transform_2, window_bounds = array<i64: 1, 8, 640>}, {transform_indices = @transform_3, window_bounds = array<i64: 1, 8, 128>}]} {
    %c0 = arith.constant 0 : index
    %c0_0 = arith.constant 0 : index
    %c0_1 = arith.constant 0 : index
    %0 = vector.load %arg4[%c0, %c0_0, %c0_1] : memref<1x8x640xf32, #tpu.memory_space<vmem>>, vector<1x8x640xf32>
    %1 = vector.shape_cast %0 : vector<1x8x640xf32> to vector<8x640xf32>
    %2 = vector.extract_strided_slice %1 {offsets = [0, 0], sizes = [8, 128], strides = [1, 1]} : vector<8x640xf32> to vector<8x128xf32>
    %3 = vector.extract_strided_slice %1 {offsets = [0, 128], sizes = [8, 128], strides = [1, 1]} : vector<8x640xf32> to vector<8x128xf32>
    %4 = vector.extract_strided_slice %1 {offsets = [0, 256], sizes = [8, 128], strides = [1, 1]} : vector<8x640xf32> to vector<8x128xf32>
    %5 = vector.extract_strided_slice %1 {offsets = [0, 384], sizes = [8, 128], strides = [1, 1]} : vector<8x640xf32> to vector<8x128xf32>
    %6 = vector.extract_strided_slice %1 {offsets = [0, 512], sizes = [8, 128], strides = [1, 1]} : vector<8x640xf32> to vector<8x128xf32>
    %c8_i32 = arith.constant 8 : i32
    %7 = arith.muli %arg1, %c8_i32 : i32
    %8 = tpu.assume_multiple %7, 8 : i32
    %9 = arith.truncf %2 : vector<8x128xf32> to vector<8x128xbf16>
    %10 = vector.shape_cast %9 : vector<8x128xbf16> to vector<8x1x128xbf16>
    %11 = arith.truncf %3 : vector<8x128xf32> to vector<8x128xbf16>
    %12 = vector.shape_cast %11 : vector<8x128xbf16> to vector<8x1x128xbf16>
    %cst = arith.constant 0.000000e+00 : f32
    %13 = vector.broadcast %cst : f32 to vector<8x128xf32>
    %c0_i32 = arith.constant 0 : i32
    %c0_i32_2 = arith.constant 0 : i32
    %c0_i32_3 = arith.constant 0 : i32
    %14 = tpu.memref_slice %arg3[%c0_i32, %c0_i32_2, %c0_i32_3] : memref<1x8x128xf32, #tpu.memory_space<vmem>> -> memref<1x8x128xf32, #tpu.memory_space<vmem>>
    %15 = tpu.memref_squeeze %14 : memref<1x8x128xf32, #tpu.memory_space<vmem>> -> memref<8x128xf32, #tpu.memory_space<vmem>>
    %c0_4 = arith.constant 0 : index
    %c0_5 = arith.constant 0 : index
    %16 = vector.load %15[%c0_4, %c0_5] : memref<8x128xf32, #tpu.memory_space<vmem>>, vector<8x128xf32>
    %17 = arith.truncf %16 : vector<8x128xf32> to vector<8x128xbf16>
    %18 = arith.index_cast %8 : i32 to index
    %c0_6 = arith.constant 0 : index
    %19 = vector.load %arg2[%18, %c0_6] : memref<8x8xf32, #tpu.memory_space<vmem>>, vector<8x8xf32>
    %20 = arith.truncf %19 : vector<8x8xf32> to vector<8x8xbf16>
    %21 = vector.shape_cast %17 : vector<8x128xbf16> to vector<1x8x128xbf16>
    %22 = vector.broadcast %10 : vector<8x1x128xbf16> to vector<8x8x128xbf16>
    %23 = vector.broadcast %21 : vector<1x8x128xbf16> to vector<8x8x128xbf16>
    %24 = arith.mulf %22, %23 : vector<8x8x128xbf16>
    %25 = vector.broadcast %12 : vector<8x1x128xbf16> to vector<8x8x128xbf16>
    %26 = arith.addf %24, %25 : vector<8x8x128xbf16>
    %27 = arith.negf %26 : vector<8x8x128xbf16>
    %28 = math.exp %27 : vector<8x8x128xbf16>
    %cst_7 = arith.constant 1.000000e+00 : bf16
    %29 = vector.broadcast %cst_7 : bf16 to vector<8x8x128xbf16>
    %30 = arith.addf %29, %28 : vector<8x8x128xbf16>
    %31 = arith.divf %29, %30 : vector<8x8x128xbf16>
    %32 = arith.mulf %26, %31 : vector<8x8x128xbf16>
    %33 = vector.shape_cast %20 : vector<8x8xbf16> to vector<8x8x1xbf16>
    %34 = vector.broadcast %33 : vector<8x8x1xbf16> to vector<8x8x128xbf16>
    %35 = arith.mulf %34, %32 : vector<8x8x128xbf16>
    %36 = arith.extf %35 : vector<8x8x128xbf16> to vector<8x8x128xf32>
    %cst_8 = arith.constant dense<0.000000e+00> : vector<8x128xf32>
    %37 = vector.multi_reduction <add>, %36, %cst_8 [1] : vector<8x8x128xf32> to vector<8x128xf32>
    %38 = arith.addf %13, %37 : vector<8x128xf32>
    %39 = arith.mulf %5, %4 : vector<8x128xf32>
    %40 = arith.addf %39, %6 : vector<8x128xf32>
    %41 = arith.negf %40 : vector<8x128xf32>
    %42 = math.exp %41 : vector<8x128xf32>
    %cst_9 = arith.constant 1.000000e+00 : f32
    %43 = vector.broadcast %cst_9 : f32 to vector<8x128xf32>
    %44 = arith.addf %43, %42 : vector<8x128xf32>
    %45 = arith.divf %43, %44 : vector<8x128xf32>
    %46 = arith.mulf %40, %45 : vector<8x128xf32>
    %47 = arith.addf %38, %46 : vector<8x128xf32>
    %c0_10 = arith.constant 0 : index
    %c0_11 = arith.constant 0 : index
    %c0_12 = arith.constant 0 : index
    %48 = vector.load %arg5[%c0_10, %c0_11, %c0_12] : memref<1x8x128xf32, #tpu.memory_space<vmem>>, vector<1x8x128xf32>
    %49 = vector.shape_cast %48 : vector<1x8x128xf32> to vector<8x128xf32>
    %50 = vector.shape_cast %47 : vector<8x128xf32> to vector<1x8x128xf32>
    tpu.vector_store %arg5[%c0_10, %c0_11, %c0_12], %50 {strides = array<i32>} : memref<1x8x128xf32, #tpu.memory_space<vmem>>, vector<1x8x128xf32>,
    return
  }
  func.func @transform_0(%arg0: i32, %arg1: i32) -> (i32, i32) {
    %c0_i32 = arith.constant 0 : i32
    %c0_i32_0 = arith.constant 0 : i32
    %c0_i32_1 = arith.constant 0 : i32
    return %c0_i32, %c0_i32_0 : i32, i32
  }
  func.func @transform_1(%arg0: i32, %arg1: i32) -> (i32, i32, i32) {
    %c0_i32 = arith.constant 0 : i32
    %c0_i32_0 = arith.constant 0 : i32
    %c0_i32_1 = arith.constant 0 : i32
    return %arg0, %c0_i32, %c0_i32_0 : i32, i32, i32
  }
  func.func @transform_2(%arg0: i32, %arg1: i32) -> (i32, i32, i32) {
    %c0_i32 = arith.constant 0 : i32
    %c0_i32_0 = arith.constant 0 : i32
    return %arg0, %arg1, %c0_i32 : i32, i32, i32
  }
  func.func @transform_3(%arg0: i32, %arg1: i32) -> (i32, i32, i32) {
    %c0_i32 = arith.constant 0 : i32
    %c0_i32_0 = arith.constant 0 : i32
    return %arg0, %arg1, %c0_i32 : i32, i32, i32
  }
}

module attributes {stable_mosaic.version = 11 : i64} {
  func.func @_film_kernel(%arg0: i32, %arg1: i32, %arg2: memref<8x8xf32, #tpu.memory_space<vmem>>, %arg3: memref<1x8x128xf32, #tpu.memory_space<vmem>>, %arg4: memref<1x8x640xf32, #tpu.memory_space<vmem>>, %arg5: memref<128x128xbf16, #tpu.memory_space<vmem>>, %arg6: memref<1x128xf32, #tpu.memory_space<vmem>>, %arg7: memref<1x8x128xf32, #tpu.memory_space<vmem>>) attributes {dimension_semantics = [#tpu.dimension_semantics<parallel>, #tpu.dimension_semantics<parallel>], iteration_bounds = array<i64: 2, 1>, scalar_prefetch = 0 : i64, scratch_operands = 0 : i64, tpu.core_type = #tpu.core_type<tc>, window_params = [{pipeline_mode = #tpu.pipeline_mode<synchronous>, transform_indices = @transform_0, window_bounds = array<i64: 8, 8>}, {transform_indices = @transform_1, window_bounds = array<i64: 1, 8, 128>}, {transform_indices = @transform_2, window_bounds = array<i64: 1, 8, 640>}, {pipeline_mode = #tpu.pipeline_mode<synchronous>, transform_indices = @transform_3, window_bounds = array<i64: 128, 128>}, {pipeline_mode = #tpu.pipeline_mode<synchronous>, transform_indices = @transform_4, window_bounds = array<i64: 1, 128>}, {transform_indices = @transform_5, window_bounds = array<i64: 1, 8, 128>}]} {
    %c0 = arith.constant 0 : index
    %c0_0 = arith.constant 0 : index
    %c0_1 = arith.constant 0 : index
    %0 = vector.load %arg4[%c0, %c0_0, %c0_1] : memref<1x8x640xf32, #tpu.memory_space<vmem>>, vector<1x8x640xf32>
    %1 = vector.shape_cast %0 : vector<1x8x640xf32> to vector<8x640xf32>
    %2 = vector.extract_strided_slice %1 {offsets = [0, 0], sizes = [8, 128], strides = [1, 1]} : vector<8x640xf32> to vector<8x128xf32>
    %3 = vector.extract_strided_slice %1 {offsets = [0, 128], sizes = [8, 128], strides = [1, 1]} : vector<8x640xf32> to vector<8x128xf32>
    %4 = vector.extract_strided_slice %1 {offsets = [0, 256], sizes = [8, 128], strides = [1, 1]} : vector<8x640xf32> to vector<8x128xf32>
    %5 = vector.extract_strided_slice %1 {offsets = [0, 384], sizes = [8, 128], strides = [1, 1]} : vector<8x640xf32> to vector<8x128xf32>
    %6 = vector.extract_strided_slice %1 {offsets = [0, 512], sizes = [8, 128], strides = [1, 1]} : vector<8x640xf32> to vector<8x128xf32>
    %c8_i32 = arith.constant 8 : i32
    %7 = arith.muli %arg1, %c8_i32 : i32
    %8 = tpu.assume_multiple %7, 8 : i32
    %9 = arith.truncf %2 : vector<8x128xf32> to vector<8x128xbf16>
    %10 = vector.shape_cast %9 : vector<8x128xbf16> to vector<8x1x128xbf16>
    %11 = arith.truncf %3 : vector<8x128xf32> to vector<8x128xbf16>
    %12 = vector.shape_cast %11 : vector<8x128xbf16> to vector<8x1x128xbf16>
    %cst = arith.constant 0.000000e+00 : f32
    %13 = vector.broadcast %cst : f32 to vector<8x128xf32>
    %c0_i32 = arith.constant 0 : i32
    %c0_i32_2 = arith.constant 0 : i32
    %c0_i32_3 = arith.constant 0 : i32
    %14 = tpu.memref_slice %arg3[%c0_i32, %c0_i32_2, %c0_i32_3] : memref<1x8x128xf32, #tpu.memory_space<vmem>> -> memref<1x8x128xf32, #tpu.memory_space<vmem>>
    %15 = tpu.memref_squeeze %14 : memref<1x8x128xf32, #tpu.memory_space<vmem>> -> memref<8x128xf32, #tpu.memory_space<vmem>>
    %c0_4 = arith.constant 0 : index
    %c0_5 = arith.constant 0 : index
    %16 = vector.load %15[%c0_4, %c0_5] : memref<8x128xf32, #tpu.memory_space<vmem>>, vector<8x128xf32>
    %17 = arith.truncf %16 : vector<8x128xf32> to vector<8x128xbf16>
    %18 = arith.index_cast %8 : i32 to index
    %c0_6 = arith.constant 0 : index
    %19 = vector.load %arg2[%18, %c0_6] : memref<8x8xf32, #tpu.memory_space<vmem>>, vector<8x8xf32>
    %20 = arith.truncf %19 : vector<8x8xf32> to vector<8x8xbf16>
    %21 = vector.shape_cast %17 : vector<8x128xbf16> to vector<1x8x128xbf16>
    %22 = vector.broadcast %10 : vector<8x1x128xbf16> to vector<8x8x128xbf16>
    %23 = vector.broadcast %21 : vector<1x8x128xbf16> to vector<8x8x128xbf16>
    %24 = arith.mulf %22, %23 : vector<8x8x128xbf16>
    %25 = vector.broadcast %12 : vector<8x1x128xbf16> to vector<8x8x128xbf16>
    %26 = arith.addf %24, %25 : vector<8x8x128xbf16>
    %27 = arith.negf %26 : vector<8x8x128xbf16>
    %28 = math.exp %27 : vector<8x8x128xbf16>
    %cst_7 = arith.constant 1.000000e+00 : bf16
    %29 = vector.broadcast %cst_7 : bf16 to vector<8x8x128xbf16>
    %30 = arith.addf %29, %28 : vector<8x8x128xbf16>
    %31 = arith.divf %29, %30 : vector<8x8x128xbf16>
    %32 = arith.mulf %26, %31 : vector<8x8x128xbf16>
    %33 = vector.shape_cast %20 : vector<8x8xbf16> to vector<8x8x1xbf16>
    %34 = vector.broadcast %33 : vector<8x8x1xbf16> to vector<8x8x128xbf16>
    %35 = arith.mulf %34, %32 : vector<8x8x128xbf16>
    %36 = arith.extf %35 : vector<8x8x128xbf16> to vector<8x8x128xf32>
    %cst_8 = arith.constant dense<0.000000e+00> : vector<8x128xf32>
    %37 = vector.multi_reduction <add>, %36, %cst_8 [1] : vector<8x8x128xf32> to vector<8x128xf32>
    %38 = arith.addf %13, %37 : vector<8x128xf32>
    %39 = arith.mulf %5, %4 : vector<8x128xf32>
    %40 = arith.addf %39, %6 : vector<8x128xf32>
    %41 = arith.negf %40 : vector<8x128xf32>
    %42 = math.exp %41 : vector<8x128xf32>
    %cst_9 = arith.constant 1.000000e+00 : f32
    %43 = vector.broadcast %cst_9 : f32 to vector<8x128xf32>
    %44 = arith.addf %43, %42 : vector<8x128xf32>
    %45 = arith.divf %43, %44 : vector<8x128xf32>
    %46 = arith.mulf %40, %45 : vector<8x128xf32>
    %47 = arith.addf %38, %46 : vector<8x128xf32>
    %c0_10 = arith.constant 0 : index
    %c0_11 = arith.constant 0 : index
    %48 = vector.load %arg5[%c0_10, %c0_11] : memref<128x128xbf16, #tpu.memory_space<vmem>>, vector<128x128xbf16>
    %49 = arith.truncf %47 : vector<8x128xf32> to vector<8x128xbf16>
    %cst_12 = arith.constant dense<0.000000e+00> : vector<8x128xf32>
    %50 = tpu.matmul %49, %48, %cst_12 {dimension_numbers = #tpu.dot_dimension_numbers<[1], [0], [0], [1], [0, 0, 1, 1], [], []>} : vector<8x128xbf16>, vector<128x128xbf16>, vector<8x128xf32> -> vector<8x128xf32>
    %c0_13 = arith.constant 0 : index
    %c0_14 = arith.constant 0 : index
    %51 = vector.load %arg6[%c0_13, %c0_14] : memref<1x128xf32, #tpu.memory_space<vmem>>, vector<1x128xf32>
    %52 = vector.broadcast %51 : vector<1x128xf32> to vector<8x128xf32>
    %53 = arith.addf %50, %52 : vector<8x128xf32>
    %c0_15 = arith.constant 0 : index
    %c0_16 = arith.constant 0 : index
    %c0_17 = arith.constant 0 : index
    %54 = vector.load %arg7[%c0_15, %c0_16, %c0_17] : memref<1x8x128xf32, #tpu.memory_space<vmem>>, vector<1x8x128xf32>
    %55 = vector.shape_cast %54 : vector<1x8x128xf32> to vector<8x128xf32>
    %56 = vector.shape_cast %53 : vector<8x128xf32> to vector<1x8x128xf32>
    tpu.vector_store %arg7[%c0_15, %c0_16, %c0_17], %56 {strides = array<i32>} : memref<1x8x128xf32, #tpu.memory_space<vmem>>, vector<1x8x128xf32>,
    return
  }
  func.func @transform_0(%arg0: i32, %arg1: i32) -> (i32, i32) {
    %c0_i32 = arith.constant 0 : i32
    %c0_i32_0 = arith.constant 0 : i32
    %c0_i32_1 = arith.constant 0 : i32
    return %c0_i32, %c0_i32_0 : i32, i32
  }
  func.func @transform_1(%arg0: i32, %arg1: i32) -> (i32, i32, i32) {
    %c0_i32 = arith.constant 0 : i32
    %c0_i32_0 = arith.constant 0 : i32
    %c0_i32_1 = arith.constant 0 : i32
    return %arg0, %c0_i32, %c0_i32_0 : i32, i32, i32
  }
  func.func @transform_2(%arg0: i32, %arg1: i32) -> (i32, i32, i32) {
    %c0_i32 = arith.constant 0 : i32
    %c0_i32_0 = arith.constant 0 : i32
    return %arg0, %arg1, %c0_i32 : i32, i32, i32
  }
  func.func @transform_3(%arg0: i32, %arg1: i32) -> (i32, i32) {
    %c0_i32 = arith.constant 0 : i32
    %c0_i32_0 = arith.constant 0 : i32
    %c0_i32_1 = arith.constant 0 : i32
    return %c0_i32, %c0_i32_0 : i32, i32
  }
  func.func @transform_4(%arg0: i32, %arg1: i32) -> (i32, i32) {
    %c0_i32 = arith.constant 0 : i32
    %c0_i32_0 = arith.constant 0 : i32
    %c0_i32_1 = arith.constant 0 : i32
    return %c0_i32, %c0_i32_0 : i32, i32
  }
  func.func @transform_5(%arg0: i32, %arg1: i32) -> (i32, i32, i32) {
    %c0_i32 = arith.constant 0 : i32
    %c0_i32_0 = arith.constant 0 : i32
    return %arg0, %arg1, %c0_i32 : i32, i32, i32
  }
}

module attributes {stable_mosaic.version = 11 : i64} {
  func.func @_mlp_film_proj_kernel(%arg0: i32, %arg1: memref<16x128xf32, #tpu.memory_space<vmem>>, %arg2: memref<128x256xbf16, #tpu.memory_space<vmem>>, %arg3: memref<1x256xf32, #tpu.memory_space<vmem>>, %arg4: memref<128x128xbf16, #tpu.memory_space<vmem>>, %arg5: memref<1x128xf32, #tpu.memory_space<vmem>>, %arg6: memref<128x256xbf16, #tpu.memory_space<vmem>>, %arg7: memref<1x256xf32, #tpu.memory_space<vmem>>, %arg8: memref<128x128xbf16, #tpu.memory_space<vmem>>, %arg9: memref<1x128xf32, #tpu.memory_space<vmem>>, %arg10: memref<128x128xbf16, #tpu.memory_space<vmem>>, %arg11: memref<1x128xf32, #tpu.memory_space<vmem>>, %arg12: memref<128x768xbf16, #tpu.memory_space<vmem>>, %arg13: memref<1x768xf32, #tpu.memory_space<vmem>>, %arg14: memref<16x128xf32, #tpu.memory_space<vmem>>, %arg15: memref<16x640xf32, #tpu.memory_space<vmem>>) attributes {dimension_semantics = [#tpu.dimension_semantics<parallel>], iteration_bounds = array<i64: 1>, scalar_prefetch = 0 : i64, scratch_operands = 0 : i64, tpu.core_type = #tpu.core_type<tc>, window_params = [{transform_indices = @transform_0, window_bounds = array<i64: 16, 128>}, {pipeline_mode = #tpu.pipeline_mode<synchronous>, transform_indices = @transform_1, window_bounds = array<i64: 128, 256>}, {pipeline_mode = #tpu.pipeline_mode<synchronous>, transform_indices = @transform_2, window_bounds = array<i64: 1, 256>}, {pipeline_mode = #tpu.pipeline_mode<synchronous>, transform_indices = @transform_3, window_bounds = array<i64: 128, 128>}, {pipeline_mode = #tpu.pipeline_mode<synchronous>, transform_indices = @transform_4, window_bounds = array<i64: 1, 128>}, {pipeline_mode = #tpu.pipeline_mode<synchronous>, transform_indices = @transform_5, window_bounds = array<i64: 128, 256>}, {pipeline_mode = #tpu.pipeline_mode<synchronous>, transform_indices = @transform_6, window_bounds = array<i64: 1, 256>}, {pipeline_mode = #tpu.pipeline_mode<synchronous>, transform_indices = @transform_7, window_bounds = array<i64: 128, 128>}, {pipeline_mode = #tpu.pipeline_mode<synchronous>, transform_indices = @transform_8, window_bounds = array<i64: 1, 128>}, {pipeline_mode = #tpu.pipeline_mode<synchronous>, transform_indices = @transform_9, window_bounds = array<i64: 128, 128>}, {pipeline_mode = #tpu.pipeline_mode<synchronous>, transform_indices = @transform_10, window_bounds = array<i64: 1, 128>}, {pipeline_mode = #tpu.pipeline_mode<synchronous>, transform_indices = @transform_11, window_bounds = array<i64: 128, 768>}, {pipeline_mode = #tpu.pipeline_mode<synchronous>, transform_indices = @transform_12, window_bounds = array<i64: 1, 768>}, {transform_indices = @transform_13, window_bounds = array<i64: 16, 128>}, {transform_indices = @transform_14, window_bounds = array<i64: 16, 640>}]} {
    %c0 = arith.constant 0 : index
    %c0_0 = arith.constant 0 : index
    %0 = vector.load %arg1[%c0, %c0_0] : memref<16x128xf32, #tpu.memory_space<vmem>>, vector<16x128xf32>
    %c0_1 = arith.constant 0 : index
    %c0_2 = arith.constant 0 : index
    %1 = vector.load %arg2[%c0_1, %c0_2] : memref<128x256xbf16, #tpu.memory_space<vmem>>, vector<128x256xbf16>
    %c0_3 = arith.constant 0 : index
    %c0_4 = arith.constant 0 : index
    %2 = vector.load %arg3[%c0_3, %c0_4] : memref<1x256xf32, #tpu.memory_space<vmem>>, vector<1x256xf32>
    %c0_5 = arith.constant 0 : index
    %c0_6 = arith.constant 0 : index
    %3 = vector.load %arg4[%c0_5, %c0_6] : memref<128x128xbf16, #tpu.memory_space<vmem>>, vector<128x128xbf16>
    %c0_7 = arith.constant 0 : index
    %c0_8 = arith.constant 0 : index
    %4 = vector.load %arg5[%c0_7, %c0_8] : memref<1x128xf32, #tpu.memory_space<vmem>>, vector<1x128xf32>
    %5 = arith.truncf %0 : vector<16x128xf32> to vector<16x128xbf16>
    %cst = arith.constant dense<0.000000e+00> : vector<16x256xf32>
    %6 = tpu.matmul %5, %1, %cst {dimension_numbers = #tpu.dot_dimension_numbers<[1], [0], [0], [1], [0, 0, 1, 1], [], []>} : vector<16x128xbf16>, vector<128x256xbf16>, vector<16x256xf32> -> vector<16x256xf32>
    %7 = vector.broadcast %2 : vector<1x256xf32> to vector<16x256xf32>
    %8 = arith.addf %6, %7 : vector<16x256xf32>
    %9 = vector.extract_strided_slice %8 {offsets = [0, 0], sizes = [16, 128], strides = [1, 1]} : vector<16x256xf32> to vector<16x128xf32>
    %10 = arith.negf %9 : vector<16x128xf32>
    %11 = math.exp %10 : vector<16x128xf32>
    %cst_9 = arith.constant 1.000000e+00 : f32
    %12 = vector.broadcast %cst_9 : f32 to vector<16x128xf32>
    %13 = arith.addf %12, %11 : vector<16x128xf32>
    %14 = arith.divf %12, %13 : vector<16x128xf32>
    %15 = arith.mulf %9, %14 : vector<16x128xf32>
    %16 = arith.truncf %15 : vector<16x128xf32> to vector<16x128xbf16>
    %cst_10 = arith.constant dense<0.000000e+00> : vector<16x128xf32>
    %17 = tpu.matmul %16, %3, %cst_10 {dimension_numbers = #tpu.dot_dimension_numbers<[1], [0], [0], [1], [0, 0, 1, 1], [], []>} : vector<16x128xbf16>, vector<128x128xbf16>, vector<16x128xf32> -> vector<16x128xf32>
    %18 = vector.broadcast %4 : vector<1x128xf32> to vector<16x128xf32>
    %19 = arith.addf %17, %18 : vector<16x128xf32>
    %20 = vector.extract_strided_slice %8 {offsets = [0, 128], sizes = [16, 128], strides = [1, 1]} : vector<16x256xf32> to vector<16x128xf32>
    %21 = arith.addf %19, %20 : vector<16x128xf32>
    %c0_11 = arith.constant 0 : index
    %c0_12 = arith.constant 0 : index
    %22 = vector.load %arg6[%c0_11, %c0_12] : memref<128x256xbf16, #tpu.memory_space<vmem>>, vector<128x256xbf16>
    %c0_13 = arith.constant 0 : index
    %c0_14 = arith.constant 0 : index
    %23 = vector.load %arg7[%c0_13, %c0_14] : memref<1x256xf32, #tpu.memory_space<vmem>>, vector<1x256xf32>
    %c0_15 = arith.constant 0 : index
    %c0_16 = arith.constant 0 : index
    %24 = vector.load %arg8[%c0_15, %c0_16] : memref<128x128xbf16, #tpu.memory_space<vmem>>, vector<128x128xbf16>
    %c0_17 = arith.constant 0 : index
    %c0_18 = arith.constant 0 : index
    %25 = vector.load %arg9[%c0_17, %c0_18] : memref<1x128xf32, #tpu.memory_space<vmem>>, vector<1x128xf32>
    %26 = arith.truncf %21 : vector<16x128xf32> to vector<16x128xbf16>
    %cst_19 = arith.constant dense<0.000000e+00> : vector<16x256xf32>
    %27 = tpu.matmul %26, %22, %cst_19 {dimension_numbers = #tpu.dot_dimension_numbers<[1], [0], [0], [1], [0, 0, 1, 1], [], []>} : vector<16x128xbf16>, vector<128x256xbf16>, vector<16x256xf32> -> vector<16x256xf32>
    %28 = vector.broadcast %23 : vector<1x256xf32> to vector<16x256xf32>
    %29 = arith.addf %27, %28 : vector<16x256xf32>
    %30 = vector.extract_strided_slice %29 {offsets = [0, 0], sizes = [16, 128], strides = [1, 1]} : vector<16x256xf32> to vector<16x128xf32>
    %31 = arith.negf %30 : vector<16x128xf32>
    %32 = math.exp %31 : vector<16x128xf32>
    %cst_20 = arith.constant 1.000000e+00 : f32
    %33 = vector.broadcast %cst_20 : f32 to vector<16x128xf32>
    %34 = arith.addf %33, %32 : vector<16x128xf32>
    %35 = arith.divf %33, %34 : vector<16x128xf32>
    %36 = arith.mulf %30, %35 : vector<16x128xf32>
    %37 = arith.truncf %36 : vector<16x128xf32> to vector<16x128xbf16>
    %cst_21 = arith.constant dense<0.000000e+00> : vector<16x128xf32>
    %38 = tpu.matmul %37, %24, %cst_21 {dimension_numbers = #tpu.dot_dimension_numbers<[1], [0], [0], [1], [0, 0, 1, 1], [], []>} : vector<16x128xbf16>, vector<128x128xbf16>, vector<16x128xf32> -> vector<16x128xf32>
    %39 = vector.broadcast %25 : vector<1x128xf32> to vector<16x128xf32>
    %40 = arith.addf %38, %39 : vector<16x128xf32>
    %41 = vector.extract_strided_slice %29 {offsets = [0, 128], sizes = [16, 128], strides = [1, 1]} : vector<16x256xf32> to vector<16x128xf32>
    %42 = arith.addf %40, %41 : vector<16x128xf32>
    %c0_22 = arith.constant 0 : index
    %c0_23 = arith.constant 0 : index
    %43 = vector.load %arg10[%c0_22, %c0_23] : memref<128x128xbf16, #tpu.memory_space<vmem>>, vector<128x128xbf16>
    %44 = arith.truncf %42 : vector<16x128xf32> to vector<16x128xbf16>
    %cst_24 = arith.constant dense<0.000000e+00> : vector<16x128xf32>
    %45 = tpu.matmul %44, %43, %cst_24 {dimension_numbers = #tpu.dot_dimension_numbers<[1], [0], [0], [1], [0, 0, 1, 1], [], []>} : vector<16x128xbf16>, vector<128x128xbf16>, vector<16x128xf32> -> vector<16x128xf32>
    %c0_25 = arith.constant 0 : index
    %c0_26 = arith.constant 0 : index
    %46 = vector.load %arg11[%c0_25, %c0_26] : memref<1x128xf32, #tpu.memory_space<vmem>>, vector<1x128xf32>
    %47 = vector.broadcast %46 : vector<1x128xf32> to vector<16x128xf32>
    %48 = arith.addf %45, %47 : vector<16x128xf32>
    %c0_27 = arith.constant 0 : index
    %c0_28 = arith.constant 0 : index
    %49 = vector.load %arg12[%c0_27, %c0_28] : memref<128x768xbf16, #tpu.memory_space<vmem>>, vector<128x768xbf16>
    %50 = arith.truncf %48 : vector<16x128xf32> to vector<16x128xbf16>
    %cst_29 = arith.constant dense<0.000000e+00> : vector<16x768xf32>
    %51 = tpu.matmul %50, %49, %cst_29 {dimension_numbers = #tpu.dot_dimension_numbers<[1], [0], [0], [1], [0, 0, 1, 1], [], []>} : vector<16x128xbf16>, vector<128x768xbf16>, vector<16x768xf32> -> vector<16x768xf32>
    %c0_30 = arith.constant 0 : index
    %c0_31 = arith.constant 0 : index
    %52 = vector.load %arg13[%c0_30, %c0_31] : memref<1x768xf32, #tpu.memory_space<vmem>>, vector<1x768xf32>
    %53 = vector.broadcast %52 : vector<1x768xf32> to vector<16x768xf32>
    %54 = arith.addf %51, %53 : vector<16x768xf32>
    %55 = vector.extract_strided_slice %54 {offsets = [0, 0], sizes = [16, 128], strides = [1, 1]} : vector<16x768xf32> to vector<16x128xf32>
    %c0_32 = arith.constant 0 : index
    %c0_33 = arith.constant 0 : index
    %56 = vector.load %arg14[%c0_32, %c0_33] : memref<16x128xf32, #tpu.memory_space<vmem>>, vector<16x128xf32>
    tpu.vector_store %arg14[%c0_32, %c0_33], %55 {strides = array<i32>} : memref<16x128xf32, #tpu.memory_space<vmem>>, vector<16x128xf32>,
    %57 = vector.extract_strided_slice %54 {offsets = [0, 128], sizes = [16, 640], strides = [1, 1]} : vector<16x768xf32> to vector<16x640xf32>
    %c0_34 = arith.constant 0 : index
    %c0_35 = arith.constant 0 : index
    %58 = vector.load %arg15[%c0_34, %c0_35] : memref<16x640xf32, #tpu.memory_space<vmem>>, vector<16x640xf32>
    tpu.vector_store %arg15[%c0_34, %c0_35], %57 {strides = array<i32>} : memref<16x640xf32, #tpu.memory_space<vmem>>, vector<16x640xf32>,
    return
  }
  func.func @transform_0(%arg0: i32) -> (i32, i32) {
    %c0_i32 = arith.constant 0 : i32
    %c0_i32_0 = arith.constant 0 : i32
    return %arg0, %c0_i32 : i32, i32
  }
  func.func @transform_1(%arg0: i32) -> (i32, i32) {
    %c0_i32 = arith.constant 0 : i32
    %c0_i32_0 = arith.constant 0 : i32
    %c0_i32_1 = arith.constant 0 : i32
    return %c0_i32, %c0_i32_0 : i32, i32
  }
  func.func @transform_2(%arg0: i32) -> (i32, i32) {
    %c0_i32 = arith.constant 0 : i32
    %c0_i32_0 = arith.constant 0 : i32
    %c0_i32_1 = arith.constant 0 : i32
    return %c0_i32, %c0_i32_0 : i32, i32
  }
  func.func @transform_3(%arg0: i32) -> (i32, i32) {
    %c0_i32 = arith.constant 0 : i32
    %c0_i32_0 = arith.constant 0 : i32
    %c0_i32_1 = arith.constant 0 : i32
    return %c0_i32, %c0_i32_0 : i32, i32
  }
  func.func @transform_4(%arg0: i32) -> (i32, i32) {
    %c0_i32 = arith.constant 0 : i32
    %c0_i32_0 = arith.constant 0 : i32
    %c0_i32_1 = arith.constant 0 : i32
    return %c0_i32, %c0_i32_0 : i32, i32
  }
  func.func @transform_5(%arg0: i32) -> (i32, i32) {
    %c0_i32 = arith.constant 0 : i32
    %c0_i32_0 = arith.constant 0 : i32
    %c0_i32_1 = arith.constant 0 : i32
    return %c0_i32, %c0_i32_0 : i32, i32
  }
  func.func @transform_6(%arg0: i32) -> (i32, i32) {
    %c0_i32 = arith.constant 0 : i32
    %c0_i32_0 = arith.constant 0 : i32
    %c0_i32_1 = arith.constant 0 : i32
    return %c0_i32, %c0_i32_0 : i32, i32
  }
  func.func @transform_7(%arg0: i32) -> (i32, i32) {
    %c0_i32 = arith.constant 0 : i32
    %c0_i32_0 = arith.constant 0 : i32
    %c0_i32_1 = arith.constant 0 : i32
    return %c0_i32, %c0_i32_0 : i32, i32
  }
  func.func @transform_8(%arg0: i32) -> (i32, i32) {
    %c0_i32 = arith.constant 0 : i32
    %c0_i32_0 = arith.constant 0 : i32
    %c0_i32_1 = arith.constant 0 : i32
    return %c0_i32, %c0_i32_0 : i32, i32
  }
  func.func @transform_9(%arg0: i32) -> (i32, i32) {
    %c0_i32 = arith.constant 0 : i32
    %c0_i32_0 = arith.constant 0 : i32
    %c0_i32_1 = arith.constant 0 : i32
    return %c0_i32, %c0_i32_0 : i32, i32
  }
  func.func @transform_10(%arg0: i32) -> (i32, i32) {
    %c0_i32 = arith.constant 0 : i32
    %c0_i32_0 = arith.constant 0 : i32
    %c0_i32_1 = arith.constant 0 : i32
    return %c0_i32, %c0_i32_0 : i32, i32
  }
  func.func @transform_11(%arg0: i32) -> (i32, i32) {
    %c0_i32 = arith.constant 0 : i32
    %c0_i32_0 = arith.constant 0 : i32
    %c0_i32_1 = arith.constant 0 : i32
    return %c0_i32, %c0_i32_0 : i32, i32
  }
  func.func @transform_12(%arg0: i32) -> (i32, i32) {
    %c0_i32 = arith.constant 0 : i32
    %c0_i32_0 = arith.constant 0 : i32
    %c0_i32_1 = arith.constant 0 : i32
    return %c0_i32, %c0_i32_0 : i32, i32
  }
  func.func @transform_13(%arg0: i32) -> (i32, i32) {
    %c0_i32 = arith.constant 0 : i32
    %c0_i32_0 = arith.constant 0 : i32
    return %arg0, %c0_i32 : i32, i32
  }
  func.func @transform_14(%arg0: i32) -> (i32, i32) {
    %c0_i32 = arith.constant 0 : i32
    %c0_i32_0 = arith.constant 0 : i32
    return %arg0, %c0_i32 : i32, i32
  }
}

module attributes {stable_mosaic.version = 11 : i64} {
  func.func @_mlp_film_proj_kernel(%arg0: i32, %arg1: memref<16x128xf32, #tpu.memory_space<vmem>>, %arg2: memref<128x256xbf16, #tpu.memory_space<vmem>>, %arg3: memref<1x256xf32, #tpu.memory_space<vmem>>, %arg4: memref<128x128xbf16, #tpu.memory_space<vmem>>, %arg5: memref<1x128xf32, #tpu.memory_space<vmem>>, %arg6: memref<128x256xbf16, #tpu.memory_space<vmem>>, %arg7: memref<1x256xf32, #tpu.memory_space<vmem>>, %arg8: memref<128x128xbf16, #tpu.memory_space<vmem>>, %arg9: memref<1x128xf32, #tpu.memory_space<vmem>>, %arg10: memref<128x128xbf16, #tpu.memory_space<vmem>>, %arg11: memref<1x128xf32, #tpu.memory_space<vmem>>, %arg12: memref<128x768xbf16, #tpu.memory_space<vmem>>, %arg13: memref<1x768xf32, #tpu.memory_space<vmem>>, %arg14: memref<16x128xf32, #tpu.memory_space<vmem>>, %arg15: memref<16x640xf32, #tpu.memory_space<vmem>>) attributes {dimension_semantics = [#tpu.dimension_semantics<parallel>], iteration_bounds = array<i64: 1>, scalar_prefetch = 0 : i64, scratch_operands = 0 : i64, tpu.core_type = #tpu.core_type<tc>, window_params = [{transform_indices = @transform_0, window_bounds = array<i64: 16, 128>}, {pipeline_mode = #tpu.pipeline_mode<synchronous>, transform_indices = @transform_1, window_bounds = array<i64: 128, 256>}, {pipeline_mode = #tpu.pipeline_mode<synchronous>, transform_indices = @transform_2, window_bounds = array<i64: 1, 256>}, {pipeline_mode = #tpu.pipeline_mode<synchronous>, transform_indices = @transform_3, window_bounds = array<i64: 128, 128>}, {pipeline_mode = #tpu.pipeline_mode<synchronous>, transform_indices = @transform_4, window_bounds = array<i64: 1, 128>}, {pipeline_mode = #tpu.pipeline_mode<synchronous>, transform_indices = @transform_5, window_bounds = array<i64: 128, 256>}, {pipeline_mode = #tpu.pipeline_mode<synchronous>, transform_indices = @transform_6, window_bounds = array<i64: 1, 256>}, {pipeline_mode = #tpu.pipeline_mode<synchronous>, transform_indices = @transform_7, window_bounds = array<i64: 128, 128>}, {pipeline_mode = #tpu.pipeline_mode<synchronous>, transform_indices = @transform_8, window_bounds = array<i64: 1, 128>}, {pipeline_mode = #tpu.pipeline_mode<synchronous>, transform_indices = @transform_9, window_bounds = array<i64: 128, 128>}, {pipeline_mode = #tpu.pipeline_mode<synchronous>, transform_indices = @transform_10, window_bounds = array<i64: 1, 128>}, {pipeline_mode = #tpu.pipeline_mode<synchronous>, transform_indices = @transform_11, window_bounds = array<i64: 128, 768>}, {pipeline_mode = #tpu.pipeline_mode<synchronous>, transform_indices = @transform_12, window_bounds = array<i64: 1, 768>}, {transform_indices = @transform_13, window_bounds = array<i64: 16, 128>}, {transform_indices = @transform_14, window_bounds = array<i64: 16, 640>}]} {
    %c0 = arith.constant 0 : index
    %c0_0 = arith.constant 0 : index
    %0 = vector.load %arg1[%c0, %c0_0] : memref<16x128xf32, #tpu.memory_space<vmem>>, vector<16x128xf32>
    %c0_1 = arith.constant 0 : index
    %c0_2 = arith.constant 0 : index
    %1 = vector.load %arg2[%c0_1, %c0_2] : memref<128x256xbf16, #tpu.memory_space<vmem>>, vector<128x256xbf16>
    %c0_3 = arith.constant 0 : index
    %c0_4 = arith.constant 0 : index
    %2 = vector.load %arg3[%c0_3, %c0_4] : memref<1x256xf32, #tpu.memory_space<vmem>>, vector<1x256xf32>
    %c0_5 = arith.constant 0 : index
    %c0_6 = arith.constant 0 : index
    %3 = vector.load %arg4[%c0_5, %c0_6] : memref<128x128xbf16, #tpu.memory_space<vmem>>, vector<128x128xbf16>
    %c0_7 = arith.constant 0 : index
    %c0_8 = arith.constant 0 : index
    %4 = vector.load %arg5[%c0_7, %c0_8] : memref<1x128xf32, #tpu.memory_space<vmem>>, vector<1x128xf32>
    %5 = arith.truncf %0 : vector<16x128xf32> to vector<16x128xbf16>
    %cst = arith.constant dense<0.000000e+00> : vector<16x256xf32>
    %6 = tpu.matmul %5, %1, %cst {dimension_numbers = #tpu.dot_dimension_numbers<[1], [0], [0], [1], [0, 0, 1, 1], [], []>} : vector<16x128xbf16>, vector<128x256xbf16>, vector<16x256xf32> -> vector<16x256xf32>
    %7 = vector.broadcast %2 : vector<1x256xf32> to vector<16x256xf32>
    %8 = arith.addf %6, %7 : vector<16x256xf32>
    %9 = vector.extract_strided_slice %8 {offsets = [0, 0], sizes = [16, 128], strides = [1, 1]} : vector<16x256xf32> to vector<16x128xf32>
    %10 = arith.negf %9 : vector<16x128xf32>
    %11 = math.exp %10 : vector<16x128xf32>
    %cst_9 = arith.constant 1.000000e+00 : f32
    %12 = vector.broadcast %cst_9 : f32 to vector<16x128xf32>
    %13 = arith.addf %12, %11 : vector<16x128xf32>
    %14 = arith.divf %12, %13 : vector<16x128xf32>
    %15 = arith.mulf %9, %14 : vector<16x128xf32>
    %16 = arith.truncf %15 : vector<16x128xf32> to vector<16x128xbf16>
    %cst_10 = arith.constant dense<0.000000e+00> : vector<16x128xf32>
    %17 = tpu.matmul %16, %3, %cst_10 {dimension_numbers = #tpu.dot_dimension_numbers<[1], [0], [0], [1], [0, 0, 1, 1], [], []>} : vector<16x128xbf16>, vector<128x128xbf16>, vector<16x128xf32> -> vector<16x128xf32>
    %18 = vector.broadcast %4 : vector<1x128xf32> to vector<16x128xf32>
    %19 = arith.addf %17, %18 : vector<16x128xf32>
    %20 = vector.extract_strided_slice %8 {offsets = [0, 128], sizes = [16, 128], strides = [1, 1]} : vector<16x256xf32> to vector<16x128xf32>
    %21 = arith.addf %19, %20 : vector<16x128xf32>
    %c0_11 = arith.constant 0 : index
    %c0_12 = arith.constant 0 : index
    %22 = vector.load %arg6[%c0_11, %c0_12] : memref<128x256xbf16, #tpu.memory_space<vmem>>, vector<128x256xbf16>
    %c0_13 = arith.constant 0 : index
    %c0_14 = arith.constant 0 : index
    %23 = vector.load %arg7[%c0_13, %c0_14] : memref<1x256xf32, #tpu.memory_space<vmem>>, vector<1x256xf32>
    %c0_15 = arith.constant 0 : index
    %c0_16 = arith.constant 0 : index
    %24 = vector.load %arg8[%c0_15, %c0_16] : memref<128x128xbf16, #tpu.memory_space<vmem>>, vector<128x128xbf16>
    %c0_17 = arith.constant 0 : index
    %c0_18 = arith.constant 0 : index
    %25 = vector.load %arg9[%c0_17, %c0_18] : memref<1x128xf32, #tpu.memory_space<vmem>>, vector<1x128xf32>
    %26 = arith.truncf %21 : vector<16x128xf32> to vector<16x128xbf16>
    %cst_19 = arith.constant dense<0.000000e+00> : vector<16x256xf32>
    %27 = tpu.matmul %26, %22, %cst_19 {dimension_numbers = #tpu.dot_dimension_numbers<[1], [0], [0], [1], [0, 0, 1, 1], [], []>} : vector<16x128xbf16>, vector<128x256xbf16>, vector<16x256xf32> -> vector<16x256xf32>
    %28 = vector.broadcast %23 : vector<1x256xf32> to vector<16x256xf32>
    %29 = arith.addf %27, %28 : vector<16x256xf32>
    %30 = vector.extract_strided_slice %29 {offsets = [0, 0], sizes = [16, 128], strides = [1, 1]} : vector<16x256xf32> to vector<16x128xf32>
    %31 = arith.negf %30 : vector<16x128xf32>
    %32 = math.exp %31 : vector<16x128xf32>
    %cst_20 = arith.constant 1.000000e+00 : f32
    %33 = vector.broadcast %cst_20 : f32 to vector<16x128xf32>
    %34 = arith.addf %33, %32 : vector<16x128xf32>
    %35 = arith.divf %33, %34 : vector<16x128xf32>
    %36 = arith.mulf %30, %35 : vector<16x128xf32>
    %37 = arith.truncf %36 : vector<16x128xf32> to vector<16x128xbf16>
    %cst_21 = arith.constant dense<0.000000e+00> : vector<16x128xf32>
    %38 = tpu.matmul %37, %24, %cst_21 {dimension_numbers = #tpu.dot_dimension_numbers<[1], [0], [0], [1], [0, 0, 1, 1], [], []>} : vector<16x128xbf16>, vector<128x128xbf16>, vector<16x128xf32> -> vector<16x128xf32>
    %39 = vector.broadcast %25 : vector<1x128xf32> to vector<16x128xf32>
    %40 = arith.addf %38, %39 : vector<16x128xf32>
    %41 = vector.extract_strided_slice %29 {offsets = [0, 128], sizes = [16, 128], strides = [1, 1]} : vector<16x256xf32> to vector<16x128xf32>
    %42 = arith.addf %40, %41 : vector<16x128xf32>
    %c0_22 = arith.constant 0 : index
    %c0_23 = arith.constant 0 : index
    %43 = vector.load %arg10[%c0_22, %c0_23] : memref<128x128xbf16, #tpu.memory_space<vmem>>, vector<128x128xbf16>
    %44 = arith.truncf %42 : vector<16x128xf32> to vector<16x128xbf16>
    %cst_24 = arith.constant dense<0.000000e+00> : vector<16x128xf32>
    %45 = tpu.matmul %44, %43, %cst_24 {dimension_numbers = #tpu.dot_dimension_numbers<[1], [0], [0], [1], [0, 0, 1, 1], [], []>} : vector<16x128xbf16>, vector<128x128xbf16>, vector<16x128xf32> -> vector<16x128xf32>
    %c0_25 = arith.constant 0 : index
    %c0_26 = arith.constant 0 : index
    %46 = vector.load %arg11[%c0_25, %c0_26] : memref<1x128xf32, #tpu.memory_space<vmem>>, vector<1x128xf32>
    %47 = vector.broadcast %46 : vector<1x128xf32> to vector<16x128xf32>
    %48 = arith.addf %45, %47 : vector<16x128xf32>
    %c0_27 = arith.constant 0 : index
    %c0_28 = arith.constant 0 : index
    %49 = vector.load %arg12[%c0_27, %c0_28] : memref<128x768xbf16, #tpu.memory_space<vmem>>, vector<128x768xbf16>
    %50 = arith.truncf %48 : vector<16x128xf32> to vector<16x128xbf16>
    %cst_29 = arith.constant dense<0.000000e+00> : vector<16x768xf32>
    %51 = tpu.matmul %50, %49, %cst_29 {dimension_numbers = #tpu.dot_dimension_numbers<[1], [0], [0], [1], [0, 0, 1, 1], [], []>} : vector<16x128xbf16>, vector<128x768xbf16>, vector<16x768xf32> -> vector<16x768xf32>
    %c0_30 = arith.constant 0 : index
    %c0_31 = arith.constant 0 : index
    %52 = vector.load %arg13[%c0_30, %c0_31] : memref<1x768xf32, #tpu.memory_space<vmem>>, vector<1x768xf32>
    %53 = vector.broadcast %52 : vector<1x768xf32> to vector<16x768xf32>
    %54 = arith.addf %51, %53 : vector<16x768xf32>
    %55 = vector.extract_strided_slice %54 {offsets = [0, 0], sizes = [16, 128], strides = [1, 1]} : vector<16x768xf32> to vector<16x128xf32>
    %c0_32 = arith.constant 0 : index
    %c0_33 = arith.constant 0 : index
    %56 = vector.load %arg14[%c0_32, %c0_33] : memref<16x128xf32, #tpu.memory_space<vmem>>, vector<16x128xf32>
    tpu.vector_store %arg14[%c0_32, %c0_33], %55 {strides = array<i32>} : memref<16x128xf32, #tpu.memory_space<vmem>>, vector<16x128xf32>,
    %57 = vector.extract_strided_slice %54 {offsets = [0, 128], sizes = [16, 640], strides = [1, 1]} : vector<16x768xf32> to vector<16x640xf32>
    %c0_34 = arith.constant 0 : index
    %c0_35 = arith.constant 0 : index
    %58 = vector.load %arg15[%c0_34, %c0_35] : memref<16x640xf32, #tpu.memory_space<vmem>>, vector<16x640xf32>
    tpu.vector_store %arg15[%c0_34, %c0_35], %57 {strides = array<i32>} : memref<16x640xf32, #tpu.memory_space<vmem>>, vector<16x640xf32>,
    return
  }
  func.func @transform_0(%arg0: i32) -> (i32, i32) {
    %c0_i32 = arith.constant 0 : i32
    %c0_i32_0 = arith.constant 0 : i32
    return %arg0, %c0_i32 : i32, i32
  }
  func.func @transform_1(%arg0: i32) -> (i32, i32) {
    %c0_i32 = arith.constant 0 : i32
    %c0_i32_0 = arith.constant 0 : i32
    %c0_i32_1 = arith.constant 0 : i32
    return %c0_i32, %c0_i32_0 : i32, i32
  }
  func.func @transform_2(%arg0: i32) -> (i32, i32) {
    %c0_i32 = arith.constant 0 : i32
    %c0_i32_0 = arith.constant 0 : i32
    %c0_i32_1 = arith.constant 0 : i32
    return %c0_i32, %c0_i32_0 : i32, i32
  }
  func.func @transform_3(%arg0: i32) -> (i32, i32) {
    %c0_i32 = arith.constant 0 : i32
    %c0_i32_0 = arith.constant 0 : i32
    %c0_i32_1 = arith.constant 0 : i32
    return %c0_i32, %c0_i32_0 : i32, i32
  }
  func.func @transform_4(%arg0: i32) -> (i32, i32) {
    %c0_i32 = arith.constant 0 : i32
    %c0_i32_0 = arith.constant 0 : i32
    %c0_i32_1 = arith.constant 0 : i32
    return %c0_i32, %c0_i32_0 : i32, i32
  }
  func.func @transform_5(%arg0: i32) -> (i32, i32) {
    %c0_i32 = arith.constant 0 : i32
    %c0_i32_0 = arith.constant 0 : i32
    %c0_i32_1 = arith.constant 0 : i32
    return %c0_i32, %c0_i32_0 : i32, i32
  }
  func.func @transform_6(%arg0: i32) -> (i32, i32) {
    %c0_i32 = arith.constant 0 : i32
    %c0_i32_0 = arith.constant 0 : i32
    %c0_i32_1 = arith.constant 0 : i32
    return %c0_i32, %c0_i32_0 : i32, i32
  }
  func.func @transform_7(%arg0: i32) -> (i32, i32) {
    %c0_i32 = arith.constant 0 : i32
    %c0_i32_0 = arith.constant 0 : i32
    %c0_i32_1 = arith.constant 0 : i32
    return %c0_i32, %c0_i32_0 : i32, i32
  }
  func.func @transform_8(%arg0: i32) -> (i32, i32) {
    %c0_i32 = arith.constant 0 : i32
    %c0_i32_0 = arith.constant 0 : i32
    %c0_i32_1 = arith.constant 0 : i32
    return %c0_i32, %c0_i32_0 : i32, i32
  }
  func.func @transform_9(%arg0: i32) -> (i32, i32) {
    %c0_i32 = arith.constant 0 : i32
    %c0_i32_0 = arith.constant 0 : i32
    %c0_i32_1 = arith.constant 0 : i32
    return %c0_i32, %c0_i32_0 : i32, i32
  }
  func.func @transform_10(%arg0: i32) -> (i32, i32) {
    %c0_i32 = arith.constant 0 : i32
    %c0_i32_0 = arith.constant 0 : i32
    %c0_i32_1 = arith.constant 0 : i32
    return %c0_i32, %c0_i32_0 : i32, i32
  }
  func.func @transform_11(%arg0: i32) -> (i32, i32) {
    %c0_i32 = arith.constant 0 : i32
    %c0_i32_0 = arith.constant 0 : i32
    %c0_i32_1 = arith.constant 0 : i32
    return %c0_i32, %c0_i32_0 : i32, i32
  }
  func.func @transform_12(%arg0: i32) -> (i32, i32) {
    %c0_i32 = arith.constant 0 : i32
    %c0_i32_0 = arith.constant 0 : i32
    %c0_i32_1 = arith.constant 0 : i32
    return %c0_i32, %c0_i32_0 : i32, i32
  }
  func.func @transform_13(%arg0: i32) -> (i32, i32) {
    %c0_i32 = arith.constant 0 : i32
    %c0_i32_0 = arith.constant 0 : i32
    return %arg0, %c0_i32 : i32, i32
  }
  func.func @transform_14(%arg0: i32) -> (i32, i32) {
    %c0_i32 = arith.constant 0 : i32
    %c0_i32_0 = arith.constant 0 : i32
    return %arg0, %c0_i32 : i32, i32
  }
}

</mosaic_0001>

<bundles_post_ra>
// kernel: graph_nbeats_block.5
= control target key start
LH: loop header
LB: loop body
LE: loop exit
PB: predicated region body
PF: predicated region fallthrough
CT: control target
= control target key end

     0   :  { %s998_s12 = smov 0   ;;  %s1000_s13 = smov 0   ;;  %s1160_s0 = inlined_call_operand.vmem [shape: f32[8,8], index: 0, kind: input, shape index: {}]   ;;  %s1161_s1 = inlined_call_operand.vmem [shape: f32[2,8,128], index: 1, kind: input, shape index: {}]   ;;  %s1162_s2 = inlined_call_operand.vmem [shape: f32[2,8,640], index: 2, kind: input, shape index: {}]   ;;  %s1163_s3 = inlined_call_operand.vmem [shape: f32[2,8,128], index: 3, kind: output, shape index: {}]  }
   0x1   :  { %s1002_s14 = smov 0  }
   0x2 LB: > { %s25_s15 = sadd.s32 1, %s971_s13  ;;  %p868_p0 = scmp.ge.s32.totalorder %s975_s14, 1  ;;  %s975_s14 = sphi %s1002_s14, %s13_s14   ;;  %s971_s13 = sphi %s1000_s13, %s1165_s13   ;;  %s967_s12 = sphi %s998_s12, %s1164_s12  }
   0x3   : > { %p27_p1 = scmp.ge.s32.totalorder %s25_s15, 2  ;;  %p166_p2 = scmp.lt.s32.totalorder %s975_s14, 3 }
   0x5   : > { %s1167_s15 = smov (%p27_p1, %s25_s15), 0  ;;  %p167_p3 = pnand %p868_p0, %p166_p2 }
   0x6   : > { %p200_p4 = scmp.lt.s32.totalorder (!%p167_p3), %s967_s12, 1 }
   0x7   : > { %170 = sbr.rel (%p167_p3) target bundleno = 170 (0xaa), region = 32 }
   0xc   : > { %v232_v0 = vlaneseq  ;;  %v298_v1 = vld [vmem:[%s1160_s0] sm:$0xff]  ;;  %v977_v3 = vmov 1966171168   ;;  %s1169_s12 = smov (!%p200_p4, %s967_s12), 1  ;;  %vm748_vm0 = vcmask 1041409   ;;  %vm751_vm1 = vcmask 1042434  }
   0xd   : > { %v299_v2 = vpack.c.bf16 %v298_v1, %v298_v1  ;;  %v230_v4 = vunpack.c.l.s4 %v977_v3  ;;  %s891_s18 = smul.u32 40, %s1169_s12  ;;  %s869_s19 = sshll.u32 %s1169_s12, 3  ;;  %vm754_vm2 = vcmask 1043459   ;;  %vm757_vm3 = vcmask 1044484  }
   0xe   : > { %v233_v5 = vshrl.u32 %v232_v0, 7  ;;  %s203_s25 = scalar_lea.vmem %s1161_s1, %s869_s19  ;;  %vm760_vm4 = vcmask 1045509   ;;  %vm763_vm5 = vcmask 1046534   ;;  %vm766_vm6 = vcmask 1047559   ;;  %s219_s28 = scalar_lea.vmem %s1163_s3, %s869_s19 }
   0xf   : > { %v573_v6 = vpack.i.b16 %v299_v2, %v299_v2  ;;  %v231_v7 = vunpack.c.0.s8 %v230_v4  ;;  %v582_v8 = vshrl.u32 %v299_v2, 16  ;;  %s1029_s22 = scalar_lea.vmem %s1162_s2, %s891_s18  ;;  %v295_v29 = vld [vmem:[%s203_s25] sm:$0xff] }
  0x10   : > { %v594_v9 = vsub.s32 1, %v233_v5  ;;  %v1021_v10 = vsub.s32 0, %v233_v5  ;;  %v608_v16 = vsub.s32 2, %v233_v5  ;;  %v221_v17 = vld [vmem:[%s1029_s22] sm:$0xff]  ;;  %v222_v18 = vld [vmem:[%s1029_s22 + $0x8] sm:$0xff]  ;;  %v622_v22 = vsub.s32 3, %v233_v5 }
  0x11   : > { %v583_v11 = vpack.i.b16 %v582_v8, %v582_v8  ;;  %v234_v13 = vsub.s32 %v231_v7, %v233_v5  ;;  %v227_v20 = vpack.c.bf16 %v221_v17, %v221_v17  ;;  %v261_v21 = vpack.c.bf16 %v222_v18, %v222_v18 }
  0x12   : > { %v595_v12 = vrot.slane %v573_v6, %v594_v9  ;;  %v578_v14 = vrot.slane %v573_v6, %v1021_v10  ;;  %v609_v25 = vrot.slane %v573_v6, %v608_v16  ;;  %v623_v31 = vrot.slane %v573_v6, %v622_v22 }
  0x13   : > { %v588_v15 = vrot.slane %v583_v11, %v1021_v10  ;;  %v602_v19 = vrot.slane %v583_v11, %v594_v9  ;;  %v235_v23 = vrot.slane %v227_v20, %v234_v13  ;;  %v269_v24 = vrot.slane %v261_v21, %v234_v13 }
  0x14   : > { %597 = vbcast.lane.c.b16.xlu0 %v595_v12, 256  ;;  %580 = vbcast.lane.c.b16.xlu1 %v578_v14, 256  ;;  %v616_v26 = vrot.slane %v583_v11, %v608_v16  ;;  %v630_v37 = vrot.slane %v583_v11, %v622_v22  ;;  %v1043_v38 = vpack.c.bf16 %v295_v29, %v295_v29 }
  0x15   : > { %v236_v27 = vcombine.high %v235_v23, %v235_v23  ;;  %v270_v28 = vcombine.high %v269_v24, %v269_v24  ;;  %v243_v30 = vrot.slane %v235_v23, %v234_v13  ;;  %v277_v32 = vrot.slane %v269_v24, %v234_v13 }
  0x17   : > { %v1039_v33 = vrot.slane %v236_v27, %v234_v13  ;;  %v1041_v34 = vrot.slane %v270_v28, %v234_v13  ;;  %v872_v35 = vpack.i.b16 %v243_v30, %v243_v30  ;;  %v254_v36 = vunpack.i.h.s16 %v243_v30 }
  0x18   : > { %590 = vbcast.lane.c.b16.xlu0 %v588_v15, 256  ;;  %604 = vbcast.lane.c.b16.xlu1 %v602_v19, 256  ;;  %v876_v39 = vpack.i.b16 %v277_v32, %v277_v32  ;;  %v288_v40 = vunpack.i.h.s16 %v277_v32  ;;  %v251_v6 = vcombine.high %v243_v30, %v243_v30  ;;  %v285_v11 = vcombine.high %v277_v32, %v277_v32 }
  0x19   : > { %v873_v41 = vpack.i.b16 %v1039_v33, %v1039_v33  ;;  %v877_v42 = vpack.i.b16 %v1041_v34, %v1041_v34  ;;  %v311_v43 = vrot.slane %v872_v35, %v1021_v10  ;;  %v256_v44 = vunpack.i.h.s16 %v1039_v33 }
  0x1a   : > { %v415_v45 = vrot.slane %v876_v39, %v1021_v10  ;;  %v301_v46 = vpack.i.b16 %v254_v36, %v254_v36  ;;  %v405_v47 = vpack.i.b16 %v288_v40, %v288_v40  ;;  %v290_v48 = vunpack.i.h.s16 %v1041_v34 }
  0x1b   : > { %v319_v49 = vrot.slane %v873_v41, %v1021_v10  ;;  %v423_v50 = vrot.slane %v877_v42, %v1021_v10  ;;  %v341_v51 = vpack.i.b16 %v311_v43, %v311_v43  ;;  %v303_v52 = vpack.i.b16 %v256_v44, %v256_v44 }
  0x1c   : > { %611 = vbcast.lane.c.b16.xlu0 %v609_v25, 256  ;;  %618 = vbcast.lane.c.b16.xlu1 %v616_v26, 256  ;;  %v445_v53 = vpack.i.b16 %v415_v45, %v415_v45  ;;  %v315_v54 = vrot.slane %v301_v46, %v1021_v10  ;;  %v419_v55 = vrot.slane %v405_v47, %v1021_v10  ;;  %v258_v21 = vunpack.i.h.s16 %v251_v6 }
  0x1d   : > { %v355_v56 = vpack.i.b16 %v319_v49, %v319_v49  ;;  %v459_v57 = vpack.i.b16 %v423_v50, %v423_v50  ;;  %v346_v58 = vrot.slane %v341_v51, %v1021_v10  ;;  %v323_v62 = vrot.slane %v303_v52, %v1021_v10 }
  0x1e   : > { %v450_v59 = vrot.slane %v445_v53, %v1021_v10  ;;  %v348_v60 = vpack.i.b16 %v315_v54, %v315_v54  ;;  %v452_v61 = vpack.i.b16 %v419_v55, %v419_v55  ;;  %v407_v2 = vpack.i.b16 %v290_v48, %v290_v48 }
  0x1f   : > { %v360_v63 = vrot.slane %v355_v56, %v1021_v10  ;;  %v464_v0 = vrot.slane %v459_v57, %v1021_v10  ;;  %v396_v1 = vmul.bf16 %v346_v58, %v1043_v38  ;;  %v362_v5 = vpack.i.b16 %v323_v62, %v323_v62 }
  0x20   : > { %625 = vbcast.lane.c.b16.xlu0 %v623_v31, 256  ;;  %632 = vbcast.lane.c.b16.xlu1 %v630_v37, 256  ;;  %v353_v3 = vrot.slane %v348_v60, %v1021_v10  ;;  %v457_v4 = vrot.slane %v452_v61, %v1021_v10  ;;  %v427_v9 = vrot.slane %v407_v2, %v1021_v10  ;;  %v292_v25 = vunpack.i.h.s16 %v285_v11 }
  0x21   : > { %v398_v7 = vmul.bf16 %v360_v63, %v1043_v38  ;;  %v1066_v8 = vadd.bf16 %v450_v59, %v396_v1  ;;  %v367_v13 = vrot.slane %v362_v5, %v1021_v10  ;;  %v874_v14 = vpack.i.b16 %v251_v6, %v251_v6 }
  0x22   : > { %v397_v12 = vmul.bf16 %v353_v3, %v1043_v38  ;;  %v466_v16 = vpack.i.b16 %v427_v9, %v427_v9  ;;  %v878_v17 = vpack.i.b16 %v285_v11, %v285_v11  ;;  %v305_v28 = vpack.i.b16 %v258_v21, %v258_v21  ;;  %v224_v9 = vld [vmem:[%s1029_s22 + $0x18] sm:$0xff] }
  0x23   : > { %v1071_v15 = vadd.bf16 %v464_v0, %v398_v7  ;;  %v399_v19 = vmul.bf16 %v367_v13, %v1043_v38  ;;  %v327_v20 = vrot.slane %v874_v14, %v1021_v10  ;;  %v409_v30 = vpack.i.b16 %v292_v25, %v292_v25  ;;  %v223_v7 = vld [vmem:[%s1029_s22 + $0x10] sm:$0xff] }
  0x24   : > { %v1073_v18 = vadd.bf16 %v457_v4, %v397_v12  ;;  %v471_v22 = vrot.slane %v466_v16, %v1021_v10  ;;  %v431_v23 = vrot.slane %v878_v17, %v1021_v10  ;;  %v331_v32 = vrot.slane %v305_v28, %v1021_v10  ;;  %v225_v12 = vld [vmem:[%s1029_s22 + $0x20] sm:$0xff] }
  0x25   : > { %v369_v24 = vpack.i.b16 %v327_v20, %v327_v20  ;;  %v435_v36 = vrot.slane %v409_v30, %v1021_v10  ;;  %v252_v37 = vcombine.high %v1039_v33, %v1039_v33  ;;  %v286_v39 = vcombine.high %v1041_v34, %v1041_v34 }
  0x26   : > { %v1079_v26 = vadd.bf16 %v471_v22, %v399_v19  ;;  %v473_v27 = vpack.i.b16 %v431_v23, %v431_v23  ;;  %v376_v40 = vpack.i.b16 %v331_v32, %v331_v32  ;;  %v880_v3 = vmul.bf16 3216621497, %v1066_v8 }
  0x27   : > { %v374_v29 = vrot.slane %v369_v24, %v1021_v10  ;;  %v480_v42 = vpack.i.b16 %v435_v36, %v435_v36  ;;  %v875_v43 = vpack.i.b16 %v252_v37, %v252_v37  ;;  %v879_v44 = vpack.i.b16 %v286_v39, %v286_v39 }
  0x28   : > { %v478_v31 = vrot.slane %v473_v27, %v1021_v10  ;;  %v381_v45 = vrot.slane %v376_v40, %v1021_v10  ;;  %v260_v46 = vunpack.i.h.s16 %v252_v37  ;;  %v294_v47 = vunpack.i.h.s16 %v286_v39 }
  0x29   : > { %v400_v35 = vmul.bf16 %v374_v29, %v1043_v38  ;;  %v485_v48 = vrot.slane %v480_v42, %v1021_v10  ;;  %v335_v49 = vrot.slane %v875_v43, %v1021_v10  ;;  %v439_v50 = vrot.slane %v879_v44, %v1021_v10 }
  0x2a   : > { %v401_v33 = vmul.bf16 %v381_v45, %v1043_v38  ;;  %v307_v51 = vpack.i.b16 %v260_v46, %v260_v46  ;;  %v411_v34 = vpack.i.b16 %v294_v47, %v294_v47  ;;  %v882_v4 = vmul.bf16 3216621497, %v1071_v15 }
  0x2b   : > { %v1090_v41 = vadd.bf16 %v478_v31, %v400_v35  ;;  %v383_v52 = vpack.i.b16 %v335_v49, %v335_v49  ;;  %v487_v53 = vpack.i.b16 %v439_v50, %v439_v50  ;;  %917 = vpow.bf16 %v880_v3 }
  0x2c   : > { %v1097_v54 = vadd.bf16 %v485_v48, %v401_v33  ;;  %v339_v55 = vrot.slane %v307_v51, %v1021_v10  ;;  %v443_v56 = vrot.slane %v411_v34, %v1021_v10  ;;  %v881_v5 = vmul.bf16 3216621497, %v1073_v18 }
  0x2d   : > { %v388_v57 = vrot.slane %v383_v52, %v1021_v10  ;;  %v492_v58 = vrot.slane %v487_v53, %v1021_v10  ;;  %919 = vpow.bf16 %v882_v4  ;;  %v883_v6 = vmul.bf16 3216621497, %v1079_v26 }
  0x2e   : > { %v390_v59 = vpack.i.b16 %v339_v55, %v339_v55  ;;  %v494_v60 = vpack.i.b16 %v443_v56, %v443_v56  ;;  %921 = vpow.bf16 %v881_v5  ;;  %v706_v11 = vmul.f32 %v224_v9, %v223_v7 }
  0x2f   : > { %v402_v61 = vmul.bf16 %v388_v57, %v1043_v38  ;;  %923 = vpow.bf16 %v883_v6 }
  0x30   : > { %v395_v62 = vrot.slane %v390_v59, %v1021_v10  ;;  %v499_v63 = vrot.slane %v494_v60, %v1021_v10  ;;  %v884_v10 = vmul.bf16 3216621497, %v1090_v41  ;;  %v1121_v14 = vadd.f32 %v706_v11, %v225_v12 }
  0x31   : > { %v1106_v0 = vadd.bf16 %v492_v58, %v402_v61 }
  0x32   : > { %v403_v1 = vmul.bf16 %v395_v62, %v1043_v38  ;;  %v885_v38 = vmul.bf16 3216621497, %v1097_v54  ;;  %925 = vpow.bf16 %v884_v10  ;;  %v888_v19 = vmul.f32 -1.442695, %v1121_v14 }
  0x33   : > { %v886_v13 = vmul.bf16 3216621497, %v1106_v0 }
  0x34   : > { %v1109_v2 = vadd.bf16 %v499_v63, %v403_v1  ;;  %927 = vpow.bf16 %v885_v38 }
  0x35   : > { %929 = vpow.bf16 %v886_v13 }
  0x36   : > { %v887_v16 = vmul.bf16 3216621497, %v1109_v2 }
  0x38   : > { %931 = vpow.bf16 %v887_v16 }
  0x39   : > { %v918_v17 = vpop.eup %917  ;;  %933 = vpow2.f32 %v888_v19 }
  0x3a   : > { %v540_v21 = vadd.bf16 1065369472, %v918_v17 }
  0x3b   : > { %v920_v20 = vpop.eup %919 }
  0x3c   : > { %v922_v22 = vpop.eup %921  ;;  %v542_v23 = vadd.bf16 1065369472, %v920_v20  ;;  %935 = vrcp.bf16 %v540_v21 }
  0x3d   : > { %v924_v24 = vpop.eup %923  ;;  %v541_v25 = vadd.bf16 1065369472, %v922_v22 }
  0x3e   : > { %937 = vrcp.bf16 %v542_v23  ;;  %v543_v27 = vadd.bf16 1065369472, %v924_v24 }
  0x3f   : > { %939 = vrcp.bf16 %v541_v25 }
  0x40   : > { %v926_v28 = vpop.eup %925  ;;  %941 = vrcp.bf16 %v543_v27 }
  0x41   : > { %v544_v30 = vadd.bf16 1065369472, %v926_v28 }
  0x42   : > { %v928_v29 = vpop.eup %927 }
  0x43   : > { %v930_v31 = vpop.eup %929  ;;  %v545_v32 = vadd.bf16 1065369472, %v928_v29  ;;  %943 = vrcp.bf16 %v544_v30 }
  0x44   : > { %v546_v36 = vadd.bf16 1065369472, %v930_v31 }
  0x45   : > { %945 = vrcp.bf16 %v545_v32 }
  0x46   : > { %v932_v35 = vpop.eup %931  ;;  %947 = vrcp.bf16 %v546_v36 }
  0x47   : > { %v934_v37 = vpop.eup %933  ;;  %v547_v39 = vadd.bf16 1065369472, %v932_v35 }
  0x48   : > { %v711_v40 = vadd.f32 1.0, %v934_v37 }
  0x49   : > { %949 = vrcp.bf16 %v547_v39 }
  0x4a   : > { %v936_v42 = vpop.eup %935  ;;  %951 = vrcp.f32 %v711_v40 }
  0x4b   : > { %v549_v46 = vmul.bf16 1065369472, %v936_v42 }
  0x4c   : > { %v938_v43 = vpop.eup %937 }
  0x4d   : > { %v940_v44 = vpop.eup %939  ;;  %v553_v45 = vmul.bf16 1065369472, %v938_v43  ;;  %v564_v49 = vmul.bf16 %v549_v46, %v1066_v8 }
  0x4e   : > { %v942_v47 = vpop.eup %941  ;;  %v551_v50 = vmul.bf16 1065369472, %v940_v44 }
  0x4f   : > { %v566_v48 = vmul.bf16 %v553_v45, %v1071_v15  ;;  %v555_v33 = vmul.bf16 1065369472, %v942_v47 }
  0x50   : > { %v565_v57 = vmul.bf16 %v551_v50, %v1073_v18 }
  0x51   : > { %v944_v51 = vpop.eup %943  ;;  %v567_v58 = vmul.bf16 %v555_v33, %v1079_v26 }
  0x52   : > { %v557_v60 = vmul.bf16 1065369472, %v944_v51 }
  0x53   : > { %v946_v34 = vpop.eup %945 }
  0x54   : > { %v948_v59 = vpop.eup %947  ;;  %v559_v61 = vmul.bf16 1065369472, %v946_v34  ;;  %v568_v9 = vmul.bf16 %v557_v60, %v1090_v41 }
  0x55   : > { %v561_v18 = vmul.bf16 1065369472, %v948_v59 }
  0x56   : > { %v569_v10 = vmul.bf16 %v559_v61, %v1097_v54 }
  0x57   : > { %v950_v62 = vpop.eup %949  ;;  %v570_v41 = vmul.bf16 %v561_v18, %v1106_v0 }
  0x58   : > { %v952_v3 = vpop.eup %951  ;;  %v563_v11 = vmul.bf16 1065369472, %v950_v62 }
  0x59   : > { %v1132_v16 = vmul.f32 %v952_v3, %v1121_v14 }
  0x5a   : > { %v571_v54 = vmul.bf16 %v563_v11, %v1109_v2 }
  0x5b   : > { %v717_v37 = vrot.slane %v1132_v16, 2  ;;  %v716_v34 = vrot.slane %v1132_v16, 1 }
  0x86   : > { %v598_v52 = vpop.permute.xlu0 %597  ;;  %v581_v53 = vpop.permute.xlu1 %580 }
  0x87   : > { %v636_v55 = vmul.bf16 %v598_v52, %v566_v48  ;;  %v634_v56 = vmul.bf16 %v581_v53, %v564_v49  ;;  %v718_v53 = vrot.slane %v1132_v16, 3 }
  0x89   : > { %v644_v63 = vunpack.c.l.bf16 %v636_v55  ;;  %v642_v15 = vunpack.c.l.bf16 %v634_v56 }
  0x8a   : > { %v591_v1 = vpop.permute.xlu0 %590  ;;  %v605_v8 = vpop.permute.xlu1 %604 }
  0x8b   : > { %v662_v4 = vrot.slane %v644_v63, 4  ;;  %v650_v5 = vrot.slane %v642_v15, 4  ;;  %v635_v6 = vmul.bf16 %v591_v1, %v565_v57  ;;  %v637_v7 = vmul.bf16 %v605_v8, %v567_v58 }
  0x8d   : > { %v663_v26 = vadd.f32 %v662_v4, %v644_v63  ;;  %v651_v38 = vadd.f32 %v650_v5, %v642_v15  ;;  %v643_v12 = vunpack.c.l.bf16 %v635_v6  ;;  %v645_v13 = vunpack.c.l.bf16 %v637_v7 }
  0x8e   : > { %v612_v17 = vpop.permute.xlu0 %611  ;;  %v619_v19 = vpop.permute.xlu1 %618  ;;  %v719_v5 = vrot.slane %v1132_v16, 4  ;;  %v720_v6 = vrot.slane %v1132_v16, 5 }
  0x8f   : > { %v664_v20 = vrot.slane %v663_v26, 2  ;;  %v652_v21 = vrot.slane %v651_v38, 2  ;;  %v656_v22 = vrot.slane %v643_v12, 4  ;;  %v668_v23 = vrot.slane %v645_v13, 4 }
  0x90   : > { %v638_v24 = vmul.bf16 %v612_v17, %v568_v9  ;;  %v639_v25 = vmul.bf16 %v619_v19, %v569_v10 }
  0x91   : > { %v665_v27 = vadd.f32 %v664_v20, %v663_v26  ;;  %v653_v28 = vadd.f32 %v652_v21, %v651_v38  ;;  %v657_v29 = vadd.f32 %v656_v22, %v643_v12  ;;  %v669_v30 = vadd.f32 %v668_v23, %v645_v13 }
  0x92   : > { %v646_v31 = vunpack.c.l.bf16 %v638_v24  ;;  %v647_v32 = vunpack.c.l.bf16 %v639_v25  ;;  %v626_v14 = vpop.permute.xlu0 %625  ;;  %v633_v35 = vpop.permute.xlu1 %632  ;;  %v721_v22 = vrot.slane %v1132_v16, 6 }
  0x93   : > { %v666_v36 = vrot.slane %v665_v27, 1  ;;  %v658_v39 = vrot.slane %v657_v29, 2  ;;  %v670_v40 = vrot.slane %v669_v30, 2  ;;  %v640_v44 = vmul.bf16 %v626_v14, %v570_v41 }
  0x94   : > { %v674_v42 = vrot.slane %v646_v31, 4  ;;  %v680_v43 = vrot.slane %v647_v32, 4  ;;  %v641_v0 = vmul.bf16 %v633_v35, %v571_v54  ;;  %v654_v2 = vrot.slane %v653_v28, 1 }
  0x95   : > { %v667_v45 = vadd.f32 %v666_v36, %v665_v27  ;;  %v659_v46 = vadd.f32 %v658_v39, %v657_v29  ;;  %v671_v47 = vadd.f32 %v670_v40, %v669_v30  ;;  %v648_v50 = vunpack.c.l.bf16 %v640_v44 }
  0x96   : > { %v675_v48 = vadd.f32 %v674_v42, %v646_v31  ;;  %v681_v49 = vadd.f32 %v680_v43, %v647_v32  ;;  %v649_v33 = vunpack.c.l.bf16 %v641_v0  ;;  %v655_v60 = vadd.f32 %v654_v2, %v653_v28 }
  0x97   : > { %v660_v51 = vrot.slane %v659_v46, 1  ;;  %v672_v52 = vrot.slane %v671_v47, 1  ;;  %v686_v57 = vrot.slane %v648_v50, 4  ;;  %v733_v59 = vadd.f32 %v717_v37, %v667_v45 }
  0x98   : > { %v676_v55 = vrot.slane %v675_v48, 2  ;;  %v682_v56 = vrot.slane %v681_v49, 2  ;;  %v692_v58 = vrot.slane %v649_v33, 4  ;;  %v731_v26 = vadd.f32 %v1132_v16, %v655_v60 }
  0x99   : > { %v661_v61 = vadd.f32 %v660_v51, %v659_v46  ;;  %v673_v62 = vadd.f32 %v672_v52, %v671_v47  ;;  %v687_v1 = vadd.f32 %v686_v57, %v648_v50  ;;  %v750_v11 = vrot.slane %v733_v59, 6 }
  0x9a   : > { %v677_v63 = vadd.f32 %v676_v55, %v675_v48  ;;  %v683_v15 = vadd.f32 %v682_v56, %v681_v49  ;;  %v693_v8 = vadd.f32 %v692_v58, %v649_v33  ;;  %v722_v28 = vrot.slane %v1132_v16, 7 }
  0x9b   : > { %v732_v3 = vadd.f32 %v716_v34, %v661_v61  ;;  %v734_v4 = vadd.f32 %v718_v53, %v673_v62  ;;  %v688_v10 = vrot.slane %v687_v1, 2 }
  0x9c   : > { %v678_v7 = vrot.slane %v677_v63, 1  ;;  %v684_v9 = vrot.slane %v683_v15, 1  ;;  %v694_v18 = vrot.slane %v693_v8, 2 }
  0x9d   : > { %v747_v38 = vrot.slane %v732_v3, 7  ;;  %v689_v17 = vadd.f32 %v688_v10, %v687_v1  ;;  %v753_v21 = vrot.slane %v734_v4, 5 }
  0x9e   : > { %v679_v12 = vadd.f32 %v678_v7, %v677_v63  ;;  %v685_v13 = vadd.f32 %v684_v9, %v683_v15  ;;  %v695_v19 = vadd.f32 %v694_v18, %v693_v8 }
  0x9f   : > { %v749_v20 = vsel %vm748_vm0, %v747_v38, %v731_v26  ;;  %v690_v41 = vrot.slane %v689_v17, 1 }
  0xa0   : > { %v752_v23 = vsel %vm751_vm1, %v750_v11, %v749_v20  ;;  %v735_v24 = vadd.f32 %v719_v5, %v679_v12  ;;  %v736_v25 = vadd.f32 %v720_v6, %v685_v13  ;;  %v696_v27 = vrot.slane %v695_v19, 1 }
  0xa1   : > { %v755_v54 = vsel %vm754_vm2, %v753_v21, %v752_v23  ;;  %v691_v31 = vadd.f32 %v690_v41, %v689_v17 }
  0xa2   : > { %v756_v29 = vrot.slane %v735_v24, 4  ;;  %v759_v30 = vrot.slane %v736_v25, 3  ;;  %v697_v32 = vadd.f32 %v696_v27, %v695_v19 }
  0xa3   : > { %v737_v35 = vadd.f32 %v721_v22, %v691_v31 }
  0xa4   : > { %v758_v14 = vsel %vm757_vm3, %v756_v29, %v755_v54  ;;  %v738_v37 = vadd.f32 %v722_v28, %v697_v32 }
  0xa5   : > { %v761_v36 = vsel %vm760_vm4, %v759_v30, %v758_v14  ;;  %v762_v39 = vrot.slane %v737_v35, 2 }
  0xa6   : > { %v765_v40 = vrot.slane %v738_v37, 1 }
  0xa7   : > { %v764_v42 = vsel %vm763_vm5, %v762_v39, %v761_v36 }
  0xa8   : > { %v767_v16 = vsel %vm766_vm6, %v765_v40, %v764_v42 }
  0xa9   : > { %769 = vst [vmem:[%s219_s28] sm:$0xff] %v767_v16 }
  0xaa PF: > { %s13_s14 = sadd.s32 1, %s975_s14   ;;  %s1164_s12 = smov %s971_s13 }
  0xab   : > { %p10_p5 = scmp.ge.s32.totalorder %s13_s14, 4   ;;  %s1165_s13 = smov %s1167_s15 }
  0xad   :  { %12 = sbr.rel (!%p10_p5) target bundleno = 2 (0x2), region = 66 }

// kernel: graph_nbeats_block.7
= control target key start
LH: loop header
LB: loop body
LE: loop exit
PB: predicated region body
PF: predicated region fallthrough
CT: control target
= control target key end

     0   :  { %s1241_s18 = smov 0   ;;  %s1243_s19 = smov 0   ;;  %s1438_s0 = inlined_call_operand.vmem [shape: f32[8,8], index: 0, kind: input, shape index: {}]   ;;  %s1439_s1 = inlined_call_operand.vmem [shape: f32[2,8,128], index: 1, kind: input, shape index: {}]   ;;  %s1440_s2 = inlined_call_operand.vmem [shape: f32[2,8,640], index: 2, kind: input, shape index: {}]   ;;  %s1441_s3 = inlined_call_operand.vmem [shape: bf16[128,128], index: 3, kind: input, shape index: {}]   ;;  %s1442_s4 = inlined_call_operand.vmem [shape: f32[1,128], index: 4, kind: input, shape index: {}]   ;;  %s1443_s5 = inlined_call_operand.vmem [shape: f32[2,8,128], index: 5, kind: output, shape index: {}]  }
   0x1   :  { %s1245_s20 = smov 0  }
   0x2 LB: > { %s27_s21 = sadd.s32 1, %s1202_s19  ;;  %p1051_p0 = scmp.ge.s32.totalorder %s1206_s20, 1  ;;  %s1206_s20 = sphi %s1245_s20, %s15_s20   ;;  %s1202_s19 = sphi %s1243_s19, %s1445_s19   ;;  %s1198_s18 = sphi %s1241_s18, %s1444_s18  }
   0x3   : > { %p29_p1 = scmp.ge.s32.totalorder %s27_s21, 2  ;;  %p216_p2 = scmp.lt.s32.totalorder %s1206_s20, 3 }
   0x5   : > { %s1447_s21 = smov (%p29_p1, %s27_s21), 0  ;;  %p217_p3 = pnand %p1051_p0, %p216_p2 }
   0x6   : > { %p254_p4 = scmp.lt.s32.totalorder (!%p217_p3), %s1198_s18, 1 }
   0x7   : > { %220 = sbr.rel (%p217_p3) target bundleno = 375 (0x177), region = 40 }
   0xc   : > { %v287_v0 = vlaneseq  ;;  %v353_v1 = vld [vmem:[%s1438_s0] sm:$0xff]  ;;  %v1208_v3 = vmov 1966171168   ;;  %s1449_s18 = smov (!%p254_p4, %s1198_s18), 1  ;;  %v1140_v9 = vld [vmem:[%s1441_s3 + $0x38] sm:$0xff]   ;;  %v1209_v12 = vmov 0.0  }
   0xd   : > { %v354_v2 = vpack.c.bf16 %v353_v1, %v353_v1  ;;  %v285_v4 = vunpack.c.l.s4 %v1208_v3  ;;  %s1112_s26 = smul.u32 40, %s1449_s18  ;;  %1092 = vmatprep.subr.bf16.mxu0 %v1209_v12  ;;  %s1052_s30 = sshll.u32 %s1449_s18, 3  ;;  %v1141_v25 = vld [vmem:[%s1441_s3 + $0x30] sm:$0xff]   ;;  %v1142_v30 = vld [vmem:[%s1441_s3 + $0x28] sm:$0xff]   ;;  %v1143_v45 = vld [vmem:[%s1441_s3 + $0x20] sm:$0xff]   ;;  %vm1210_vm0 = vmmov 0  }
   0xe   : > { %v288_v5 = vshrl.u32 %v287_v0, 7  ;;  %1093 = vmatpush3.bf16.msra.mxu0 %v1140_v9  ;;  %s257_s10 = scalar_lea.vmem %s1439_s1, %s1052_s30  ;;  %v1144_v62 = vld [vmem:[%s1441_s3 + $0x18] sm:$0xff]   ;;  %1108 = vmatprep.mubr.msk.bf16.mxu0 %vm1210_vm0, %v1209_v12  ;;  %vm842_vm1 = vcmask 1041409   ;;  %vm845_vm2 = vcmask 1042434   ;;  %vm848_vm3 = vcmask 1043459   ;;  %s273_s7 = scalar_lea.vmem %s1443_s5, %s1052_s30 }
   0xf   : > { %v628_v6 = vpack.i.b16 %v354_v2, %v354_v2  ;;  %v286_v7 = vunpack.c.0.s8 %v285_v4  ;;  %v637_v8 = vshrl.u32 %v354_v2, 16  ;;  %s1275_s29 = scalar_lea.vmem %s1440_s2, %s1112_s26  ;;  %1094 = vmatprep.subr.bf16.mxu0 %v1209_v12  ;;  %v350_v38 = vld [vmem:[%s257_s10] sm:$0xff]  ;;  %vm851_vm4 = vcmask 1044484  }
  0x10   : > { %v649_v10 = vsub.s32 1, %v288_v5  ;;  %v1267_v11 = vsub.s32 0, %v288_v5  ;;  %v663_v18 = vsub.s32 2, %v288_v5  ;;  %v276_v19 = vld [vmem:[%s1275_s29] sm:$0xff]  ;;  %v277_v20 = vld [vmem:[%s1275_s29 + $0x8] sm:$0xff]  ;;  %v677_v22 = vsub.s32 3, %v288_v5 }
  0x11   : > { %v638_v13 = vpack.i.b16 %v637_v8, %v637_v8  ;;  %v289_v15 = vsub.s32 %v286_v7, %v288_v5  ;;  %v282_v23 = vpack.c.bf16 %v276_v19, %v276_v19  ;;  %v316_v24 = vpack.c.bf16 %v277_v20, %v277_v20 }
  0x12   : > { %v650_v14 = vrot.slane %v628_v6, %v649_v10  ;;  %v633_v16 = vrot.slane %v628_v6, %v1267_v11  ;;  %1095 = vmatpush3.bf16.msra.mxu0 %v1141_v25  ;;  %v664_v28 = vrot.slane %v628_v6, %v663_v18  ;;  %v678_v34 = vrot.slane %v628_v6, %v677_v22 }
  0x13   : > { %v643_v17 = vrot.slane %v638_v13, %v1267_v11  ;;  %v657_v21 = vrot.slane %v638_v13, %v649_v10  ;;  %v290_v26 = vrot.slane %v282_v23, %v289_v15  ;;  %v324_v27 = vrot.slane %v316_v24, %v289_v15  ;;  %1096 = vmatprep.subr.bf16.mxu0 %v1209_v12 }
  0x14   : > { %652 = vbcast.lane.c.b16.xlu0 %v650_v14, 256  ;;  %635 = vbcast.lane.c.b16.xlu1 %v633_v16, 256  ;;  %v671_v29 = vrot.slane %v638_v13, %v663_v18  ;;  %v685_v41 = vrot.slane %v638_v13, %v677_v22  ;;  %v1308_v50 = vpack.c.bf16 %v350_v38, %v350_v38  ;;  %vm854_vm5 = vcmask 1045509  }
  0x15   : > { %v291_v31 = vcombine.high %v290_v26, %v290_v26  ;;  %v325_v32 = vcombine.high %v324_v27, %v324_v27  ;;  %v298_v33 = vrot.slane %v290_v26, %v289_v15  ;;  %v332_v35 = vrot.slane %v324_v27, %v289_v15 }
  0x16   : > { %1097 = vmatpush3.bf16.msra.mxu0 %v1142_v30  ;;  %vm857_vm6 = vcmask 1046534   ;;  %vm860_vm7 = vcmask 1047559  }
  0x17   : > { %v1294_v36 = vrot.slane %v291_v31, %v289_v15  ;;  %v1296_v37 = vrot.slane %v325_v32, %v289_v15  ;;  %v1055_v39 = vpack.i.b16 %v298_v33, %v298_v33  ;;  %v309_v40 = vunpack.i.h.s16 %v298_v33  ;;  %1098 = vmatprep.subr.bf16.mxu0 %v1209_v12 }
  0x18   : > { %645 = vbcast.lane.c.b16.xlu0 %v643_v17, 256  ;;  %659 = vbcast.lane.c.b16.xlu1 %v657_v21, 256  ;;  %v1059_v42 = vpack.i.b16 %v332_v35, %v332_v35  ;;  %v343_v43 = vunpack.i.h.s16 %v332_v35  ;;  %v306_v44 = vcombine.high %v298_v33, %v298_v33  ;;  %v340_v16 = vcombine.high %v332_v35, %v332_v35  ;;  %v1145_v17 = vld [vmem:[%s1441_s3 + $0x10] sm:$0xff]   ;;  %v1146_v33 = vld [vmem:[%s1441_s3 + $0x8] sm:$0xff]  }
  0x19   : > { %v1056_v46 = vpack.i.b16 %v1294_v36, %v1294_v36  ;;  %v1060_v47 = vpack.i.b16 %v1296_v37, %v1296_v37  ;;  %v366_v48 = vrot.slane %v1055_v39, %v1267_v11  ;;  %v311_v49 = vunpack.i.h.s16 %v1294_v36 }
  0x1a   : > { %v470_v51 = vrot.slane %v1059_v42, %v1267_v11  ;;  %v356_v52 = vpack.i.b16 %v309_v40, %v309_v40  ;;  %v460_v53 = vpack.i.b16 %v343_v43, %v343_v43  ;;  %v345_v57 = vunpack.i.h.s16 %v1296_v37  ;;  %1099 = vmatpush3.bf16.msra.mxu0 %v1143_v45  ;;  %v1147_v43 = vld [vmem:[%s1441_s3] sm:$0xff]  }
  0x1b   : > { %v374_v54 = vrot.slane %v1056_v46, %v1267_v11  ;;  %v478_v55 = vrot.slane %v1060_v47, %v1267_v11  ;;  %v396_v56 = vpack.i.b16 %v366_v48, %v366_v48  ;;  %v358_v61 = vpack.i.b16 %v311_v49, %v311_v49  ;;  %1100 = vmatprep.subr.bf16.mxu0 %v1209_v12 }
  0x1c   : > { %666 = vbcast.lane.c.b16.xlu0 %v664_v28, 256  ;;  %673 = vbcast.lane.c.b16.xlu1 %v671_v29, 256  ;;  %v500_v58 = vpack.i.b16 %v470_v51, %v470_v51  ;;  %v370_v59 = vrot.slane %v356_v52, %v1267_v11  ;;  %v474_v60 = vrot.slane %v460_v53, %v1267_v11  ;;  %v313_v2 = vunpack.i.h.s16 %v306_v44 }
  0x1d   : > { %v410_v63 = vpack.i.b16 %v374_v54, %v374_v54  ;;  %v514_v0 = vpack.i.b16 %v478_v55, %v478_v55  ;;  %v401_v1 = vrot.slane %v396_v56, %v1267_v11  ;;  %v378_v6 = vrot.slane %v358_v61, %v1267_v11 }
  0x1e   : > { %v505_v3 = vrot.slane %v500_v58, %v1267_v11  ;;  %v403_v4 = vpack.i.b16 %v370_v59, %v370_v59  ;;  %v507_v5 = vpack.i.b16 %v474_v60, %v474_v60  ;;  %v462_v10 = vpack.i.b16 %v345_v57, %v345_v57  ;;  %1101 = vmatpush3.bf16.msra.mxu0 %v1144_v62 }
  0x1f   : > { %v415_v7 = vrot.slane %v410_v63, %v1267_v11  ;;  %v519_v8 = vrot.slane %v514_v0, %v1267_v11  ;;  %v451_v9 = vmul.bf16 %v401_v1, %v1308_v50  ;;  %v417_v15 = vpack.i.b16 %v378_v6, %v378_v6  ;;  %1102 = vmatprep.subr.bf16.mxu0 %v1209_v12 }
  0x20   : > { %680 = vbcast.lane.c.b16.xlu0 %v678_v34, 256  ;;  %687 = vbcast.lane.c.b16.xlu1 %v685_v41, 256  ;;  %v408_v13 = vrot.slane %v403_v4, %v1267_v11  ;;  %v512_v14 = vrot.slane %v507_v5, %v1267_v11  ;;  %v482_v20 = vrot.slane %v462_v10, %v1267_v11  ;;  %v347_v28 = vunpack.i.h.s16 %v340_v16 }
  0x21   : > { %v453_v18 = vmul.bf16 %v415_v7, %v1308_v50  ;;  %v1333_v19 = vadd.bf16 %v505_v3, %v451_v9  ;;  %v1057_v21 = vpack.i.b16 %v306_v44, %v306_v44  ;;  %v422_v23 = vrot.slane %v417_v15, %v1267_v11 }
  0x22   : > { %v452_v22 = vmul.bf16 %v408_v13, %v1308_v50  ;;  %v1061_v24 = vpack.i.b16 %v340_v16, %v340_v16  ;;  %v521_v26 = vpack.i.b16 %v482_v20, %v482_v20  ;;  %1103 = vmatpush3.bf16.msra.mxu0 %v1145_v17  ;;  %v360_v32 = vpack.i.b16 %v313_v2, %v313_v2  ;;  %v279_v20 = vld [vmem:[%s1275_s29 + $0x18] sm:$0xff] }
  0x23   : > { %v1338_v25 = vadd.bf16 %v519_v8, %v453_v18  ;;  %v382_v27 = vrot.slane %v1057_v21, %v1267_v11  ;;  %v454_v30 = vmul.bf16 %v422_v23, %v1308_v50  ;;  %1104 = vmatprep.subr.bf16.mxu0 %v1209_v12  ;;  %v464_v42 = vpack.i.b16 %v347_v28, %v347_v28  ;;  %v278_v18 = vld [vmem:[%s1275_s29 + $0x10] sm:$0xff] }
  0x24   : > { %v1341_v29 = vadd.bf16 %v512_v14, %v452_v22  ;;  %v486_v31 = vrot.slane %v1061_v24, %v1267_v11  ;;  %v526_v34 = vrot.slane %v521_v26, %v1267_v11  ;;  %v386_v39 = vrot.slane %v360_v32, %v1267_v11  ;;  %v280_v22 = vld [vmem:[%s1275_s29 + $0x20] sm:$0xff] }
  0x25   : > { %v424_v35 = vpack.i.b16 %v382_v27, %v382_v27  ;;  %v307_v46 = vcombine.high %v1294_v36, %v1294_v36  ;;  %v490_v48 = vrot.slane %v464_v42, %v1267_v11  ;;  %v341_v51 = vcombine.high %v1296_v37, %v1296_v37 }
  0x26   : > { %v528_v38 = vpack.i.b16 %v486_v31, %v486_v31  ;;  %v1351_v40 = vadd.bf16 %v526_v34, %v454_v30  ;;  %1105 = vmatpush3.bf16.msra.mxu0 %v1146_v33  ;;  %v431_v45 = vpack.i.b16 %v386_v39, %v386_v39  ;;  %v1063_v14 = vmul.bf16 3216621497, %v1333_v19 }
  0x27   : > { %v429_v41 = vrot.slane %v424_v35, %v1267_v11  ;;  %1106 = vmatprep.subr.bf16.mxu0 %v1209_v12  ;;  %v1058_v52 = vpack.i.b16 %v307_v46, %v307_v46  ;;  %v315_v53 = vunpack.i.h.s16 %v307_v46  ;;  %v535_v55 = vpack.i.b16 %v490_v48, %v490_v48 }
  0x28   : > { %v533_v44 = vrot.slane %v528_v38, %v1267_v11  ;;  %v436_v49 = vrot.slane %v431_v45, %v1267_v11  ;;  %v1062_v57 = vpack.i.b16 %v341_v51, %v341_v51  ;;  %v349_v58 = vunpack.i.h.s16 %v341_v51 }
  0x29   : > { %v455_v47 = vmul.bf16 %v429_v41, %v1308_v50  ;;  %v390_v36 = vrot.slane %v1058_v52, %v1267_v11  ;;  %v540_v59 = vrot.slane %v535_v55, %v1267_v11  ;;  %v362_v60 = vpack.i.b16 %v315_v53, %v315_v53 }
  0x2a   : > { %1107 = vmatpush3.bf16.msra.mxu0 %v1147_v43  ;;  %v456_v56 = vmul.bf16 %v436_v49, %v1308_v50  ;;  %v494_v37 = vrot.slane %v1062_v57, %v1267_v11  ;;  %v466_v62 = vpack.i.b16 %v349_v58, %v349_v58  ;;  %v1065_v15 = vmul.bf16 3216621497, %v1338_v25 }
  0x2b   : > { %v1366_v54 = vadd.bf16 %v533_v44, %v455_v47  ;;  %v438_v61 = vpack.i.b16 %v390_v36, %v390_v36  ;;  %v394_v0 = vrot.slane %v362_v60, %v1267_v11  ;;  %1148 = vpow.bf16 %v1063_v14 }
  0x2c   : > { %v1373_v63 = vadd.bf16 %v540_v59, %v456_v56  ;;  %v542_v2 = vpack.i.b16 %v494_v37, %v494_v37  ;;  %v498_v3 = vrot.slane %v466_v62, %v1267_v11  ;;  %v1064_v16 = vmul.bf16 3216621497, %v1341_v29 }
  0x2d   : > { %v443_v1 = vrot.slane %v438_v61, %v1267_v11  ;;  %v445_v4 = vpack.i.b16 %v394_v0, %v394_v0  ;;  %1150 = vpow.bf16 %v1065_v15  ;;  %v1066_v17 = vmul.bf16 3216621497, %v1351_v40 }
  0x2e   : > { %v547_v5 = vrot.slane %v542_v2, %v1267_v11  ;;  %v549_v6 = vpack.i.b16 %v498_v3, %v498_v3  ;;  %1152 = vpow.bf16 %v1064_v16  ;;  %v761_v21 = vmul.f32 %v279_v20, %v278_v18 }
  0x2f   : > { %v457_v12 = vmul.bf16 %v443_v1, %v1308_v50  ;;  %v450_v7 = vrot.slane %v445_v4, %v1267_v11  ;;  %1154 = vpow.bf16 %v1066_v17 }
  0x30   : > { %v554_v9 = vrot.slane %v549_v6, %v1267_v11  ;;  %v1067_v11 = vmul.bf16 3216621497, %v1366_v54  ;;  %v1397_v24 = vadd.f32 %v761_v21, %v280_v22 }
  0x31   : > { %v1381_v8 = vadd.bf16 %v547_v5, %v457_v12  ;;  %v458_v10 = vmul.bf16 %v450_v7, %v1308_v50  ;;  %v1068_v50 = vmul.bf16 3216621497, %v1373_v63 }
  0x32   : > { %1156 = vpow.bf16 %v1067_v11  ;;  %v1071_v28 = vmul.f32 -1.442695, %v1397_v24 }
  0x33   : > { %v1385_v13 = vadd.bf16 %v554_v9, %v458_v10  ;;  %v1069_v23 = vmul.bf16 3216621497, %v1381_v8  ;;  %1158 = vpow.bf16 %v1068_v50 }
  0x35   : > { %v1070_v26 = vmul.bf16 3216621497, %v1385_v13  ;;  %1160 = vpow.bf16 %v1069_v23 }
  0x37   : > { %1162 = vpow.bf16 %v1070_v26 }
  0x38   : > { %1164 = vpow2.f32 %v1071_v28 }
  0x39   : > { %v1149_v27 = vpop.eup %1148 }
  0x3a   : > { %v595_v31 = vadd.bf16 1065369472, %v1149_v27 }
  0x3b   : > { %v1151_v30 = vpop.eup %1150 }
  0x3c   : > { %v1153_v32 = vpop.eup %1152  ;;  %v597_v33 = vadd.bf16 1065369472, %v1151_v30  ;;  %1166 = vrcp.bf16 %v595_v31 }
  0x3d   : > { %v1155_v34 = vpop.eup %1154  ;;  %v596_v35 = vadd.bf16 1065369472, %v1153_v32 }
  0x3e   : > { %1168 = vrcp.bf16 %v597_v33  ;;  %v598_v38 = vadd.bf16 1065369472, %v1155_v34 }
  0x3f   : > { %1170 = vrcp.bf16 %v596_v35 }
  0x40   : > { %v1157_v39 = vpop.eup %1156  ;;  %1172 = vrcp.bf16 %v598_v38 }
  0x41   : > { %v1159_v41 = vpop.eup %1158  ;;  %v599_v42 = vadd.bf16 1065369472, %v1157_v39 }
  0x42   : > { %v600_v44 = vadd.bf16 1065369472, %v1159_v41 }
  0x43   : > { %v1161_v43 = vpop.eup %1160  ;;  %1174 = vrcp.bf16 %v599_v42 }
  0x44   : > { %v601_v46 = vadd.bf16 1065369472, %v1161_v43  ;;  %1176 = vrcp.bf16 %v600_v44 }
  0x45   : > { %v1163_v45 = vpop.eup %1162 }
  0x46   : > { %v1165_v47 = vpop.eup %1164  ;;  %v602_v48 = vadd.bf16 1065369472, %v1163_v45  ;;  %1178 = vrcp.bf16 %v601_v46 }
  0x47   : > { %v766_v49 = vadd.f32 1.0, %v1165_v47 }
  0x48   : > { %1180 = vrcp.bf16 %v602_v48 }
  0x49   : > { %1182 = vrcp.f32 %v766_v49 }
  0x4a   : > { %v1167_v51 = vpop.eup %1166 }
  0x4b   : > { %v604_v56 = vmul.bf16 1065369472, %v1167_v51 }
  0x4c   : > { %v1169_v52 = vpop.eup %1168 }
  0x4d   : > { %v1171_v53 = vpop.eup %1170  ;;  %v608_v55 = vmul.bf16 1065369472, %v1169_v52  ;;  %v619_v58 = vmul.bf16 %v604_v56, %v1333_v19 }
  0x4e   : > { %v1173_v36 = vpop.eup %1172  ;;  %v606_v59 = vmul.bf16 1065369472, %v1171_v53 }
  0x4f   : > { %v621_v57 = vmul.bf16 %v608_v55, %v1338_v25  ;;  %v610_v60 = vmul.bf16 1065369472, %v1173_v36 }
  0x50   : > { %v620_v3 = vmul.bf16 %v606_v59, %v1341_v29 }
  0x51   : > { %v1175_v61 = vpop.eup %1174  ;;  %v622_v4 = vmul.bf16 %v610_v60, %v1351_v40 }
  0x52   : > { %v1177_v37 = vpop.eup %1176  ;;  %v612_v5 = vmul.bf16 1065369472, %v1175_v61 }
  0x53   : > { %v614_v6 = vmul.bf16 1065369472, %v1177_v37 }
  0x54   : > { %v1179_v12 = vpop.eup %1178  ;;  %v623_v20 = vmul.bf16 %v612_v5, %v1366_v54 }
  0x55   : > { %v624_v11 = vmul.bf16 %v614_v6, %v1373_v63  ;;  %v616_v29 = vmul.bf16 1065369472, %v1179_v12 }
  0x56   : > { %v1181_v7 = vpop.eup %1180 }
  0x57   : > { %v1183_v14 = vpop.eup %1182  ;;  %v618_v21 = vmul.bf16 1065369472, %v1181_v7  ;;  %v625_v54 = vmul.bf16 %v616_v29, %v1381_v8 }
  0x58   : > { %v1408_v26 = vmul.f32 %v1183_v14, %v1397_v24 }
  0x59   : > { %v626_v63 = vmul.bf16 %v618_v21, %v1385_v13 }
  0x5a   : > { %v772_v43 = vrot.slane %v1408_v26, 2  ;;  %v771_v24 = vrot.slane %v1408_v26, 1 }
  0x86   : > { %v653_v62 = vpop.permute.xlu0 %652  ;;  %v636_v0 = vpop.permute.xlu1 %635 }
  0x87   : > { %v691_v1 = vmul.bf16 %v653_v62, %v621_v57  ;;  %v689_v2 = vmul.bf16 %v636_v0, %v619_v58 }
  0x89   : > { %v699_v9 = vunpack.c.l.bf16 %v691_v1  ;;  %v697_v25 = vunpack.c.l.bf16 %v689_v2  ;;  %v773_v2 = vrot.slane %v1408_v26, 3 }
  0x8a   : > { %v646_v10 = vpop.permute.xlu0 %645  ;;  %v660_v19 = vpop.permute.xlu1 %659 }
  0x8b   : > { %v717_v15 = vrot.slane %v699_v9, 4  ;;  %v705_v16 = vrot.slane %v697_v25, 4  ;;  %v690_v17 = vmul.bf16 %v646_v10, %v620_v3  ;;  %v692_v18 = vmul.bf16 %v660_v19, %v622_v4 }
  0x8d   : > { %v718_v40 = vadd.f32 %v717_v15, %v699_v9  ;;  %v706_v50 = vadd.f32 %v705_v16, %v697_v25  ;;  %v698_v22 = vunpack.c.l.bf16 %v690_v17  ;;  %v700_v23 = vunpack.c.l.bf16 %v692_v18 }
  0x8e   : > { %v667_v27 = vpop.permute.xlu0 %666  ;;  %v674_v28 = vpop.permute.xlu1 %673  ;;  %v774_v25 = vrot.slane %v1408_v26, 4 }
  0x8f   : > { %v719_v30 = vrot.slane %v718_v40, 2  ;;  %v707_v31 = vrot.slane %v706_v50, 2  ;;  %v711_v32 = vrot.slane %v698_v22, 4  ;;  %v723_v33 = vrot.slane %v700_v23, 4 }
  0x90   : > { %v693_v34 = vmul.bf16 %v667_v27, %v623_v20  ;;  %v694_v35 = vmul.bf16 %v674_v28, %v624_v11  ;;  %v775_v20 = vrot.slane %v1408_v26, 5 }
  0x91   : > { %v720_v38 = vadd.f32 %v719_v30, %v718_v40  ;;  %v708_v39 = vadd.f32 %v707_v31, %v706_v50  ;;  %v712_v41 = vadd.f32 %v711_v32, %v698_v22  ;;  %v724_v42 = vadd.f32 %v723_v33, %v700_v23 }
  0x92   : > { %v701_v44 = vunpack.c.l.bf16 %v693_v34  ;;  %v702_v45 = vunpack.c.l.bf16 %v694_v35  ;;  %v681_v46 = vpop.permute.xlu0 %680  ;;  %v688_v47 = vpop.permute.xlu1 %687  ;;  %v776_v34 = vrot.slane %v1408_v26, 6  ;;  %v777_v35 = vrot.slane %v1408_v26, 7 }
  0x93   : > { %v721_v48 = vrot.slane %v720_v38, 1  ;;  %v709_v49 = vrot.slane %v708_v39, 1  ;;  %v713_v51 = vrot.slane %v712_v41, 2  ;;  %v725_v52 = vrot.slane %v724_v42, 2 }
  0x94   : > { %v729_v53 = vrot.slane %v701_v44, 4  ;;  %v735_v8 = vrot.slane %v702_v45, 4  ;;  %v695_v55 = vmul.bf16 %v681_v46, %v625_v54  ;;  %v696_v13 = vmul.bf16 %v688_v47, %v626_v63 }
  0x95   : > { %v722_v56 = vadd.f32 %v721_v48, %v720_v38  ;;  %v710_v36 = vadd.f32 %v709_v49, %v708_v39  ;;  %v714_v57 = vadd.f32 %v713_v51, %v712_v41  ;;  %v726_v58 = vadd.f32 %v725_v52, %v724_v42 }
  0x96   : > { %v730_v59 = vadd.f32 %v729_v53, %v701_v44  ;;  %v736_v60 = vadd.f32 %v735_v8, %v702_v45  ;;  %v703_v61 = vunpack.c.l.bf16 %v695_v55  ;;  %v704_v37 = vunpack.c.l.bf16 %v696_v13 }
  0x97   : > { %v788_v62 = vadd.f32 %v772_v43, %v722_v56  ;;  %v715_v0 = vrot.slane %v714_v57, 1  ;;  %v727_v1 = vrot.slane %v726_v58, 1  ;;  %v786_v6 = vadd.f32 %v1408_v26, %v710_v36 }
  0x98   : > { %v731_v3 = vrot.slane %v730_v59, 2  ;;  %v737_v4 = vrot.slane %v736_v60, 2  ;;  %v741_v12 = vrot.slane %v703_v61, 4  ;;  %v747_v5 = vrot.slane %v704_v37, 4 }
  0x99   : > { %v716_v7 = vadd.f32 %v715_v0, %v714_v57  ;;  %v728_v9 = vadd.f32 %v727_v1, %v726_v58  ;;  %v812_v16 = vpack.c.bf16 %v788_v62, %v788_v62  ;;  %v810_v50 = vpack.c.bf16 %v786_v6, %v786_v6 }
  0x9a   : > { %v732_v10 = vadd.f32 %v731_v3, %v730_v59  ;;  %v738_v19 = vadd.f32 %v737_v4, %v736_v60  ;;  %v742_v14 = vadd.f32 %v741_v12, %v703_v61  ;;  %v748_v15 = vadd.f32 %v747_v5, %v704_v37  ;;  %v1072_v3 = vld [vmem:[%s1442_s4] ss:$0 sm:$0xff] }
  0x9b   : > { %v787_v17 = vadd.f32 %v771_v24, %v716_v7  ;;  %v789_v18 = vadd.f32 %v773_v2, %v728_v9  ;;  %v835_v32 = vunpack.c.l.b16 %v812_v16  ;;  %v833_v41 = vunpack.c.l.b16 %v810_v50 }
  0x9c   : > { %v733_v11 = vrot.slane %v732_v10, 1  ;;  %v739_v29 = vrot.slane %v738_v19, 1  ;;  %v743_v21 = vrot.slane %v742_v14, 2  ;;  %v749_v40 = vrot.slane %v748_v15, 2 }
  0x9d   : > { %v811_v22 = vpack.c.bf16 %v787_v17, %v787_v17  ;;  %v813_v23 = vpack.c.bf16 %v789_v18, %v789_v18  ;;  %v844_v47 = vrot.slane %v835_v32, 6 }
  0x9e   : > { %v734_v27 = vadd.f32 %v733_v11, %v732_v10  ;;  %v740_v28 = vadd.f32 %v739_v29, %v738_v19  ;;  %v744_v30 = vadd.f32 %v743_v21, %v742_v14  ;;  %v750_v31 = vadd.f32 %v749_v40, %v748_v15 }
  0x9f   : > { %v834_v33 = vunpack.c.l.b16 %v811_v22  ;;  %v836_v43 = vunpack.c.l.b16 %v813_v23 }
  0xa0   : > { %v790_v54 = vadd.f32 %v774_v25, %v734_v27  ;;  %v791_v63 = vadd.f32 %v775_v20, %v740_v28  ;;  %v745_v38 = vrot.slane %v744_v30, 1  ;;  %v751_v39 = vrot.slane %v750_v31, 1 }
  0xa1   : > { %v841_v42 = vrot.slane %v834_v33, 7  ;;  %v847_v53 = vrot.slane %v836_v43, 5 }
  0xa2   : > { %v814_v24 = vpack.c.bf16 %v790_v54, %v790_v54  ;;  %v815_v44 = vpack.c.bf16 %v791_v63, %v791_v63  ;;  %v746_v45 = vadd.f32 %v745_v38, %v744_v30  ;;  %v752_v46 = vadd.f32 %v751_v39, %v750_v31 }
  0xa3   : > { %v843_v48 = vsel %vm842_vm1, %v841_v42, %v833_v41 }
  0xa4   : > { %v837_v49 = vunpack.c.l.b16 %v814_v24  ;;  %v838_v51 = vunpack.c.l.b16 %v815_v44  ;;  %v792_v52 = vadd.f32 %v776_v34, %v746_v45  ;;  %v793_v26 = vadd.f32 %v777_v35, %v752_v46 }
  0xa5   : > { %v846_v8 = vsel %vm845_vm2, %v844_v47, %v843_v48 }
  0xa6   : > { %v850_v55 = vrot.slane %v837_v49, 4  ;;  %v853_v13 = vrot.slane %v838_v51, 3  ;;  %v816_v56 = vpack.c.bf16 %v792_v52, %v792_v52  ;;  %v817_v36 = vpack.c.bf16 %v793_v26, %v793_v26 }
  0xa7   : > { %v849_v57 = vsel %vm848_vm3, %v847_v53, %v846_v8 }
  0xa8   : > { %v839_v58 = vunpack.c.l.b16 %v816_v56  ;;  %v840_v59 = vunpack.c.l.b16 %v817_v36  ;;  %v852_v60 = vsel %vm851_vm4, %v850_v55, %v849_v57 }
  0xa9   : > { %v855_v61 = vsel %vm854_vm5, %v853_v13, %v852_v60 }
  0xaa   : > { %v856_v37 = vrot.slane %v839_v58, 2  ;;  %v859_v62 = vrot.slane %v840_v59, 1 }
  0xac   : > { %v858_v0 = vsel %vm857_vm6, %v856_v37, %v855_v61 }
  0xad   : > { %v861_v1 = vsel %vm860_vm7, %v859_v62, %v858_v0 }
  0xae   : > { %v862_v2 = vpack.c.b16 %v861_v1, %v861_v1 }
  0xb0   : > { %1109 = vmatmul.mubr.bf16.vlgmr.msra.gmra.mxu0 %v862_v2 }
 0x170   : > { %v946_v4 = vpop.f32.mrf.mxu0 }
 0x171   : > { %v947_v12 = vadd.f32 %v1072_v3, %v946_v4 }
 0x172   : > { %v1110_v5 = vpop.f32.mrf.mxu0 }
 0x173   : > { %952 = vst [vmem:[%s273_s7] sm:$0xff] %v947_v12 }
 0x174   : > { %v949_v6 = vpop.f32.mrf.mxu0 }
 0x176   : > { %v1111_v7 = vpop.f32.mrf.mxu0 }
 0x177 PF: > { %s15_s20 = sadd.s32 1, %s1206_s20   ;;  %s1444_s18 = smov %s1202_s19 }
 0x178   : > { %p12_p5 = scmp.ge.s32.totalorder %s15_s20, 4   ;;  %s1445_s19 = smov %s1447_s21 }
 0x17a   :  { %14 = sbr.rel (!%p12_p5) target bundleno = 2 (0x2), region = 74 }

// kernel: graph_nbeats_block.6
= control target key start
LH: loop header
LB: loop body
LE: loop exit
PB: predicated region body
PF: predicated region fallthrough
CT: control target
= control target key end

     0   :  { %v1555_v1 = vmov 0   ;;  %v1556_v21 = vmov 0.0   ;;  %vm1557_vm0 = vmmov 0   ;;  %v85_v41 = vlaneseq  ;;  %s2061_s1 = inlined_call_operand.vmem [shape: bf16[128,256], index: 1, kind: input, shape index: {}]   ;;  %s2062_s0 = inlined_call_operand.vmem [shape: f32[16,128], index: 0, kind: input, shape index: {}]   ;;  %s2063_s3 = inlined_call_operand.vmem [shape: bf16[128,128], index: 3, kind: input, shape index: {}]   ;;  %s2064_s5 = inlined_call_operand.vmem [shape: bf16[128,256], index: 5, kind: input, shape index: {}]   ;;  %s2065_s2 = inlined_call_operand.vmem [shape: f32[1,256], index: 2, kind: input, shape index: {}]   ;;  %s2066_s4 = inlined_call_operand.vmem [shape: f32[1,128], index: 4, kind: input, shape index: {}]   ;;  %s2067_s7 = inlined_call_operand.vmem [shape: bf16[128,128], index: 7, kind: input, shape index: {}]   ;;  %s2068_s9 = inlined_call_operand.vmem [shape: bf16[128,128], index: 9, kind: input, shape index: {}]   ;;  %s2069_s6 = inlined_call_operand.vmem [shape: f32[1,256], index: 6, kind: input, shape index: {}]   ;;  %s2070_s11 = inlined_call_operand.vmem [shape: bf16[128,768], index: 11, kind: input, shape index: {}]   ;;  %s2071_s8 = inlined_call_operand.vmem [shape: f32[1,128], index: 8, kind: input, shape index: {}]   ;;  %s2072_s10 = inlined_call_operand.vmem [shape: f32[1,128], index: 10, kind: input, shape index: {}]   ;;  %s2073_s12 = inlined_call_operand.vmem [shape: f32[1,768], index: 12, kind: input, shape index: {}]   ;;  %s2074_s13 = inlined_call_operand.vmem [shape: f32[16,128], index: 13, kind: output, shape index: {0}]   ;;  %s2075_s14 = inlined_call_operand.vmem [shape: f32[16,640], index: 14, kind: output, shape index: {1}]  }
   0x1   :  { %v1395_v0 = vld [vmem:[%s2061_s1 + $0x74] ss:$8 sps:$4 sm:$0xff]   ;;  %207 = vmatprep.mubr.bf16.mxu0 %v1555_v1  ;;  %v1397_v2 = vld [vmem:[%s2061_s1 + $0x70] ss:$8 sps:$4 sm:$0xff]   ;;  %v1398_v3 = vld [vmem:[%s2061_s1 + $0x64] ss:$8 sps:$4 sm:$0xff]   ;;  %1332 = vmatprep.subr.bf16.mxu1 %v1556_v21 }
   0x2   :  { %175 = vmatprep.subr.bf16.mxu0 %v1395_v0  ;;  %v1400_v4 = vld [vmem:[%s2061_s1 + $0x60] ss:$8 sps:$4 sm:$0xff]   ;;  %v1401_v5 = vld [vmem:[%s2061_s1 + $0x54] ss:$8 sps:$4 sm:$0xff]   ;;  %v1403_v6 = vld [vmem:[%s2061_s1 + $0x50] ss:$8 sps:$4 sm:$0xff]   ;;  %1348 = vmatprep.mubr.msk.bf16.mxu1 %vm1557_vm0, %v1556_v21 }
   0x3   :  { %176 = vmatpush1.bf16.msra.mxu0 %v1397_v2  ;;  %v1404_v7 = vld [vmem:[%s2061_s1 + $0x44] ss:$8 sps:$4 sm:$0xff]   ;;  %v1406_v8 = vld [vmem:[%s2061_s1 + $0x40] ss:$8 sps:$4 sm:$0xff]   ;;  %v1407_v9 = vld [vmem:[%s2061_s1 + $0x34] ss:$8 sps:$4 sm:$0xff]  }
   0x4   :  { %177 = vmatprep.subr.bf16.mxu0 %v1398_v3  ;;  %v1409_v10 = vld [vmem:[%s2061_s1 + $0x30] ss:$8 sps:$4 sm:$0xff]   ;;  %v1410_v11 = vld [vmem:[%s2061_s1 + $0x24] ss:$8 sps:$4 sm:$0xff]   ;;  %v1412_v12 = vld [vmem:[%s2061_s1 + $0x20] ss:$8 sps:$4 sm:$0xff]  }
   0x5   :  { %v1413_v13 = vld [vmem:[%s2061_s1 + $0x14] ss:$8 sps:$4 sm:$0xff]   ;;  %v1415_v14 = vld [vmem:[%s2061_s1 + $0x10] ss:$8 sps:$4 sm:$0xff]   ;;  %v1416_v15 = vld [vmem:[%s2061_s1 + $0x4] ss:$8 sps:$4 sm:$0xff]  }
   0x6   :  { %v1418_v16 = vld [vmem:[%s2061_s1] ss:$8 sps:$4 sm:$0xff]   ;;  %v1419_v20 = vld [vmem:[%s2063_s3 + $0x38] sm:$0xff]   ;;  %v1420_v22 = vld [vmem:[%s2063_s3 + $0x30] sm:$0xff]   ;;  %v1760_v42 = vshrl.u32 %v85_v41, 7 }
   0x7   :  { %178 = vmatpush1.bf16.msra.mxu0 %v1400_v4  ;;  %v47_v17 = vld [vmem:[%s2062_s0] sm:$0xff]  ;;  %v48_v18 = vld [vmem:[%s2062_s0 + $0x8] sm:$0xff]  ;;  %1333 = vmatpush3.bf16.msra.mxu1 %v1419_v20  ;;  %v1423_v25 = vld [vmem:[%s2063_s3 + $0x18] sm:$0xff]  }
   0x8   :  { %179 = vmatprep.subr.bf16.mxu0 %v1401_v5  ;;  %v83_v19 = vpack.c.bf16 %v48_v18, %v47_v17  ;;  %1334 = vmatprep.subr.bf16.mxu1 %v1556_v21  ;;  %v1421_v23 = vld [vmem:[%s2063_s3 + $0x28] sm:$0xff]   ;;  %v1422_v24 = vld [vmem:[%s2063_s3 + $0x20] sm:$0xff]   ;;  %v1424_v26 = vld [vmem:[%s2063_s3 + $0x10] sm:$0xff]   ;;  %v1763_v43 = vsub.s32 0, %v1760_v42  ;;  %v1785_v3 = vsub.s32 1, %v1760_v42 }
   0x9   :  { %v1425_v27 = vld [vmem:[%s2063_s3 + $0x8] sm:$0xff]   ;;  %v1426_v28 = vld [vmem:[%s2063_s3] sm:$0xff]   ;;  %v1427_v29 = vld [vmem:[%s2064_s5 + $0x70] ss:$8 sps:$4 sm:$0xff]  }
   0xa   :  { %v1429_v30 = vld [vmem:[%s2064_s5 + $0x74] ss:$8 sps:$4 sm:$0xff]   ;;  %v1432_v31 = vld [vmem:[%s2064_s5 + $0x64] ss:$8 sps:$4 sm:$0xff]   ;;  %v1430_v32 = vld [vmem:[%s2064_s5 + $0x60] ss:$8 sps:$4 sm:$0xff]  }
   0xb   :  { %180 = vmatpush1.bf16.msra.mxu0 %v1403_v6  ;;  %1335 = vmatpush3.bf16.msra.mxu1 %v1420_v22  ;;  %v1435_v33 = vld [vmem:[%s2064_s5 + $0x54] ss:$8 sps:$4 sm:$0xff]   ;;  %v1433_v34 = vld [vmem:[%s2064_s5 + $0x50] ss:$8 sps:$4 sm:$0xff]   ;;  %v1438_v35 = vld [vmem:[%s2064_s5 + $0x44] ss:$8 sps:$4 sm:$0xff]  }
   0xc   :  { %181 = vmatprep.subr.bf16.mxu0 %v1404_v7  ;;  %1336 = vmatprep.subr.bf16.mxu1 %v1556_v21  ;;  %v1436_v36 = vld [vmem:[%s2064_s5 + $0x40] ss:$8 sps:$4 sm:$0xff]   ;;  %v1441_v37 = vld [vmem:[%s2064_s5 + $0x34] ss:$8 sps:$4 sm:$0xff]   ;;  %v1439_v38 = vld [vmem:[%s2064_s5 + $0x30] ss:$8 sps:$4 sm:$0xff]  }
   0xd   :  { %v1444_v39 = vld [vmem:[%s2064_s5 + $0x24] ss:$8 sps:$4 sm:$0xff]   ;;  %v1442_v40 = vld [vmem:[%s2064_s5 + $0x20] ss:$8 sps:$4 sm:$0xff]   ;;  %v1447_v62 = vld [vmem:[%s2064_s5 + $0x14] ss:$8 sps:$4 sm:$0xff]  }
   0xe   :  { %v65_v44 = vld [vmem:[%s2065_s2] sm:$0x3]  ;;  %v1445_v63 = vld [vmem:[%s2064_s5 + $0x10] ss:$8 sps:$4 sm:$0xff]   ;;  %v1450_v0 = vld [vmem:[%s2064_s5 + $0x4] ss:$8 sps:$4 sm:$0xff]  }
   0xf   :  { %182 = vmatpush1.bf16.msra.mxu0 %v1406_v8  ;;  %1337 = vmatpush3.bf16.msra.mxu1 %v1421_v23  ;;  %v88_v45 = vrot.slane %v65_v44, %v1763_v43  ;;  %v1448_v2 = vld [vmem:[%s2064_s5] ss:$8 sps:$4 sm:$0xff]   ;;  %v92_v6 = vrot.slane %v65_v44, %v1785_v3  ;;  %v1451_v18 = vld [vmem:[%s2067_s7 + $0x38] sm:$0xff]  }
  0x10   :  { %183 = vmatprep.subr.bf16.mxu0 %v1407_v9  ;;  %1338 = vmatprep.subr.bf16.mxu1 %v1556_v21  ;;  %v1212_v4 = vld [vmem:[%s2066_s4] ss:$0 sm:$0xff]  ;;  %v1453_v20 = vld [vmem:[%s2067_s7 + $0x28] sm:$0xff]   ;;  %v1455_v23 = vld [vmem:[%s2067_s7 + $0x18] sm:$0xff]  }
  0x11   :  { %v1454_v22 = vld [vmem:[%s2067_s7 + $0x20] sm:$0xff]  }
  0x13   :  { %184 = vmatpush1.bf16.msra.mxu0 %v1409_v10  ;;  %1339 = vmatpush3.bf16.msra.mxu1 %v1422_v24  ;;  %v1456_v24 = vld [vmem:[%s2067_s7 + $0x10] sm:$0xff]  }
  0x14   :  { %185 = vmatprep.subr.bf16.mxu0 %v1410_v11  ;;  %1340 = vmatprep.subr.bf16.mxu1 %v1556_v21 }
  0x17   :  { %186 = vmatpush1.bf16.msra.mxu0 %v1412_v12  ;;  %1341 = vmatpush3.bf16.msra.mxu1 %v1423_v25  ;;  %v1457_v25 = vld [vmem:[%s2067_s7 + $0x8] sm:$0xff]  }
  0x18   :  { %187 = vmatprep.subr.bf16.mxu0 %v1413_v13  ;;  %1342 = vmatprep.subr.bf16.mxu1 %v1556_v21 }
  0x1b   :  { %188 = vmatpush1.bf16.msra.mxu0 %v1415_v14  ;;  %1343 = vmatpush3.bf16.msra.mxu1 %v1424_v26  ;;  %v1458_v26 = vld [vmem:[%s2067_s7] sm:$0xff]  }
  0x1c   :  { %189 = vmatprep.subr.bf16.mxu0 %v1416_v15  ;;  %1344 = vmatprep.subr.bf16.mxu1 %v1556_v21 }
  0x1f   :  { %190 = vmatpush1.bf16.msra.mxu0 %v1418_v16  ;;  %1345 = vmatpush3.bf16.msra.mxu1 %v1425_v27  ;;  %v1459_v27 = vld [vmem:[%s2068_s9 + $0x38] sm:$0xff]  }
  0x20   :  { %1346 = vmatprep.subr.bf16.mxu1 %v1556_v21  ;;  %456 = vmatprep.subr.bf16.mxu0 %v1429_v30  ;;  %v1462_v30 = vld [vmem:[%s2068_s9 + $0x20] sm:$0xff]  }
  0x22   :  { %208 = vmatmul.mubr.bf16.vlgmr.msra.gmra.mxu0 %v83_v19  ;;  %v1452_v19 = vld [vmem:[%s2067_s7 + $0x30] sm:$0xff]  }
  0x23   :  { %488 = vmatprep.mubr.bf16.mxu0 %v1555_v1  ;;  %1347 = vmatpush3.bf16.msra.mxu1 %v1426_v28  ;;  %v1460_v28 = vld [vmem:[%s2068_s9 + $0x30] sm:$0xff]  }
  0x24   :  { %1352 = vmatprep.subr.bf16.mxu1 %v1556_v21  ;;  %457 = vmatpush1.bf16.msra.mxu0 %v1427_v29  ;;  %v1461_v29 = vld [vmem:[%s2068_s9 + $0x28] sm:$0xff]  }
  0x25   :  { %458 = vmatprep.subr.bf16.mxu0 %v1432_v31  ;;  %v1463_v31 = vld [vmem:[%s2068_s9 + $0x18] sm:$0xff]  }
  0x28   :  { %459 = vmatpush1.bf16.msra.mxu0 %v1430_v32  ;;  %v346_v32 = vld [vmem:[%s2069_s6] sm:$0x3] }
  0x29   :  { %460 = vmatprep.subr.bf16.mxu0 %v1435_v33  ;;  %v369_v33 = vrot.slane %v346_v32, %v1763_v43 }
  0x2c   :  { %461 = vmatpush1.bf16.msra.mxu0 %v1433_v34 }
  0x2d   :  { %462 = vmatprep.subr.bf16.mxu0 %v1438_v35 }
  0x30   :  { %463 = vmatpush1.bf16.msra.mxu0 %v1436_v36 }
  0x31   :  { %464 = vmatprep.subr.bf16.mxu0 %v1441_v37 }
  0x34   :  { %465 = vmatpush1.bf16.msra.mxu0 %v1439_v38 }
  0x35   :  { %466 = vmatprep.subr.bf16.mxu0 %v1444_v39 }
  0x38   :  { %467 = vmatpush1.bf16.msra.mxu0 %v1442_v40 }
  0x39   :  { %468 = vmatprep.subr.bf16.mxu0 %v1447_v62  ;;  %v1485_v62 = vld [vmem:[%s2070_s11 + $0xc0] ss:$24 sps:$4 sm:$0xff]  }
  0x3c   :  { %469 = vmatpush1.bf16.msra.mxu0 %v1445_v63  ;;  %v1493_v63 = vld [vmem:[%s2070_s11 + $0x94] ss:$24 sps:$4 sm:$0xff]  }
  0x3d   :  { %470 = vmatprep.subr.bf16.mxu0 %v1450_v0  ;;  %v1491_v0 = vld [vmem:[%s2070_s11 + $0x90] ss:$24 sps:$4 sm:$0xff]  }
  0x40   :  { %471 = vmatpush1.bf16.msra.mxu0 %v1448_v2  ;;  %v1499_v2 = vld [vmem:[%s2070_s11 + $0x64] ss:$24 sps:$4 sm:$0xff]  }
  0x41   :  { %1372 = vmatprep.subr.bf16.mxu0 %v1556_v21 }
  0xe2   :  { %v209_v46 = vpop.f32.mrf.mxu0 }
  0xe3   :  { %v210_v47 = vadd.f32 %v209_v46, %v88_v45 }
  0xe4   :  { %v211_v48 = vpop.f32.mrf.mxu0 }
  0xe5   :  { %v1210_v49 = vmul.f32 -1.442695, %v210_v47  ;;  %v212_v11 = vadd.f32 %v211_v48, %v92_v6 }
  0xe6   :  { %v213_v50 = vpop.f32.mrf.mxu0 }
  0xe7   :  { %1539 = vpow2.f32 %v1210_v49  ;;  %v214_v51 = vadd.f32 %v213_v50, %v88_v45 }
  0xe8   :  { %v215_v7 = vpop.f32.mrf.mxu0 }
  0xe9   :  { %v1211_v52 = vmul.f32 -1.442695, %v214_v51  ;;  %v216_v12 = vadd.f32 %v215_v7, %v92_v6  ;;  %v373_v7 = vrot.slane %v346_v32, %v1785_v3  ;;  %v1503_v32 = vld [vmem:[%s2070_s11 + $0x30] ss:$24 sps:$4 sm:$0xff]  }
  0xeb   :  { %1541 = vpow2.f32 %v1211_v52  ;;  %v1464_v52 = vld [vmem:[%s2068_s9 + $0x10] sm:$0xff]  }
  0xf4   :  { %v1540_v53 = vpop.eup %1539 }
  0xf5   :  { %v224_v54 = vadd.f32 1.0, %v1540_v53  ;;  %v1465_v53 = vld [vmem:[%s2068_s9 + $0x8] sm:$0xff]  }
  0xf7   :  { %1543 = vrcp.f32 %v224_v54  ;;  %v1466_v54 = vld [vmem:[%s2068_s9] sm:$0xff]  }
  0xf8   :  { %v1542_v55 = vpop.eup %1541 }
  0xf9   :  { %v225_v56 = vadd.f32 1.0, %v1542_v55  ;;  %v1467_v55 = vld [vmem:[%s2070_s11 + $0x150] ss:$24 sps:$4 sm:$0xff]  }
  0xfb   :  { %1545 = vrcp.f32 %v225_v56  ;;  %v1469_v56 = vld [vmem:[%s2070_s11 + $0x154] ss:$24 sps:$4 sm:$0xff]  }
 0x104   :  { %v1544_v57 = vpop.eup %1543 }
 0x105   :  { %v230_v59 = vmul.f32 %v1544_v57, %v210_v47  ;;  %v1472_v57 = vld [vmem:[%s2070_s11 + $0x15c] ss:$24 sps:$4 sm:$0xff]  }
 0x108   :  { %v1546_v58 = vpop.eup %1545 }
 0x109   :  { %v231_v60 = vmul.f32 %v1546_v58, %v214_v51  ;;  %v1473_v58 = vld [vmem:[%s2070_s11 + $0x120] ss:$24 sps:$4 sm:$0xff]  }
 0x10b   :  { %v232_v61 = vpack.c.bf16 %v231_v60, %v230_v59  ;;  %v1481_v59 = vld [vmem:[%s2070_s11 + $0xf4] ss:$24 sps:$4 sm:$0xff]   ;;  %v1479_v60 = vld [vmem:[%s2070_s11 + $0xf0] ss:$24 sps:$4 sm:$0xff]  }
 0x10d   :  { %1349 = vmatmul.mubr.bf16.vlgmr.msra.gmra.mxu1 %v232_v61  ;;  %v1487_v61 = vld [vmem:[%s2070_s11 + $0xc4] ss:$24 sps:$4 sm:$0xff]  }
 0x10e   :  { %1368 = vmatprep.mubr.msk.bf16.mxu1 %vm1557_vm0, %v1556_v21  ;;  %1353 = vmatpush3.bf16.msra.mxu1 %v1451_v18  ;;  %v1470_v18 = vld [vmem:[%s2070_s11 + $0x158] ss:$24 sps:$4 sm:$0xff]  }
 0x10f   :  { %1354 = vmatprep.subr.bf16.mxu1 %v1556_v21 }
 0x112   :  { %1355 = vmatpush3.bf16.msra.mxu1 %v1452_v19 }
 0x113   :  { %1356 = vmatprep.subr.bf16.mxu1 %v1556_v21 }
 0x116   :  { %1357 = vmatpush3.bf16.msra.mxu1 %v1453_v20  ;;  %v1478_v20 = vld [vmem:[%s2070_s11 + $0x12c] ss:$24 sps:$4 sm:$0xff]  }
 0x117   :  { %1358 = vmatprep.subr.bf16.mxu1 %v1556_v21 }
 0x11a   :  { %1359 = vmatpush3.bf16.msra.mxu1 %v1454_v22  ;;  %v1476_v22 = vld [vmem:[%s2070_s11 + $0x128] ss:$24 sps:$4 sm:$0xff]  }
 0x11b   :  { %1360 = vmatprep.subr.bf16.mxu1 %v1556_v21 }
 0x11e   :  { %1361 = vmatpush3.bf16.msra.mxu1 %v1455_v23  ;;  %v1484_v23 = vld [vmem:[%s2070_s11 + $0xfc] ss:$24 sps:$4 sm:$0xff]  }
 0x11f   :  { %1362 = vmatprep.subr.bf16.mxu1 %v1556_v21 }
 0x122   :  { %1363 = vmatpush3.bf16.msra.mxu1 %v1456_v24  ;;  %v1482_v24 = vld [vmem:[%s2070_s11 + $0xf8] ss:$24 sps:$4 sm:$0xff]  }
 0x123   :  { %1364 = vmatprep.subr.bf16.mxu1 %v1556_v21 }
 0x126   :  { %1365 = vmatpush3.bf16.msra.mxu1 %v1457_v25  ;;  %v1490_v25 = vld [vmem:[%s2070_s11 + $0xcc] ss:$24 sps:$4 sm:$0xff]  }
 0x127   :  { %1366 = vmatprep.subr.bf16.mxu1 %v1556_v21 }
 0x12a   :  { %1367 = vmatpush3.bf16.msra.mxu1 %v1458_v26  ;;  %v1488_v26 = vld [vmem:[%s2070_s11 + $0xc8] ss:$24 sps:$4 sm:$0xff]  }
 0x12b   :  { %1045 = vmatprep.subr.bf16.mxu1 %v1469_v56  ;;  %v1529_v56 = vld [vmem:[%s2070_s11 + $0xa4] ss:$24 sps:$4 sm:$0xff]  }
 0x1cd   :  { %v321_v5 = vpop.f32.mrf.mxu1 }
 0x1ce   :  { %v322_v9 = vadd.f32 %v1212_v4, %v321_v5  ;;  %v1239_v5 = vld [vmem:[%s2071_s8] ss:$0 sm:$0xff] }
 0x1cf   :  { %v1350_v8 = vpop.f32.mrf.mxu1 }
 0x1d0   :  { %v328_v15 = vadd.f32 %v322_v9, %v212_v11 }
 0x1d1   :  { %v324_v10 = vpop.f32.mrf.mxu1 }
 0x1d2   :  { %v325_v13 = vadd.f32 %v1212_v4, %v324_v10  ;;  %v1497_v4 = vld [vmem:[%s2070_s11 + $0x60] ss:$24 sps:$4 sm:$0xff]  }
 0x1d3   :  { %v1351_v14 = vpop.f32.mrf.mxu1 }
 0x1d4   :  { %v329_v16 = vadd.f32 %v325_v13, %v216_v12 }
 0x1d6   :  { %v364_v17 = vpack.c.bf16 %v329_v16, %v328_v15 }
 0x1d8   :  { %489 = vmatmul.mubr.bf16.vlgmr.msra.gmra.mxu0 %v364_v17 }
 0x1d9   :  { %1388 = vmatprep.mubr.msk.bf16.mxu0 %vm1557_vm0, %v1556_v21  ;;  %1373 = vmatpush3.bf16.msra.mxu0 %v1459_v27  ;;  %v1496_v27 = vld [vmem:[%s2070_s11 + $0x9c] ss:$24 sps:$4 sm:$0xff]  }
 0x1da   :  { %1374 = vmatprep.subr.bf16.mxu0 %v1556_v21 }
 0x1dd   :  { %1375 = vmatpush3.bf16.msra.mxu0 %v1460_v28  ;;  %v1494_v28 = vld [vmem:[%s2070_s11 + $0x98] ss:$24 sps:$4 sm:$0xff]  }
 0x1de   :  { %1376 = vmatprep.subr.bf16.mxu0 %v1556_v21 }
 0x1e1   :  { %1377 = vmatpush3.bf16.msra.mxu0 %v1461_v29  ;;  %v1502_v29 = vld [vmem:[%s2070_s11 + $0x6c] ss:$24 sps:$4 sm:$0xff]  }
 0x1e2   :  { %1378 = vmatprep.subr.bf16.mxu0 %v1556_v21 }
 0x1e5   :  { %1379 = vmatpush3.bf16.msra.mxu0 %v1462_v30  ;;  %v1500_v30 = vld [vmem:[%s2070_s11 + $0x68] ss:$24 sps:$4 sm:$0xff]  }
 0x1e6   :  { %1380 = vmatprep.subr.bf16.mxu0 %v1556_v21 }
 0x1e9   :  { %1381 = vmatpush3.bf16.msra.mxu0 %v1463_v31  ;;  %v1505_v31 = vld [vmem:[%s2070_s11 + $0x34] ss:$24 sps:$4 sm:$0xff]  }
 0x1ea   :  { %1382 = vmatprep.subr.bf16.mxu0 %v1556_v21 }
 0x1ed   :  { %1383 = vmatpush3.bf16.msra.mxu0 %v1464_v52  ;;  %v1518_v52 = vld [vmem:[%s2070_s11 + $0x130] ss:$24 sps:$4 sm:$0xff]  }
 0x1ee   :  { %1384 = vmatprep.subr.bf16.mxu0 %v1556_v21 }
 0x1f1   :  { %1385 = vmatpush3.bf16.msra.mxu0 %v1465_v53  ;;  %v1523_v53 = vld [vmem:[%s2070_s11 + $0x104] ss:$24 sps:$4 sm:$0xff]  }
 0x1f2   :  { %1386 = vmatprep.subr.bf16.mxu0 %v1556_v21  ;;  %v1475_v21 = vld [vmem:[%s2070_s11 + $0x124] ss:$24 sps:$4 sm:$0xff]  }
 0x1f5   :  { %1387 = vmatpush3.bf16.msra.mxu0 %v1466_v54  ;;  %v1521_v54 = vld [vmem:[%s2070_s11 + $0x100] ss:$24 sps:$4 sm:$0xff]  }
 0x1f6   :  { %1088 = vmatprep.subr.bf16.mxu0 %v1472_v57  ;;  %v1527_v57 = vld [vmem:[%s2070_s11 + $0xa0] ss:$24 sps:$4 sm:$0xff]  }
 0x298   :  { %v490_v34 = vpop.f32.mrf.mxu0 }
 0x299   :  { %v491_v35 = vadd.f32 %v490_v34, %v369_v33  ;;  %v1506_v34 = vld [vmem:[%s2070_s11 + $0x38] ss:$24 sps:$4 sm:$0xff]  }
 0x29a   :  { %v1848_v36 = vpop.f32.mrf.mxu0 }
 0x29b   :  { %v1237_v37 = vmul.f32 -1.442695, %v491_v35  ;;  %v493_v12 = vadd.f32 %v1848_v36, %v373_v7  ;;  %v1509_v36 = vld [vmem:[%s2070_s11] ss:$24 sps:$4 sm:$0xff]  }
 0x29c   :  { %v494_v38 = vpop.f32.mrf.mxu0 }
 0x29d   :  { %1547 = vpow2.f32 %v1237_v37  ;;  %v495_v39 = vadd.f32 %v494_v38, %v369_v33  ;;  %v1508_v33 = vld [vmem:[%s2070_s11 + $0x3c] ss:$24 sps:$4 sm:$0xff]   ;;  %v1514_v37 = vld [vmem:[%s2070_s11 + $0xc] ss:$24 sps:$4 sm:$0xff]   ;;  %v1512_v38 = vld [vmem:[%s2070_s11 + $0x8] ss:$24 sps:$4 sm:$0xff]  }
 0x29e   :  { %v496_v8 = vpop.f32.mrf.mxu0 }
 0x29f   :  { %v1238_v40 = vmul.f32 -1.442695, %v495_v39  ;;  %v497_v13 = vadd.f32 %v496_v8, %v373_v7 }
 0x2a1   :  { %1549 = vpow2.f32 %v1238_v40 }
 0x2aa   :  { %v1548_v41 = vpop.eup %1547 }
 0x2ab   :  { %v505_v44 = vadd.f32 1.0, %v1548_v41  ;;  %v1248_v41 = vld [vmem:[%s2072_s10] ss:$0 sm:$0xff] }
 0x2ad   :  { %1551 = vrcp.f32 %v505_v44 }
 0x2ae   :  { %v1550_v45 = vpop.eup %1549 }
 0x2af   :  { %v506_v46 = vadd.f32 1.0, %v1550_v45 }
 0x2b1   :  { %1553 = vrcp.f32 %v506_v46 }
 0x2ba   :  { %v1552_v47 = vpop.eup %1551 }
 0x2bb   :  { %v511_v49 = vmul.f32 %v1552_v47, %v491_v35  ;;  %v1511_v35 = vld [vmem:[%s2070_s11 + $0x4] ss:$24 sps:$4 sm:$0xff]  }
 0x2be   :  { %v1554_v48 = vpop.eup %1553 }
 0x2bf   :  { %v512_v50 = vmul.f32 %v1554_v48, %v495_v39  ;;  %v1517_v39 = vld [vmem:[%s2070_s11 + $0x164] ss:$24 sps:$4 sm:$0xff]  }
 0x2c1   :  { %v513_v51 = vpack.c.bf16 %v512_v50, %v511_v49  ;;  %v1515_v49 = vld [vmem:[%s2070_s11 + $0x160] ss:$24 sps:$4 sm:$0xff]  }
 0x2c3   :  { %1369 = vmatmul.mubr.bf16.vlgmr.msra.gmra.mxu1 %v513_v51  ;;  %v1520_v51 = vld [vmem:[%s2070_s11 + $0x134] ss:$24 sps:$4 sm:$0xff]  }
 0x2c4   :  { %1077 = vmatprep.mubr.bf16.mxu1 %v1555_v1  ;;  %1046 = vmatpush1.bf16.msra.mxu1 %v1467_v55  ;;  %v1526_v55 = vld [vmem:[%s2070_s11 + $0xd4] ss:$24 sps:$4 sm:$0xff]  }
 0x2c5   :  { %1047 = vmatprep.subr.bf16.mxu1 %v1475_v21  ;;  %v1532_v21 = vld [vmem:[%s2070_s11 + $0x74] ss:$24 sps:$4 sm:$0xff]  }
 0x2c8   :  { %1048 = vmatpush1.bf16.msra.mxu1 %v1473_v58  ;;  %v1530_v58 = vld [vmem:[%s2070_s11 + $0x70] ss:$24 sps:$4 sm:$0xff]  }
 0x2c9   :  { %1049 = vmatprep.subr.bf16.mxu1 %v1481_v59  ;;  %v1535_v59 = vld [vmem:[%s2070_s11 + $0x44] ss:$24 sps:$4 sm:$0xff]  }
 0x2cc   :  { %1050 = vmatpush1.bf16.msra.mxu1 %v1479_v60  ;;  %v1533_v60 = vld [vmem:[%s2070_s11 + $0x40] ss:$24 sps:$4 sm:$0xff]  }
 0x2cd   :  { %1051 = vmatprep.subr.bf16.mxu1 %v1487_v61  ;;  %v1538_v61 = vld [vmem:[%s2070_s11 + $0x14] ss:$24 sps:$4 sm:$0xff]  }
 0x2d0   :  { %1052 = vmatpush1.bf16.msra.mxu1 %v1485_v62  ;;  %v1536_v62 = vld [vmem:[%s2070_s11 + $0x10] ss:$24 sps:$4 sm:$0xff]  }
 0x2d1   :  { %1053 = vmatprep.subr.bf16.mxu1 %v1493_v63  ;;  %v785_v63 = vsub.s32 2, %v1760_v42 }
 0x2d4   :  { %1054 = vmatpush1.bf16.msra.mxu1 %v1491_v0  ;;  %v773_v0 = vld [vmem:[%s2073_s12] sm:$0x3f] }
 0x2d5   :  { %1055 = vmatprep.subr.bf16.mxu1 %v1499_v2  ;;  %v789_v2 = vsub.s32 3, %v1760_v42 }
 0x2d7   :  { %v790_v7 = vrot.slane %v773_v0, %v789_v2 }
 0x2d8   :  { %1056 = vmatpush1.bf16.msra.mxu1 %v1497_v4  ;;  %v778_v4 = vrot.slane %v773_v0, %v1763_v43 }
 0x2d9   :  { %1057 = vmatprep.subr.bf16.mxu1 %v1505_v31 }
 0x2dc   :  { %1058 = vmatpush1.bf16.msra.mxu1 %v1503_v32 }
 0x2dd   :  { %1059 = vmatprep.subr.bf16.mxu1 %v1511_v35 }
 0x2e0   :  { %1060 = vmatpush1.bf16.msra.mxu1 %v1509_v36 }
 0x2e1   :  { %1131 = vmatprep.subr.bf16.mxu1 %v1517_v39 }
 0x383   :  { %v602_v6 = vpop.f32.mrf.mxu1 }
 0x384   :  { %v603_v10 = vadd.f32 %v1239_v5, %v602_v6  ;;  %v782_v6 = vrot.slane %v773_v0, %v1785_v3 }
 0x385   :  { %v1370_v9 = vpop.f32.mrf.mxu1 }
 0x386   :  { %v609_v16 = vadd.f32 %v603_v10, %v493_v12 }
 0x387   :  { %v605_v11 = vpop.f32.mrf.mxu1 }
 0x388   :  { %v606_v14 = vadd.f32 %v1239_v5, %v605_v11  ;;  %v786_v5 = vrot.slane %v773_v0, %v785_v63 }
 0x389   :  { %v1371_v15 = vpop.f32.mrf.mxu1 }
 0x38a   :  { %v610_v17 = vadd.f32 %v606_v14, %v497_v13 }
 0x38c   :  { %v627_v19 = vpack.c.bf16 %v610_v17, %v609_v16 }
 0x38e   :  { %1389 = vmatmul.mubr.bf16.vlgmr.msra.gmra.mxu0 %v627_v19 }
 0x38f   :  { %1089 = vmatpush1.bf16.msra.mxu0 %v1470_v18  ;;  %1120 = vmatprep.mubr.bf16.mxu0 %v1555_v1 }
 0x390   :  { %1090 = vmatprep.subr.bf16.mxu0 %v1478_v20 }
 0x393   :  { %1091 = vmatpush1.bf16.msra.mxu0 %v1476_v22 }
 0x394   :  { %1092 = vmatprep.subr.bf16.mxu0 %v1484_v23  ;;  %v793_v23 = vsub.s32 4, %v1760_v42 }
 0x397   :  { %1093 = vmatpush1.bf16.msra.mxu0 %v1482_v24  ;;  %v797_v24 = vsub.s32 5, %v1760_v42 }
 0x398   :  { %1094 = vmatprep.subr.bf16.mxu0 %v1490_v25  ;;  %v794_v25 = vrot.slane %v773_v0, %v793_v23 }
 0x39b   :  { %1095 = vmatpush1.bf16.msra.mxu0 %v1488_v26  ;;  %v798_v26 = vrot.slane %v773_v0, %v797_v24 }
 0x39c   :  { %1096 = vmatprep.subr.bf16.mxu0 %v1496_v27 }
 0x39f   :  { %1097 = vmatpush1.bf16.msra.mxu0 %v1494_v28 }
 0x3a0   :  { %1098 = vmatprep.subr.bf16.mxu0 %v1502_v29 }
 0x3a3   :  { %1099 = vmatpush1.bf16.msra.mxu0 %v1500_v30 }
 0x3a4   :  { %1100 = vmatprep.subr.bf16.mxu0 %v1508_v33 }
 0x3a7   :  { %1101 = vmatpush1.bf16.msra.mxu0 %v1506_v34 }
 0x3a8   :  { %1102 = vmatprep.subr.bf16.mxu0 %v1514_v37 }
 0x3ab   :  { %1103 = vmatpush1.bf16.msra.mxu0 %v1512_v38 }
 0x44e   :  { %v717_v40 = vpop.f32.mrf.mxu0 }
 0x44f   :  { %v718_v46 = vadd.f32 %v1248_v41, %v717_v40 }
 0x450   :  { %v1390_v44 = vpop.f32.mrf.mxu0 }
 0x452   :  { %v720_v45 = vpop.f32.mrf.mxu0 }
 0x453   :  { %v721_v47 = vadd.f32 %v1248_v41, %v720_v45 }
 0x454   :  { %v1391_v48 = vpop.f32.mrf.mxu0 }
 0x455   :  { %v772_v50 = vpack.c.bf16 %v721_v47, %v718_v46 }
 0x457   :  { %1078 = vmatmul.mubr.bf16.vlgmr.msra.gmra.mxu1 %v772_v50  ;;  %1121 = vmatmul.mubr.bf16.vlgmr.msra.gmra.mxu0 %v772_v50 }
 0x458   :  { %1132 = vmatpush1.bf16.msra.mxu1 %v1515_v49  ;;  %1163 = vmatprep.mubr.bf16.mxu1 %v1555_v1  ;;  %v1524_v1 = vld [vmem:[%s2070_s11 + $0xd0] ss:$24 sps:$4 sm:$0xff]  }
 0x459   :  { %1133 = vmatprep.subr.bf16.mxu1 %v1520_v51 }
 0x45c   :  { %1134 = vmatpush1.bf16.msra.mxu1 %v1518_v52 }
 0x45d   :  { %1135 = vmatprep.subr.bf16.mxu1 %v1523_v53 }
 0x460   :  { %1136 = vmatpush1.bf16.msra.mxu1 %v1521_v54 }
 0x461   :  { %1137 = vmatprep.subr.bf16.mxu1 %v1526_v55 }
 0x464   :  { %1138 = vmatpush1.bf16.msra.mxu1 %v1524_v1 }
 0x465   :  { %1139 = vmatprep.subr.bf16.mxu1 %v1529_v56 }
 0x468   :  { %1140 = vmatpush1.bf16.msra.mxu1 %v1527_v57 }
 0x469   :  { %1141 = vmatprep.subr.bf16.mxu1 %v1532_v21 }
 0x46c   :  { %1142 = vmatpush1.bf16.msra.mxu1 %v1530_v58 }
 0x46d   :  { %1143 = vmatprep.subr.bf16.mxu1 %v1535_v59 }
 0x470   :  { %1144 = vmatpush1.bf16.msra.mxu1 %v1533_v60 }
 0x471   :  { %1145 = vmatprep.subr.bf16.mxu1 %v1538_v61 }
 0x474   :  { %1146 = vmatpush1.bf16.msra.mxu1 %v1536_v62 }
 0x477   :  { %1164 = vmatmul.mubr.bf16.vlgmr.msra.gmra.mxu1 %v772_v50 }
 0x517   :  { %v1079_v8 = vpop.f32.mrf.mxu1  ;;  %v1122_v9 = vpop.f32.mrf.mxu0 }
 0x518   :  { %v1080_v10 = vadd.f32 %v1079_v8, %v778_v4  ;;  %v1123_v11 = vadd.f32 %v1122_v9, %v786_v5 }
 0x519   :  { %v1081_v12 = vpop.f32.mrf.mxu1  ;;  %v1124_v13 = vpop.f32.mrf.mxu0 }
 0x51a   :  { %1174 = vst [vmem:[%s2074_s13] sm:$0xff] %v1080_v10  ;;  %1177 = vst [vmem:[%s2075_s14 + $0x8] sm:$0xff] %v1123_v11  ;;  %v1082_v14 = vadd.f32 %v1081_v12, %v782_v6  ;;  %v1125_v43 = vadd.f32 %v1124_v13, %v790_v7 }
 0x51b   :  { %v1083_v15 = vpop.f32.mrf.mxu1  ;;  %v1126_v16 = vpop.f32.mrf.mxu0 }
 0x51c   :  { %1176 = vst [vmem:[%s2075_s14] sm:$0xff] %v1082_v14  ;;  %1178 = vst [vmem:[%s2075_s14 + $0x10] sm:$0xff] %v1125_v43  ;;  %v1084_v3 = vadd.f32 %v1083_v15, %v778_v4  ;;  %v1127_v17 = vadd.f32 %v1126_v16, %v786_v5 }
 0x51d   :  { %v1085_v18 = vpop.f32.mrf.mxu1  ;;  %v1128_v19 = vpop.f32.mrf.mxu0 }
 0x51e   :  { %1175 = vst [vmem:[%s2074_s13 + $0x8] sm:$0xff] %v1084_v3  ;;  %1182 = vst [vmem:[%s2075_s14 + $0x30] sm:$0xff] %v1127_v17  ;;  %v1086_v20 = vadd.f32 %v1085_v18, %v782_v6  ;;  %v1129_v22 = vadd.f32 %v1128_v19, %v790_v7 }
 0x520   :  { %1181 = vst [vmem:[%s2075_s14 + $0x28] sm:$0xff] %v1086_v20  ;;  %1183 = vst [vmem:[%s2075_s14 + $0x38] sm:$0xff] %v1129_v22 }
 0x537   :  { %v1165_v27 = vpop.f32.mrf.mxu1 }
 0x538   :  { %v1166_v28 = vadd.f32 %v1165_v27, %v794_v25 }
 0x539   :  { %v1167_v29 = vpop.f32.mrf.mxu1 }
 0x53a   :  { %1179 = vst [vmem:[%s2075_s14 + $0x18] sm:$0xff] %v1166_v28  ;;  %v1168_v30 = vadd.f32 %v1167_v29, %v798_v26 }
 0x53b   :  { %v1169_v31 = vpop.f32.mrf.mxu1 }
 0x53c   :  { %1180 = vst [vmem:[%s2075_s14 + $0x20] sm:$0xff] %v1168_v30  ;;  %v1170_v32 = vadd.f32 %v1169_v31, %v794_v25 }
 0x53d   :  { %v1171_v33 = vpop.f32.mrf.mxu1 }
 0x53e   :  { %1184 = vst [vmem:[%s2075_s14 + $0x40] sm:$0xff] %v1170_v32  ;;  %v1172_v42 = vadd.f32 %v1171_v33, %v798_v26 }
 0x540   :  { %1185 = vst [vmem:[%s2075_s14 + $0x48] sm:$0xff] %v1172_v42 }

// kernel: graph_nbeats_block.4
= control target key start
LH: loop header
LB: loop body
LE: loop exit
PB: predicated region body
PF: predicated region fallthrough
CT: control target
= control target key end

     0   :  { %20 = vsyncpa [#allocation3], 0  ;;  %s1984_s0 = inlined_call_operand.vmem [shape: f32[16,128], index: 0, kind: input, shape index: {}]   ;;  %s1985_s1 = inlined_call_operand.hbm [shape: bf16[128,256], index: 1, kind: input, shape index: {}]   ;;  %s1986_s2 = inlined_call_operand.vmem [shape: f32[1,256], index: 2, kind: input, shape index: {}]   ;;  %s1987_s3 = inlined_call_operand.hbm [shape: bf16[128,128], index: 3, kind: input, shape index: {}]   ;;  %s1988_s4 = inlined_call_operand.vmem [shape: f32[1,128], index: 4, kind: input, shape index: {}]   ;;  %s1989_s5 = inlined_call_operand.hbm [shape: bf16[128,256], index: 5, kind: input, shape index: {}]   ;;  %s1990_s6 = inlined_call_operand.vmem [shape: f32[1,256], index: 6, kind: input, shape index: {}]   ;;  %s1991_s7 = inlined_call_operand.hbm [shape: bf16[128,128], index: 7, kind: input, shape index: {}]   ;;  %s1992_s8 = inlined_call_operand.vmem [shape: f32[1,128], index: 8, kind: input, shape index: {}]   ;;  %s1993_s9 = inlined_call_operand.vmem [shape: bf16[128,128], index: 9, kind: input, shape index: {}]   ;;  %s1994_s10 = inlined_call_operand.vmem [shape: f32[1,128], index: 10, kind: input, shape index: {}]   ;;  %s1995_s11 = inlined_call_operand.hbm [shape: bf16[128,768], index: 11, kind: input, shape index: {}]   ;;  %s1996_s12 = inlined_call_operand.vmem [shape: f32[1,768], index: 12, kind: input, shape index: {}]   ;;  %s1997_s13 = inlined_call_operand.vmem [shape: f32[16,128], index: 13, kind: output, shape index: {0}]   ;;  %s1998_s14 = inlined_call_operand.vmem [shape: f32[16,640], index: 14, kind: output, shape index: {1}]  }
   0x1   :  { %21 = vsyncpa [#allocation5], 0 }
   0x2   :  { %22 = vsyncpa [#allocation8], 0  ;;  %s1743_s29 = smov [#allocation4]  }
   0x3   :  { %s44_s30 = sshll.u32 %s1743_s29, 4  ;;  %s45_s30 = int_to_ptr.vmem [resolvable:$true] %s44_s30 }
   0x4   :  { %s1645_s15 = scalar_lea.vmem %s45_s30, 1024  ;;  %p1650_p1 = scmp.lt.s32.totalorder %s45_s30, %s45_s30 }
   0x5   :  { %p1646_p0 = scmp.ne.s32.totalorder %s45_s30, %s1645_s15  ;;  %p1651_p2 = scmp.lt.s32.totalorder %s1645_s15, %s1645_s15 }
   0x7   :  { %p1652_p3 = por %p1651_p2, %p1650_p1 }
   0x9   :  { %p1653_p4 = pnand %p1652_p3, %p1646_p0 }
   0xb   :  { %1656 = shalt.err (!%p1653_p4)
}
   0xc   :  { %s1744_s16 = smov 64   ;;  %s1745_s17 = smov 4  }
   0xd   :  { %50 = dma.hbm_to_vmem [thread:$0]  %s1987_s3, 1024, %s45_s30, [#allocation5], %s1744_s16, %s1744_s16, %s1745_s17  }
   0xe   :  { %s1746_s20 = smov [#allocation7]   ;;  %s1747_s22 = smov [#allocation2]  }
   0xf   :  { %s72_s21 = sshll.u32 %s1746_s20, 4  ;;  %s30_s23 = sshll.u32 %s1747_s22, 4  ;;  %s73_s21 = int_to_ptr.vmem [resolvable:$true] %s72_s21  ;;  %s31_s23 = int_to_ptr.vmem [resolvable:$true] %s30_s23 }
  0x10   :  { %s1665_s24 = scalar_lea.vmem %s73_s21, 1024  ;;  %p1670_p6 = scmp.lt.s32.totalorder %s73_s21, %s73_s21 }
  0x11   :  { %p1666_p5 = scmp.ne.s32.totalorder %s73_s21, %s1665_s24  ;;  %p1671_p7 = scmp.lt.s32.totalorder %s1665_s24, %s1665_s24 }
  0x13   :  { %p1672_p8 = por %p1671_p7, %p1670_p6 }
  0x15   :  { %p1673_p9 = pnand %p1672_p8, %p1666_p5 }
  0x17   :  { %1676 = shalt.err (!%p1673_p9)
}
  0x18   :  { %78 = dma.hbm_to_vmem [thread:$0]  %s1991_s7, 1024, %s73_s21, [#allocation8], %s1744_s16, %s1744_s16, %s1745_s17  }
  0x19   :  { %s1685_s27 = scalar_lea.vmem %s31_s23, 2048  ;;  %p1690_p11 = scmp.lt.s32.totalorder %s31_s23, %s31_s23 }
  0x1a   :  { %p1686_p10 = scmp.ne.s32.totalorder %s31_s23, %s1685_s27  ;;  %p1691_p12 = scmp.lt.s32.totalorder %s1685_s27, %s1685_s27 }
  0x1c   :  { %p1692_p13 = por %p1691_p12, %p1690_p11 }
  0x1e   :  { %p1693_p0 = pnand %p1692_p13, %p1686_p10 }
  0x20   :  { %1696 = shalt.err (!%p1693_p0)
}
  0x21   :  { %s1748_s3 = smov 128   ;;  %s1749_s28 = smov 8  }
  0x22   :  { %36 = dma.hbm_to_vmem [thread:$0]  %s1985_s1, 2048, %s31_s23, [#allocation3], %s1748_s3, %s1748_s3, %s1749_s28  }
  0x23   :  { %s1750_s15 = smov [#allocation6]   ;;  %s1751_s19 = smov [#allocation9]  }
  0x24   :  { %s58_s18 = sshll.u32 %s1750_s15, 4  ;;  %s90_s20 = sshll.u32 %s1751_s19, 4  ;;  %s59_s18 = int_to_ptr.vmem [resolvable:$true] %s58_s18  ;;  %s91_s20 = int_to_ptr.vmem [resolvable:$true] %s90_s20 }
  0x25   :  { %s1705_s7 = scalar_lea.vmem %s59_s18, 2048  ;;  %p1710_p2 = scmp.lt.s32.totalorder %s59_s18, %s59_s18 }
  0x26   :  { %p1706_p1 = scmp.ne.s32.totalorder %s59_s18, %s1705_s7  ;;  %p1711_p3 = scmp.lt.s32.totalorder %s1705_s7, %s1705_s7 }
  0x28   :  { %p1712_p4 = por %p1711_p3, %p1710_p2 }
  0x2a   :  { %p1713_p5 = pnand %p1712_p4, %p1706_p1 }
  0x2c   :  { %1716 = shalt.err (!%p1713_p5)
}
  0x2d   :  { %64 = dma.hbm_to_vmem [thread:$0]  %s1989_s5, 2048, %s59_s18, [#allocation5], %s1748_s3, %s1748_s3, %s1749_s28  }
  0x2e   :  { %s1725_s21 = scalar_lea.vmem %s91_s20, 6144  ;;  %p1730_p7 = scmp.lt.s32.totalorder %s91_s20, %s91_s20 }
  0x2f   :  { %p1726_p6 = scmp.ne.s32.totalorder %s91_s20, %s1725_s21  ;;  %p1731_p8 = scmp.lt.s32.totalorder %s1725_s21, %s1725_s21 }
  0x31   :  { %p1732_p9 = por %p1731_p8, %p1730_p7 }
  0x33   :  { %p1733_p10 = pnand %p1732_p9, %p1726_p6 }
  0x35   :  { %1736 = shalt.err (!%p1733_p10)
}
  0x36   :  { %s1752_s1 = smov 384   ;;  %s1753_s22 = smov 24  }
  0x37   :  { %96 = dma.hbm_to_vmem [thread:$0]  %s1995_s11, 6144, %s91_s20, [#allocation8], %s1752_s1, %s1752_s1, %s1753_s22  }
  0x38   :  { %1737 = dma.done.wait [#allocation3], 2048  }
  0x39   :  { %1738 = vsyncadd [#allocation3], 4294965248 }
  0x3a   :  { %1739 = dma.done.wait [#allocation5], 3072  }
  0x3b   :  { %1740 = vsyncadd [#allocation5], 4294964224 }
  0x3c   :  { %1741 = dma.done.wait [#allocation8], 7168  }
  0x3d   :  { %1742 = vsyncadd [#allocation8], 4294960128  ;;  %v1754_v0 = vmov 0   ;;  %v1477_v1 = vld [vmem:[#allocation2 + $0x74] ss:$8 sps:$4 sm:$0xff]   ;;  %v115_v17 = vld [vmem:[%s1984_s0] sm:$0xff]  ;;  %v153_v41 = vlaneseq }
  0x3e   :  { %275 = vmatprep.mubr.bf16.mxu0 %v1754_v0  ;;  %v1479_v2 = vld [vmem:[#allocation2 + $0x70] ss:$8 sps:$4 sm:$0xff]   ;;  %243 = vmatprep.subr.bf16.mxu0 %v1477_v1  ;;  %v1480_v3 = vld [vmem:[#allocation2 + $0x64] ss:$8 sps:$4 sm:$0xff]   ;;  %v1482_v4 = vld [vmem:[#allocation2 + $0x60] ss:$8 sps:$4 sm:$0xff]  }
  0x3f   :  { %244 = vmatpush1.bf16.msra.mxu0 %v1479_v2  ;;  %v1483_v5 = vld [vmem:[#allocation2 + $0x54] ss:$8 sps:$4 sm:$0xff]   ;;  %v1485_v6 = vld [vmem:[#allocation2 + $0x50] ss:$8 sps:$4 sm:$0xff]   ;;  %v1486_v7 = vld [vmem:[#allocation2 + $0x44] ss:$8 sps:$4 sm:$0xff]  }
  0x40   :  { %245 = vmatprep.subr.bf16.mxu0 %v1480_v3  ;;  %v1488_v8 = vld [vmem:[#allocation2 + $0x40] ss:$8 sps:$4 sm:$0xff]   ;;  %v1489_v9 = vld [vmem:[#allocation2 + $0x34] ss:$8 sps:$4 sm:$0xff]   ;;  %v1491_v10 = vld [vmem:[#allocation2 + $0x30] ss:$8 sps:$4 sm:$0xff]  }
  0x41   :  { %v1492_v11 = vld [vmem:[#allocation2 + $0x24] ss:$8 sps:$4 sm:$0xff]   ;;  %v1494_v12 = vld [vmem:[#allocation2 + $0x20] ss:$8 sps:$4 sm:$0xff]   ;;  %v1495_v13 = vld [vmem:[#allocation2 + $0x14] ss:$8 sps:$4 sm:$0xff]  }
  0x42   :  { %v1497_v14 = vld [vmem:[#allocation2 + $0x10] ss:$8 sps:$4 sm:$0xff]   ;;  %v1498_v15 = vld [vmem:[#allocation2 + $0x4] ss:$8 sps:$4 sm:$0xff]   ;;  %v1500_v16 = vld [vmem:[#allocation2] ss:$8 sps:$4 sm:$0xff]  }
  0x43   :  { %246 = vmatpush1.bf16.msra.mxu0 %v1482_v4  ;;  %v116_v18 = vld [vmem:[%s1984_s0 + $0x8] sm:$0xff]  ;;  %v1501_v20 = vld [vmem:[#allocation4 + $0x38] sm:$0xff]   ;;  %v1755_v21 = vmov 0.0   ;;  %v1502_v22 = vld [vmem:[#allocation4 + $0x30] sm:$0xff]   ;;  %vm1756_vm0 = vmmov 0   ;;  %v1866_v42 = vshrl.u32 %v153_v41, 7 }
  0x44   :  { %247 = vmatprep.subr.bf16.mxu0 %v1483_v5  ;;  %v151_v19 = vpack.c.bf16 %v116_v18, %v115_v17  ;;  %1403 = vmatprep.subr.bf16.mxu1 %v1755_v21  ;;  %v1503_v23 = vld [vmem:[#allocation4 + $0x28] sm:$0xff]   ;;  %v1504_v24 = vld [vmem:[#allocation4 + $0x20] sm:$0xff]   ;;  %v1505_v25 = vld [vmem:[#allocation4 + $0x18] sm:$0xff]  }
  0x45   :  { %1404 = vmatpush3.bf16.msra.mxu1 %v1501_v20  ;;  %v1506_v26 = vld [vmem:[#allocation4 + $0x10] sm:$0xff]   ;;  %v1507_v27 = vld [vmem:[#allocation4 + $0x8] sm:$0xff]   ;;  %v1508_v28 = vld [vmem:[#allocation4] sm:$0xff]   ;;  %1419 = vmatprep.mubr.msk.bf16.mxu1 %vm1756_vm0, %v1755_v21  ;;  %v1869_v43 = vsub.s32 0, %v1866_v42  ;;  %v1879_v3 = vsub.s32 1, %v1866_v42 }
  0x46   :  { %1405 = vmatprep.subr.bf16.mxu1 %v1755_v21  ;;  %v1509_v29 = vld [vmem:[#allocation6 + $0x70] ss:$8 sps:$4 sm:$0xff]   ;;  %v1511_v30 = vld [vmem:[#allocation6 + $0x74] ss:$8 sps:$4 sm:$0xff]   ;;  %v1514_v31 = vld [vmem:[#allocation6 + $0x64] ss:$8 sps:$4 sm:$0xff]  }
  0x47   :  { %248 = vmatpush1.bf16.msra.mxu0 %v1485_v6  ;;  %v1512_v32 = vld [vmem:[#allocation6 + $0x60] ss:$8 sps:$4 sm:$0xff]   ;;  %v1517_v33 = vld [vmem:[#allocation6 + $0x54] ss:$8 sps:$4 sm:$0xff]   ;;  %v1515_v34 = vld [vmem:[#allocation6 + $0x50] ss:$8 sps:$4 sm:$0xff]  }
  0x48   :  { %249 = vmatprep.subr.bf16.mxu0 %v1486_v7  ;;  %v1520_v35 = vld [vmem:[#allocation6 + $0x44] ss:$8 sps:$4 sm:$0xff]   ;;  %v1518_v36 = vld [vmem:[#allocation6 + $0x40] ss:$8 sps:$4 sm:$0xff]   ;;  %v1523_v37 = vld [vmem:[#allocation6 + $0x34] ss:$8 sps:$4 sm:$0xff]  }
  0x49   :  { %1406 = vmatpush3.bf16.msra.mxu1 %v1502_v22  ;;  %v1521_v38 = vld [vmem:[#allocation6 + $0x30] ss:$8 sps:$4 sm:$0xff]   ;;  %v1526_v39 = vld [vmem:[#allocation6 + $0x24] ss:$8 sps:$4 sm:$0xff]   ;;  %v1524_v40 = vld [vmem:[#allocation6 + $0x20] ss:$8 sps:$4 sm:$0xff]  }
  0x4a   :  { %1407 = vmatprep.subr.bf16.mxu1 %v1755_v21  ;;  %v133_v44 = vld [vmem:[%s1986_s2] sm:$0x3]  ;;  %v1529_v62 = vld [vmem:[#allocation6 + $0x14] ss:$8 sps:$4 sm:$0xff]   ;;  %v1527_v63 = vld [vmem:[#allocation6 + $0x10] ss:$8 sps:$4 sm:$0xff]  }
  0x4b   :  { %250 = vmatpush1.bf16.msra.mxu0 %v1488_v8  ;;  %v156_v45 = vrot.slane %v133_v44, %v1869_v43  ;;  %v1532_v1 = vld [vmem:[#allocation6 + $0x4] ss:$8 sps:$4 sm:$0xff]   ;;  %v1530_v2 = vld [vmem:[#allocation6] ss:$8 sps:$4 sm:$0xff]   ;;  %v160_v6 = vrot.slane %v133_v44, %v1879_v3  ;;  %v1533_v18 = vld [vmem:[#allocation7 + $0x38] sm:$0xff]  }
  0x4c   :  { %251 = vmatprep.subr.bf16.mxu0 %v1489_v9  ;;  %v1283_v4 = vld [vmem:[%s1988_s4] ss:$0 sm:$0xff]  ;;  %v1535_v20 = vld [vmem:[#allocation7 + $0x28] sm:$0xff]  }
  0x4d   :  { %1408 = vmatpush3.bf16.msra.mxu1 %v1503_v23  ;;  %v1536_v22 = vld [vmem:[#allocation7 + $0x20] sm:$0xff]   ;;  %v1537_v23 = vld [vmem:[#allocation7 + $0x18] sm:$0xff]  }
  0x4e   :  { %1409 = vmatprep.subr.bf16.mxu1 %v1755_v21 }
  0x4f   :  { %252 = vmatpush1.bf16.msra.mxu0 %v1491_v10 }
  0x50   :  { %253 = vmatprep.subr.bf16.mxu0 %v1492_v11 }
  0x51   :  { %1410 = vmatpush3.bf16.msra.mxu1 %v1504_v24  ;;  %v1538_v24 = vld [vmem:[#allocation7 + $0x10] sm:$0xff]  }
  0x52   :  { %1411 = vmatprep.subr.bf16.mxu1 %v1755_v21 }
  0x53   :  { %254 = vmatpush1.bf16.msra.mxu0 %v1494_v12 }
  0x54   :  { %255 = vmatprep.subr.bf16.mxu0 %v1495_v13 }
  0x55   :  { %1412 = vmatpush3.bf16.msra.mxu1 %v1505_v25  ;;  %v1539_v25 = vld [vmem:[#allocation7 + $0x8] sm:$0xff]  }
  0x56   :  { %1413 = vmatprep.subr.bf16.mxu1 %v1755_v21 }
  0x57   :  { %256 = vmatpush1.bf16.msra.mxu0 %v1497_v14 }
  0x58   :  { %257 = vmatprep.subr.bf16.mxu0 %v1498_v15 }
  0x59   :  { %1414 = vmatpush3.bf16.msra.mxu1 %v1506_v26  ;;  %v1540_v26 = vld [vmem:[#allocation7] sm:$0xff]  }
  0x5a   :  { %1415 = vmatprep.subr.bf16.mxu1 %v1755_v21 }
  0x5b   :  { %258 = vmatpush1.bf16.msra.mxu0 %v1500_v16 }
  0x5c   :  { %524 = vmatprep.subr.bf16.mxu0 %v1511_v30  ;;  %v1544_v30 = vld [vmem:[%s1993_s9 + $0x20] sm:$0xff]  }
  0x5d   :  { %1416 = vmatpush3.bf16.msra.mxu1 %v1507_v27  ;;  %v1541_v27 = vld [vmem:[%s1993_s9 + $0x38] sm:$0xff]  }
  0x5e   :  { %276 = vmatmul.mubr.bf16.vlgmr.msra.gmra.mxu0 %v151_v19  ;;  %1417 = vmatprep.subr.bf16.mxu1 %v1755_v21  ;;  %v1534_v19 = vld [vmem:[#allocation7 + $0x30] sm:$0xff]  }
  0x5f   :  { %556 = vmatprep.mubr.bf16.mxu0 %v1754_v0  ;;  %525 = vmatpush1.bf16.msra.mxu0 %v1509_v29  ;;  %v1543_v29 = vld [vmem:[%s1993_s9 + $0x28] sm:$0xff]  }
  0x60   :  { %526 = vmatprep.subr.bf16.mxu0 %v1514_v31  ;;  %v1545_v31 = vld [vmem:[%s1993_s9 + $0x18] sm:$0xff]  }
  0x61   :  { %1418 = vmatpush3.bf16.msra.mxu1 %v1508_v28  ;;  %v1542_v28 = vld [vmem:[%s1993_s9 + $0x30] sm:$0xff]  }
  0x62   :  { %1423 = vmatprep.subr.bf16.mxu1 %v1755_v21 }
  0x63   :  { %527 = vmatpush1.bf16.msra.mxu0 %v1512_v32  ;;  %v414_v32 = vld [vmem:[%s1990_s6] sm:$0x3] }
  0x64   :  { %528 = vmatprep.subr.bf16.mxu0 %v1517_v33  ;;  %v437_v33 = vrot.slane %v414_v32, %v1869_v43 }
  0x67   :  { %529 = vmatpush1.bf16.msra.mxu0 %v1515_v34 }
  0x68   :  { %530 = vmatprep.subr.bf16.mxu0 %v1520_v35 }
  0x6b   :  { %531 = vmatpush1.bf16.msra.mxu0 %v1518_v36 }
  0x6c   :  { %532 = vmatprep.subr.bf16.mxu0 %v1523_v37 }
  0x6f   :  { %533 = vmatpush1.bf16.msra.mxu0 %v1521_v38 }
  0x70   :  { %534 = vmatprep.subr.bf16.mxu0 %v1526_v39 }
  0x73   :  { %535 = vmatpush1.bf16.msra.mxu0 %v1524_v40 }
  0x74   :  { %536 = vmatprep.subr.bf16.mxu0 %v1529_v62  ;;  %v1569_v62 = vld [vmem:[#allocation9 + $0xc4] ss:$24 sps:$4 sm:$0xff]  }
  0x77   :  { %537 = vmatpush1.bf16.msra.mxu0 %v1527_v63  ;;  %v1575_v63 = vld [vmem:[#allocation9 + $0x94] ss:$24 sps:$4 sm:$0xff]  }
  0x78   :  { %538 = vmatprep.subr.bf16.mxu0 %v1532_v1  ;;  %v1573_v1 = vld [vmem:[#allocation9 + $0x90] ss:$24 sps:$4 sm:$0xff]  }
  0x7b   :  { %539 = vmatpush1.bf16.msra.mxu0 %v1530_v2  ;;  %v1581_v2 = vld [vmem:[#allocation9 + $0x64] ss:$24 sps:$4 sm:$0xff]  }
  0x7c   :  { %1443 = vmatprep.subr.bf16.mxu0 %v1755_v21 }
 0x11e   :  { %v277_v46 = vpop.f32.mrf.mxu0 }
 0x11f   :  { %v278_v47 = vadd.f32 %v277_v46, %v156_v45 }
 0x120   :  { %v279_v48 = vpop.f32.mrf.mxu0 }
 0x121   :  { %v1281_v49 = vmul.f32 -1.442695, %v278_v47  ;;  %v280_v11 = vadd.f32 %v279_v48, %v160_v6 }
 0x122   :  { %v281_v50 = vpop.f32.mrf.mxu0 }
 0x123   :  { %1621 = vpow2.f32 %v1281_v49  ;;  %v282_v51 = vadd.f32 %v281_v50, %v156_v45 }
 0x124   :  { %v283_v7 = vpop.f32.mrf.mxu0 }
 0x125   :  { %v1282_v52 = vmul.f32 -1.442695, %v282_v51  ;;  %v284_v12 = vadd.f32 %v283_v7, %v160_v6  ;;  %v441_v7 = vrot.slane %v414_v32, %v1879_v3  ;;  %v1585_v32 = vld [vmem:[#allocation9 + $0x30] ss:$24 sps:$4 sm:$0xff]  }
 0x127   :  { %1623 = vpow2.f32 %v1282_v52  ;;  %v1546_v52 = vld [vmem:[%s1993_s9 + $0x10] sm:$0xff]  }
 0x130   :  { %v1622_v53 = vpop.eup %1621 }
 0x131   :  { %v292_v54 = vadd.f32 1.0, %v1622_v53  ;;  %v1547_v53 = vld [vmem:[%s1993_s9 + $0x8] sm:$0xff]  }
 0x133   :  { %1625 = vrcp.f32 %v292_v54  ;;  %v1548_v54 = vld [vmem:[%s1993_s9] sm:$0xff]  }
 0x134   :  { %v1624_v55 = vpop.eup %1623 }
 0x135   :  { %v293_v56 = vadd.f32 1.0, %v1624_v55  ;;  %v1549_v55 = vld [vmem:[#allocation9 + $0x150] ss:$24 sps:$4 sm:$0xff]  }
 0x137   :  { %1627 = vrcp.f32 %v293_v56  ;;  %v1551_v56 = vld [vmem:[#allocation9 + $0x154] ss:$24 sps:$4 sm:$0xff]  }
 0x140   :  { %v1626_v57 = vpop.eup %1625 }
 0x141   :  { %v298_v59 = vmul.f32 %v1626_v57, %v278_v47  ;;  %v1554_v57 = vld [vmem:[#allocation9 + $0x15c] ss:$24 sps:$4 sm:$0xff]  }
 0x144   :  { %v1628_v58 = vpop.eup %1627 }
 0x145   :  { %v299_v60 = vmul.f32 %v1628_v58, %v282_v51  ;;  %v1557_v58 = vld [vmem:[#allocation9 + $0x124] ss:$24 sps:$4 sm:$0xff]  }
 0x147   :  { %v300_v61 = vpack.c.bf16 %v299_v60, %v298_v59  ;;  %v1555_v59 = vld [vmem:[#allocation9 + $0x120] ss:$24 sps:$4 sm:$0xff]   ;;  %v1563_v60 = vld [vmem:[#allocation9 + $0xf4] ss:$24 sps:$4 sm:$0xff]  }
 0x149   :  { %1420 = vmatmul.mubr.bf16.vlgmr.msra.gmra.mxu1 %v300_v61  ;;  %v1561_v61 = vld [vmem:[#allocation9 + $0xf0] ss:$24 sps:$4 sm:$0xff]  }
 0x14a   :  { %1439 = vmatprep.mubr.msk.bf16.mxu1 %vm1756_vm0, %v1755_v21  ;;  %1424 = vmatpush3.bf16.msra.mxu1 %v1533_v18  ;;  %v1552_v18 = vld [vmem:[#allocation9 + $0x158] ss:$24 sps:$4 sm:$0xff]  }
 0x14b   :  { %1425 = vmatprep.subr.bf16.mxu1 %v1755_v21 }
 0x14e   :  { %1426 = vmatpush3.bf16.msra.mxu1 %v1534_v19 }
 0x14f   :  { %1427 = vmatprep.subr.bf16.mxu1 %v1755_v21 }
 0x152   :  { %1428 = vmatpush3.bf16.msra.mxu1 %v1535_v20  ;;  %v1560_v20 = vld [vmem:[#allocation9 + $0x12c] ss:$24 sps:$4 sm:$0xff]  }
 0x153   :  { %1429 = vmatprep.subr.bf16.mxu1 %v1755_v21 }
 0x156   :  { %1430 = vmatpush3.bf16.msra.mxu1 %v1536_v22  ;;  %v1558_v22 = vld [vmem:[#allocation9 + $0x128] ss:$24 sps:$4 sm:$0xff]  }
 0x157   :  { %1431 = vmatprep.subr.bf16.mxu1 %v1755_v21 }
 0x15a   :  { %1432 = vmatpush3.bf16.msra.mxu1 %v1537_v23  ;;  %v1566_v23 = vld [vmem:[#allocation9 + $0xfc] ss:$24 sps:$4 sm:$0xff]  }
 0x15b   :  { %1433 = vmatprep.subr.bf16.mxu1 %v1755_v21 }
 0x15e   :  { %1434 = vmatpush3.bf16.msra.mxu1 %v1538_v24  ;;  %v1564_v24 = vld [vmem:[#allocation9 + $0xf8] ss:$24 sps:$4 sm:$0xff]  }
 0x15f   :  { %1435 = vmatprep.subr.bf16.mxu1 %v1755_v21 }
 0x162   :  { %1436 = vmatpush3.bf16.msra.mxu1 %v1539_v25  ;;  %v1572_v25 = vld [vmem:[#allocation9 + $0xcc] ss:$24 sps:$4 sm:$0xff]  }
 0x163   :  { %1437 = vmatprep.subr.bf16.mxu1 %v1755_v21 }
 0x166   :  { %1438 = vmatpush3.bf16.msra.mxu1 %v1540_v26  ;;  %v1570_v26 = vld [vmem:[#allocation9 + $0xc8] ss:$24 sps:$4 sm:$0xff]  }
 0x167   :  { %1113 = vmatprep.subr.bf16.mxu1 %v1551_v56  ;;  %v1606_v56 = vld [vmem:[#allocation9 + $0xd0] ss:$24 sps:$4 sm:$0xff]  }
 0x209   :  { %v389_v5 = vpop.f32.mrf.mxu1 }
 0x20a   :  { %v390_v9 = vadd.f32 %v1283_v4, %v389_v5  ;;  %v1310_v5 = vld [vmem:[%s1992_s8] ss:$0 sm:$0xff] }
 0x20b   :  { %v1421_v8 = vpop.f32.mrf.mxu1 }
 0x20c   :  { %v396_v15 = vadd.f32 %v390_v9, %v280_v11 }
 0x20d   :  { %v392_v10 = vpop.f32.mrf.mxu1 }
 0x20e   :  { %v393_v13 = vadd.f32 %v1283_v4, %v392_v10  ;;  %v1579_v4 = vld [vmem:[#allocation9 + $0x60] ss:$24 sps:$4 sm:$0xff]  }
 0x20f   :  { %v1422_v14 = vpop.f32.mrf.mxu1 }
 0x210   :  { %v397_v16 = vadd.f32 %v393_v13, %v284_v12 }
 0x212   :  { %v432_v17 = vpack.c.bf16 %v397_v16, %v396_v15 }
 0x214   :  { %557 = vmatmul.mubr.bf16.vlgmr.msra.gmra.mxu0 %v432_v17 }
 0x215   :  { %1459 = vmatprep.mubr.msk.bf16.mxu0 %vm1756_vm0, %v1755_v21  ;;  %1444 = vmatpush3.bf16.msra.mxu0 %v1541_v27  ;;  %v1578_v27 = vld [vmem:[#allocation9 + $0x9c] ss:$24 sps:$4 sm:$0xff]  }
 0x216   :  { %1445 = vmatprep.subr.bf16.mxu0 %v1755_v21 }
 0x219   :  { %1446 = vmatpush3.bf16.msra.mxu0 %v1542_v28  ;;  %v1576_v28 = vld [vmem:[#allocation9 + $0x98] ss:$24 sps:$4 sm:$0xff]  }
 0x21a   :  { %1447 = vmatprep.subr.bf16.mxu0 %v1755_v21 }
 0x21d   :  { %1448 = vmatpush3.bf16.msra.mxu0 %v1543_v29  ;;  %v1584_v29 = vld [vmem:[#allocation9 + $0x6c] ss:$24 sps:$4 sm:$0xff]  }
 0x21e   :  { %1449 = vmatprep.subr.bf16.mxu0 %v1755_v21 }
 0x221   :  { %1450 = vmatpush3.bf16.msra.mxu0 %v1544_v30  ;;  %v1582_v30 = vld [vmem:[#allocation9 + $0x68] ss:$24 sps:$4 sm:$0xff]  }
 0x222   :  { %1451 = vmatprep.subr.bf16.mxu0 %v1755_v21 }
 0x225   :  { %1452 = vmatpush3.bf16.msra.mxu0 %v1545_v31  ;;  %v1587_v31 = vld [vmem:[#allocation9 + $0x34] ss:$24 sps:$4 sm:$0xff]  }
 0x226   :  { %1453 = vmatprep.subr.bf16.mxu0 %v1755_v21 }
 0x229   :  { %1454 = vmatpush3.bf16.msra.mxu0 %v1546_v52  ;;  %v1600_v52 = vld [vmem:[#allocation9 + $0x130] ss:$24 sps:$4 sm:$0xff]  }
 0x22a   :  { %1455 = vmatprep.subr.bf16.mxu0 %v1755_v21 }
 0x22d   :  { %1456 = vmatpush3.bf16.msra.mxu0 %v1547_v53  ;;  %v1605_v53 = vld [vmem:[#allocation9 + $0x104] ss:$24 sps:$4 sm:$0xff]  }
 0x22e   :  { %1457 = vmatprep.subr.bf16.mxu0 %v1755_v21  ;;  %v1567_v21 = vld [vmem:[#allocation9 + $0xc0] ss:$24 sps:$4 sm:$0xff]  }
 0x231   :  { %1458 = vmatpush3.bf16.msra.mxu0 %v1548_v54  ;;  %v1603_v54 = vld [vmem:[#allocation9 + $0x100] ss:$24 sps:$4 sm:$0xff]  }
 0x232   :  { %1156 = vmatprep.subr.bf16.mxu0 %v1554_v57  ;;  %v1611_v57 = vld [vmem:[#allocation9 + $0xa4] ss:$24 sps:$4 sm:$0xff]  }
 0x2d4   :  { %v558_v34 = vpop.f32.mrf.mxu0 }
 0x2d5   :  { %v559_v35 = vadd.f32 %v558_v34, %v437_v33  ;;  %v1588_v34 = vld [vmem:[#allocation9 + $0x38] ss:$24 sps:$4 sm:$0xff]  }
 0x2d6   :  { %v560_v36 = vpop.f32.mrf.mxu0 }
 0x2d7   :  { %v1308_v37 = vmul.f32 -1.442695, %v559_v35  ;;  %v561_v12 = vadd.f32 %v560_v36, %v441_v7  ;;  %v1591_v36 = vld [vmem:[#allocation9] ss:$24 sps:$4 sm:$0xff]  }
 0x2d8   :  { %v562_v38 = vpop.f32.mrf.mxu0 }
 0x2d9   :  { %1629 = vpow2.f32 %v1308_v37  ;;  %v563_v39 = vadd.f32 %v562_v38, %v437_v33  ;;  %v1590_v33 = vld [vmem:[#allocation9 + $0x3c] ss:$24 sps:$4 sm:$0xff]   ;;  %v1596_v37 = vld [vmem:[#allocation9 + $0xc] ss:$24 sps:$4 sm:$0xff]   ;;  %v1594_v38 = vld [vmem:[#allocation9 + $0x8] ss:$24 sps:$4 sm:$0xff]  }
 0x2da   :  { %v564_v8 = vpop.f32.mrf.mxu0 }
 0x2db   :  { %v1309_v40 = vmul.f32 -1.442695, %v563_v39  ;;  %v565_v13 = vadd.f32 %v564_v8, %v441_v7 }
 0x2dd   :  { %1631 = vpow2.f32 %v1309_v40 }
 0x2e6   :  { %v1630_v41 = vpop.eup %1629 }
 0x2e7   :  { %v573_v44 = vadd.f32 1.0, %v1630_v41  ;;  %v1319_v41 = vld [vmem:[%s1994_s10] ss:$0 sm:$0xff] }
 0x2e9   :  { %1633 = vrcp.f32 %v573_v44 }
 0x2ea   :  { %v1632_v45 = vpop.eup %1631 }
 0x2eb   :  { %v574_v46 = vadd.f32 1.0, %v1632_v45 }
 0x2ed   :  { %1635 = vrcp.f32 %v574_v46 }
 0x2f6   :  { %v1634_v47 = vpop.eup %1633 }
 0x2f7   :  { %v579_v49 = vmul.f32 %v1634_v47, %v559_v35  ;;  %v1593_v35 = vld [vmem:[#allocation9 + $0x4] ss:$24 sps:$4 sm:$0xff]  }
 0x2fa   :  { %v1636_v48 = vpop.eup %1635 }
 0x2fb   :  { %v580_v50 = vmul.f32 %v1636_v48, %v563_v39  ;;  %v1599_v39 = vld [vmem:[#allocation9 + $0x164] ss:$24 sps:$4 sm:$0xff]  }
 0x2fd   :  { %v581_v51 = vpack.c.bf16 %v580_v50, %v579_v49  ;;  %v1597_v49 = vld [vmem:[#allocation9 + $0x160] ss:$24 sps:$4 sm:$0xff]  }
 0x2ff   :  { %1440 = vmatmul.mubr.bf16.vlgmr.msra.gmra.mxu1 %v581_v51  ;;  %v1602_v51 = vld [vmem:[#allocation9 + $0x134] ss:$24 sps:$4 sm:$0xff]  }
 0x300   :  { %1145 = vmatprep.mubr.bf16.mxu1 %v1754_v0  ;;  %1114 = vmatpush1.bf16.msra.mxu1 %v1549_v55  ;;  %v1608_v55 = vld [vmem:[#allocation9 + $0xd4] ss:$24 sps:$4 sm:$0xff]  }
 0x301   :  { %1115 = vmatprep.subr.bf16.mxu1 %v1557_v58  ;;  %v1609_v58 = vld [vmem:[#allocation9 + $0xa0] ss:$24 sps:$4 sm:$0xff]  }
 0x304   :  { %1116 = vmatpush1.bf16.msra.mxu1 %v1555_v59  ;;  %v1614_v59 = vld [vmem:[#allocation9 + $0x74] ss:$24 sps:$4 sm:$0xff]  }
 0x305   :  { %1117 = vmatprep.subr.bf16.mxu1 %v1563_v60  ;;  %v1612_v60 = vld [vmem:[#allocation9 + $0x70] ss:$24 sps:$4 sm:$0xff]  }
 0x308   :  { %1118 = vmatpush1.bf16.msra.mxu1 %v1561_v61  ;;  %v1617_v61 = vld [vmem:[#allocation9 + $0x44] ss:$24 sps:$4 sm:$0xff]  }
 0x309   :  { %1119 = vmatprep.subr.bf16.mxu1 %v1569_v62  ;;  %v1620_v62 = vld [vmem:[#allocation9 + $0x14] ss:$24 sps:$4 sm:$0xff]  }
 0x30c   :  { %1120 = vmatpush1.bf16.msra.mxu1 %v1567_v21  ;;  %v1618_v21 = vld [vmem:[#allocation9 + $0x10] ss:$24 sps:$4 sm:$0xff]  }
 0x30d   :  { %1121 = vmatprep.subr.bf16.mxu1 %v1575_v63  ;;  %v853_v63 = vsub.s32 2, %v1866_v42 }
 0x310   :  { %1122 = vmatpush1.bf16.msra.mxu1 %v1573_v1  ;;  %v841_v1 = vld [vmem:[%s1996_s12] sm:$0x3f] }
 0x311   :  { %1123 = vmatprep.subr.bf16.mxu1 %v1581_v2  ;;  %v857_v2 = vsub.s32 3, %v1866_v42 }
 0x313   :  { %v858_v7 = vrot.slane %v841_v1, %v857_v2 }
 0x314   :  { %1124 = vmatpush1.bf16.msra.mxu1 %v1579_v4  ;;  %v846_v4 = vrot.slane %v841_v1, %v1869_v43 }
 0x315   :  { %1125 = vmatprep.subr.bf16.mxu1 %v1587_v31 }
 0x318   :  { %1126 = vmatpush1.bf16.msra.mxu1 %v1585_v32 }
 0x319   :  { %1127 = vmatprep.subr.bf16.mxu1 %v1593_v35 }
 0x31c   :  { %1128 = vmatpush1.bf16.msra.mxu1 %v1591_v36 }
 0x31d   :  { %1199 = vmatprep.subr.bf16.mxu1 %v1599_v39 }
 0x3bf   :  { %v670_v6 = vpop.f32.mrf.mxu1 }
 0x3c0   :  { %v671_v10 = vadd.f32 %v1310_v5, %v670_v6  ;;  %v850_v6 = vrot.slane %v841_v1, %v1879_v3 }
 0x3c1   :  { %v1441_v9 = vpop.f32.mrf.mxu1 }
 0x3c2   :  { %v677_v16 = vadd.f32 %v671_v10, %v561_v12 }
 0x3c3   :  { %v673_v11 = vpop.f32.mrf.mxu1 }
 0x3c4   :  { %v674_v14 = vadd.f32 %v1310_v5, %v673_v11  ;;  %v854_v5 = vrot.slane %v841_v1, %v853_v63 }
 0x3c5   :  { %v1442_v15 = vpop.f32.mrf.mxu1 }
 0x3c6   :  { %v678_v17 = vadd.f32 %v674_v14, %v565_v13 }
 0x3c8   :  { %v695_v19 = vpack.c.bf16 %v678_v17, %v677_v16 }
 0x3ca   :  { %1460 = vmatmul.mubr.bf16.vlgmr.msra.gmra.mxu0 %v695_v19 }
 0x3cb   :  { %1157 = vmatpush1.bf16.msra.mxu0 %v1552_v18  ;;  %1188 = vmatprep.mubr.bf16.mxu0 %v1754_v0 }
 0x3cc   :  { %1158 = vmatprep.subr.bf16.mxu0 %v1560_v20 }
 0x3cf   :  { %1159 = vmatpush1.bf16.msra.mxu0 %v1558_v22 }
 0x3d0   :  { %1160 = vmatprep.subr.bf16.mxu0 %v1566_v23  ;;  %v861_v23 = vsub.s32 4, %v1866_v42 }
 0x3d3   :  { %1161 = vmatpush1.bf16.msra.mxu0 %v1564_v24  ;;  %v865_v24 = vsub.s32 5, %v1866_v42 }
 0x3d4   :  { %1162 = vmatprep.subr.bf16.mxu0 %v1572_v25  ;;  %v862_v25 = vrot.slane %v841_v1, %v861_v23 }
 0x3d7   :  { %1163 = vmatpush1.bf16.msra.mxu0 %v1570_v26  ;;  %v866_v26 = vrot.slane %v841_v1, %v865_v24 }
 0x3d8   :  { %1164 = vmatprep.subr.bf16.mxu0 %v1578_v27 }
 0x3db   :  { %1165 = vmatpush1.bf16.msra.mxu0 %v1576_v28 }
 0x3dc   :  { %1166 = vmatprep.subr.bf16.mxu0 %v1584_v29 }
 0x3df   :  { %1167 = vmatpush1.bf16.msra.mxu0 %v1582_v30 }
 0x3e0   :  { %1168 = vmatprep.subr.bf16.mxu0 %v1590_v33 }
 0x3e3   :  { %1169 = vmatpush1.bf16.msra.mxu0 %v1588_v34 }
 0x3e4   :  { %1170 = vmatprep.subr.bf16.mxu0 %v1596_v37 }
 0x3e7   :  { %1171 = vmatpush1.bf16.msra.mxu0 %v1594_v38 }
 0x48a   :  { %v785_v40 = vpop.f32.mrf.mxu0 }
 0x48b   :  { %v786_v46 = vadd.f32 %v1319_v41, %v785_v40 }
 0x48c   :  { %v1461_v44 = vpop.f32.mrf.mxu0 }
 0x48e   :  { %v788_v45 = vpop.f32.mrf.mxu0 }
 0x48f   :  { %v789_v47 = vadd.f32 %v1319_v41, %v788_v45 }
 0x490   :  { %v1462_v48 = vpop.f32.mrf.mxu0 }
 0x491   :  { %v840_v50 = vpack.c.bf16 %v789_v47, %v786_v46 }
 0x493   :  { %1146 = vmatmul.mubr.bf16.vlgmr.msra.gmra.mxu1 %v840_v50  ;;  %1189 = vmatmul.mubr.bf16.vlgmr.msra.gmra.mxu0 %v840_v50 }
 0x494   :  { %1200 = vmatpush1.bf16.msra.mxu1 %v1597_v49  ;;  %1231 = vmatprep.mubr.bf16.mxu1 %v1754_v0  ;;  %v1615_v0 = vld [vmem:[#allocation9 + $0x40] ss:$24 sps:$4 sm:$0xff]  }
 0x495   :  { %1201 = vmatprep.subr.bf16.mxu1 %v1602_v51 }
 0x498   :  { %1202 = vmatpush1.bf16.msra.mxu1 %v1600_v52 }
 0x499   :  { %1203 = vmatprep.subr.bf16.mxu1 %v1605_v53 }
 0x49c   :  { %1204 = vmatpush1.bf16.msra.mxu1 %v1603_v54 }
 0x49d   :  { %1205 = vmatprep.subr.bf16.mxu1 %v1608_v55 }
 0x4a0   :  { %1206 = vmatpush1.bf16.msra.mxu1 %v1606_v56 }
 0x4a1   :  { %1207 = vmatprep.subr.bf16.mxu1 %v1611_v57 }
 0x4a4   :  { %1208 = vmatpush1.bf16.msra.mxu1 %v1609_v58 }
 0x4a5   :  { %1209 = vmatprep.subr.bf16.mxu1 %v1614_v59 }
 0x4a8   :  { %1210 = vmatpush1.bf16.msra.mxu1 %v1612_v60 }
 0x4a9   :  { %1211 = vmatprep.subr.bf16.mxu1 %v1617_v61 }
 0x4ac   :  { %1212 = vmatpush1.bf16.msra.mxu1 %v1615_v0 }
 0x4ad   :  { %1213 = vmatprep.subr.bf16.mxu1 %v1620_v62 }
 0x4b0   :  { %1214 = vmatpush1.bf16.msra.mxu1 %v1618_v21 }
 0x4b3   :  { %1232 = vmatmul.mubr.bf16.vlgmr.msra.gmra.mxu1 %v840_v50 }
 0x553   :  { %v1147_v8 = vpop.f32.mrf.mxu1  ;;  %v1190_v9 = vpop.f32.mrf.mxu0 }
 0x554   :  { %v1148_v10 = vadd.f32 %v1147_v8, %v846_v4  ;;  %v1191_v11 = vadd.f32 %v1190_v9, %v854_v5 }
 0x555   :  { %v1149_v12 = vpop.f32.mrf.mxu1  ;;  %v1192_v13 = vpop.f32.mrf.mxu0 }
 0x556   :  { %1242 = vst [vmem:[%s1997_s13] sm:$0xff] %v1148_v10  ;;  %1245 = vst [vmem:[%s1998_s14 + $0x8] sm:$0xff] %v1191_v11  ;;  %v1150_v14 = vadd.f32 %v1149_v12, %v850_v6  ;;  %v1193_v43 = vadd.f32 %v1192_v13, %v858_v7 }
 0x557   :  { %v1151_v15 = vpop.f32.mrf.mxu1  ;;  %v1194_v16 = vpop.f32.mrf.mxu0 }
 0x558   :  { %1244 = vst [vmem:[%s1998_s14] sm:$0xff] %v1150_v14  ;;  %1246 = vst [vmem:[%s1998_s14 + $0x10] sm:$0xff] %v1193_v43  ;;  %v1152_v3 = vadd.f32 %v1151_v15, %v846_v4  ;;  %v1195_v17 = vadd.f32 %v1194_v16, %v854_v5 }
 0x559   :  { %v1153_v18 = vpop.f32.mrf.mxu1  ;;  %v1196_v19 = vpop.f32.mrf.mxu0 }
 0x55a   :  { %1243 = vst [vmem:[%s1997_s13 + $0x8] sm:$0xff] %v1152_v3  ;;  %1250 = vst [vmem:[%s1998_s14 + $0x30] sm:$0xff] %v1195_v17  ;;  %v1154_v20 = vadd.f32 %v1153_v18, %v850_v6  ;;  %v1197_v22 = vadd.f32 %v1196_v19, %v858_v7 }
 0x55c   :  { %1249 = vst [vmem:[%s1998_s14 + $0x28] sm:$0xff] %v1154_v20  ;;  %1251 = vst [vmem:[%s1998_s14 + $0x38] sm:$0xff] %v1197_v22 }
 0x573   :  { %v1233_v27 = vpop.f32.mrf.mxu1 }
 0x574   :  { %v1234_v28 = vadd.f32 %v1233_v27, %v862_v25 }
 0x575   :  { %v1235_v29 = vpop.f32.mrf.mxu1 }
 0x576   :  { %1247 = vst [vmem:[%s1998_s14 + $0x18] sm:$0xff] %v1234_v28  ;;  %v1236_v30 = vadd.f32 %v1235_v29, %v866_v26 }
 0x577   :  { %v1237_v31 = vpop.f32.mrf.mxu1 }
 0x578   :  { %1248 = vst [vmem:[%s1998_s14 + $0x20] sm:$0xff] %v1236_v30  ;;  %v1238_v32 = vadd.f32 %v1237_v31, %v862_v25 }
 0x579   :  { %v1239_v33 = vpop.f32.mrf.mxu1 }
 0x57a   :  { %1252 = vst [vmem:[%s1998_s14 + $0x40] sm:$0xff] %v1238_v32  ;;  %v1240_v42 = vadd.f32 %v1239_v33, %v866_v26 }
 0x57c   :  { %1253 = vst [vmem:[%s1998_s14 + $0x48] sm:$0xff] %v1240_v42 }
 0x57d   :  { %1262 = vsyncpa [#allocation3], 1 }
 0x57e   :  { %1263 = vsyncpa [#allocation5], 1 }
 0x57f   :  { %1264 = vsyncpa [#allocation8], 1 }

</bundles_post_ra>
